<compile_context>
chip_gen: v7x
topology: tpu7x:2x2x1
jax: 0.10.0
libtpu: 0.0.40
codegen_flags: <defaults>
</compile_context>

<pallas_src>
import functools
import math

import jax
import jax.numpy as jnp
from jax.experimental import pallas as pl
from jax.experimental.pallas import tpu as pltpu

EPS = 1e-5


# --------------------------- per-generation config ----------------------------
@functools.lru_cache(maxsize=None)
def _device_config():
    """VMEM budget and tile caps per TPU generation.

    v5e / v6e have 128 MiB VMEM per core; v7x has 64 MiB per TensorCore, so it
    gets a smaller scoped limit and smaller tiles. Falls back conservatively if
    the hardware query is unavailable."""
    vmem_bytes = None
    try:
        info = pltpu.get_tpu_info()
        for attr in ("vmem_capacity_bytes", "vmem_size_bytes", "vmem_bytes"):
            v = getattr(info, attr, None)
            if v:
                vmem_bytes = int(v)
                break
    except Exception:
        vmem_bytes = None
    if vmem_bytes is None:
        vmem_bytes = 64 * 1024 * 1024      # conservative default (v7x-safe)

    if vmem_bytes >= 96 * 1024 * 1024:     # v5e / v6e: 128 MiB VMEM
        return dict(vmem_limit=80 * 1024 * 1024,
                    tm=512, tn=1024, tk=1024, seq=512)
    # v7x: 64 MiB per TC -> keep scoped limit well under it, shrink tiles
    return dict(vmem_limit=44 * 1024 * 1024,
                tm=256, tn=512, tk=512, seq=256)


# --------------------------- tile-size selection ------------------------------
def _pick_tile(dim, cap, align=16):
    """Tile for a non-reduction dim: full dim if small, else aligned cap.
    16-row alignment keeps bf16 sublanes fully packed."""
    if dim <= cap:
        return dim
    return max(align, (cap // align) * align)


def _pick_divisible_tile(dim, cap, align, hard_max):
    """Largest tile <= cap, multiple of `align`, that exactly divides `dim`
    (needed for reduction / sequence axes). Raises instead of silently
    requesting a whole-dimension block on huge awkward shapes."""
    if dim <= cap:
        return dim
    c = (cap // align) * align
    while c >= align:
        if dim % c == 0:
            return c
        c -= align
    if dim <= hard_max:
        return dim
    raise ValueError(
        f"no tile <= {cap} (multiple of {align}) divides dimension {dim}; "
        f"pad the input or pick a divisible shape")


def _budget_tn(K, tn_cap, vmem_limit, w_itemsize):
    """Shrink the N tile so the double-buffered (K, tn) weight slab stays under
    ~40% of the scoped VMEM limit (matters for whole-K norm+matmul on v7x)."""
    budget = int(vmem_limit * 0.4)
    tn = tn_cap
    while tn > 128 and 2 * K * tn * w_itemsize > budget:
        tn //= 2
    return tn


# ----------------------- fused RMSNorm + Linear kernel -------------------------
def _norm_linear_kernel(x_ref, w_ref, b_ref, o_ref, xn_ref, *, eps, activation):
    # RMS-normalize the (tm, K) row block once (gamma is folded into the
    # weights), cache it in VMEM, and reuse it for every N tile of this row.
    @pl.when(pl.program_id(1) == 0)
    def _():
        x = x_ref[...].astype(jnp.float32)
        ms = jnp.mean(x * x, axis=-1, keepdims=True)
        xn_ref[...] = (x * jax.lax.rsqrt(ms + eps)).astype(xn_ref.dtype)

    acc = jnp.dot(xn_ref[...], w_ref[...], preferred_element_type=jnp.float32)
    acc = acc + b_ref[...].astype(jnp.float32)
    if activation == "silu":
        acc = acc * jax.nn.sigmoid(acc)
    o_ref[...] = acc.astype(o_ref.dtype)


def fused_norm_linear(x, w, b, activation=None, eps=EPS):
    """out = act( RMSNorm(x) @ w + b ).  The RMSNorm gamma is pre-folded into
    `w` (diag(g) @ W); K is kept whole so the row statistics are exact."""
    M, K = x.shape
    _, N = w.shape
    cfg = _device_config()
    tm = _pick_tile(M, cfg["tm"], 16)
    tn_cap = _budget_tn(K, cfg["tn"], cfg["vmem_limit"], jnp.dtype(w.dtype).itemsize)
    tn = _pick_tile(N, tn_cap, 128)
    grid = (pl.cdiv(M, tm), pl.cdiv(N, tn))
    return pl.pallas_call(
        functools.partial(_norm_linear_kernel, eps=eps, activation=activation),
        out_shape=jax.ShapeDtypeStruct((M, N), x.dtype),
        grid=grid,
        in_specs=[
            pl.BlockSpec((tm, K), lambda i, j: (i, 0)),
            pl.BlockSpec((K, tn), lambda i, j: (0, j)),
            pl.BlockSpec((1, tn), lambda i, j: (0, j)),
        ],
        out_specs=pl.BlockSpec((tm, tn), lambda i, j: (i, j)),
        scratch_shapes=[pltpu.VMEM((tm, K), x.dtype)],   # cached normalized rows
        compiler_params=pltpu.CompilerParams(
            # N axis must stay sequential per row block so the cached
            # normalized block computed at j == 0 is valid for every j.
            dimension_semantics=("parallel", "arbitrary"),
            vmem_limit_bytes=cfg["vmem_limit"]),
    )(x, w, b.reshape(1, N))


# --------------- 3-D tiled Linear (+ bias + residual) kernel -------------------
def _linear_residual_kernel(x_ref, w_ref, b_ref, r_ref, o_ref, acc_ref, *,
                            activation):
    @pl.when(pl.program_id(2) == 0)
    def _():
        acc_ref[...] = jnp.zeros_like(acc_ref)

    acc_ref[...] += jnp.dot(x_ref[...], w_ref[...],
                            preferred_element_type=jnp.float32)

    @pl.when(pl.program_id(2) == pl.num_programs(2) - 1)
    def _():
        acc = acc_ref[...] + b_ref[...].astype(jnp.float32)
        if activation == "silu":
            acc = acc * jax.nn.sigmoid(acc)
        o_ref[...] = (acc + r_ref[...].astype(jnp.float32)).astype(o_ref.dtype)


def tiled_linear(x, w, b, residual, activation=None):
    """out = residual + act(x @ w + b), 3-D tiled (M, N, K) with f32 acc."""
    M, K = x.shape
    _, N = w.shape
    cfg = _device_config()
    tm = _pick_tile(M, cfg["tm"], 16)
    tn = _pick_tile(N, cfg["tn"], 128)
    tk = _pick_divisible_tile(K, cfg["tk"], 128, 8192)
    grid = (pl.cdiv(M, tm), pl.cdiv(N, tn), pl.cdiv(K, tk))
    return pl.pallas_call(
        functools.partial(_linear_residual_kernel, activation=activation),
        out_shape=jax.ShapeDtypeStruct((M, N), x.dtype),
        grid=grid,
        in_specs=[
            pl.BlockSpec((tm, tk), lambda i, j, k: (i, k)),
            pl.BlockSpec((tk, tn), lambda i, j, k: (k, j)),
            pl.BlockSpec((1, tn), lambda i, j, k: (0, j)),
            pl.BlockSpec((tm, tn), lambda i, j, k: (i, j)),
        ],
        out_specs=pl.BlockSpec((tm, tn), lambda i, j, k: (i, j)),
        scratch_shapes=[pltpu.VMEM((tm, tn), jnp.float32)],
        compiler_params=pltpu.CompilerParams(
            dimension_semantics=("parallel", "parallel", "arbitrary"),
            vmem_limit_bytes=cfg["vmem_limit"]),
    )(x, w, b.reshape(1, N), residual)


# --------------- flash causal attention (RoPE, triangular schedule) ------------
def _flash_attn_kernel(qi_tab, ki_tab, q_ref, k_ref, v_ref,
                       sq_ref, cq_ref, sk_ref, ck_ref, o_ref,
                       qrot_ref, m_sc, l_sc, acc_sc, *, tq, tk, dh):
    p = pl.program_id(2)
    qi = qi_tab[p]
    ki = ki_tab[p]
    half = dh // 2

    @pl.when(ki == 0)
    def _init():
        m_sc[...] = jnp.full_like(m_sc, -1e30)
        l_sc[...] = jnp.zeros_like(l_sc)
        acc_sc[...] = jnp.zeros_like(acc_sc)
        # RoPE on the query tile once per row tile (reused for every KV tile).
        # 1/sqrt(dh) is already folded into the q-projection weights; the
        # rotate-half sign is folded into the precomputed sin table; the
        # [even | odd] head layout comes from the packed-weight permutation.
        q = q_ref[...].reshape(tq, dh).astype(jnp.float32)
        q = q * cq_ref[...] + pltpu.roll(q, half, 1) * sq_ref[...]
        qrot_ref[...] = q.astype(qrot_ref.dtype)

    # RoPE on the key tile (cheap relative to the two MXU matmuls below).
    k = k_ref[...].reshape(tk, dh).astype(jnp.float32)
    k = (k * ck_ref[...] + pltpu.roll(k, half, 1) * sk_ref[...]).astype(k_ref.dtype)
    v = v_ref[...].reshape(tk, dh)

    s = jax.lax.dot_general(qrot_ref[...], k, (((1,), (1,)), ((), ())),
                            preferred_element_type=jnp.float32)   # (tq, tk)

    def update(scores):
        m_prev = m_sc[...]
        m_new = jnp.maximum(m_prev, jnp.max(scores, axis=-1, keepdims=True))
        alpha = jnp.exp(m_prev - m_new)
        pr = jnp.exp(scores - m_new)
        l_sc[...] = alpha * l_sc[...] + jnp.sum(pr, axis=-1, keepdims=True)
        acc_sc[...] = alpha * acc_sc[...] + jnp.dot(
            pr.astype(v.dtype), v, preferred_element_type=jnp.float32)
        m_sc[...] = m_new

    @pl.when(ki < qi)              # interior tile: mask-free fast path
    def _interior():
        update(s)

    @pl.when(ki == qi)             # diagonal tile: causal mask, then finalize
    def _diagonal():
        row = jax.lax.broadcasted_iota(jnp.int32, (tq, tk), 0)
        col = jax.lax.broadcasted_iota(jnp.int32, (tq, tk), 1)
        update(jnp.where(col <= row, s, -1e30))
        # The diagonal tile is the last KV tile for this query tile
        # (pairs are ordered ki = 0..qi).  approx reciprocal: ~2^-12 rel err.
        out = acc_sc[...] * pl.reciprocal(l_sc[...], approx=True)
        o_ref[...] = out.astype(o_ref.dtype).reshape(o_ref.shape)


def flash_attention(qkv, sin_signed, cos_full, *, n_heads, out_dtype,
                    seq_tile=None):
    """Causal flash attention reading q/k/v straight from the packed QKV
    activation (B, T, 3D) and writing the output straight into (B, T, D);
    the grid enumerates only lower-triangular (query-tile, kv-tile) pairs."""
    B, T, threeD = qkv.shape
    D = threeD // 3
    H = n_heads
    Dh = D // H
    cfg = _device_config()
    if seq_tile is not None:
        assert T % seq_tile == 0 and seq_tile % 8 == 0, "bad seq_tile override"
        tq = seq_tile
    else:
        tq = _pick_divisible_tile(T, cfg["seq"], 8, 4096)
    tk = tq            # tq == tk keeps diagonal-tile masking safe (no fully
    nq = T // tq       # masked rows inside an included tile)

    # Lower-triangular schedule: masked upper-triangle tiles are never DMA'd.
    qi_list, ki_list = [], []
    for qi in range(nq):
        for ki in range(qi + 1):
            qi_list.append(qi)
            ki_list.append(ki)
    qi_tab = jnp.asarray(qi_list, jnp.int32)
    ki_tab = jnp.asarray(ki_list, jnp.int32)
    grid = (B, H, len(qi_list))

    direct = (Dh % 128 == 0)       # head slices are lane-aligned inside 3D
    if direct:
        q_in = k_in = v_in = qkv                    # (B, T, 3D), zero copies
        blk = (1, tq, Dh)
        kv_blk = (1, tk, Dh)
        q_map = lambda b, h, p, qt, kt: (b, qt[p], h)
        k_map = lambda b, h, p, qt, kt: (b, kt[p], H + h)
        v_map = lambda b, h, p, qt, kt: (b, kt[p], 2 * H + h)
        o_map = lambda b, h, p, qt, kt: (b, qt[p], h)
        out_shape = jax.ShapeDtypeStruct((B, T, D), out_dtype)
        out_blk = (1, tq, Dh)
    else:
        # Fallback for Dh not a multiple of 128: one head-major transpose so
        # the minor block dim equals the full array dim (layout-legal).
        qkv_h = qkv.reshape(B, T, 3 * H, Dh).transpose(0, 2, 1, 3)  # (B,3H,T,Dh)
        q_in = k_in = v_in = qkv_h
        blk = (1, 1, tq, Dh)
        kv_blk = (1, 1, tk, Dh)
        q_map = lambda b, h, p, qt, kt: (b, h, qt[p], 0)
        k_map = lambda b, h, p, qt, kt: (b, H + h, kt[p], 0)
        v_map = lambda b, h, p, qt, kt: (b, 2 * H + h, kt[p], 0)
        o_map = lambda b, h, p, qt, kt: (b, h, qt[p], 0)
        out_shape = jax.ShapeDtypeStruct((B, H, T, Dh), out_dtype)
        out_blk = (1, 1, tq, Dh)

    sq_map = lambda b, h, p, qt, kt: (qt[p], 0)
    sk_map = lambda b, h, p, qt, kt: (kt[p], 0)

    out = pl.pallas_call(
        functools.partial(_flash_attn_kernel, tq=tq, tk=tk, dh=Dh),
        out_shape=out_shape,
        grid_spec=pltpu.PrefetchScalarGridSpec(
            num_scalar_prefetch=2,
            grid=grid,
            in_specs=[
                pl.BlockSpec(blk, q_map),
                pl.BlockSpec(kv_blk, k_map),
                pl.BlockSpec(kv_blk, v_map),
                pl.BlockSpec((tq, Dh), sq_map),
                pl.BlockSpec((tq, Dh), sq_map),
                pl.BlockSpec((tk, Dh), sk_map),
                pl.BlockSpec((tk, Dh), sk_map),
            ],
            out_specs=pl.BlockSpec(out_blk, o_map),
            scratch_shapes=[
                pltpu.VMEM((tq, Dh), qkv.dtype),    # rotated q cache
                pltpu.VMEM((tq, 1), jnp.float32),   # running max
                pltpu.VMEM((tq, 1), jnp.float32),   # running sum
                pltpu.VMEM((tq, Dh), jnp.float32),  # output accumulator
            ]),
        compiler_params=pltpu.CompilerParams(
            dimension_semantics=("parallel", "parallel", "arbitrary"),
            vmem_limit_bytes=cfg["vmem_limit"]),
    )(qi_tab, ki_tab, q_in, k_in, v_in, sin_signed, cos_full, sin_signed, cos_full)

    if direct:
        return out                                   # already (B, T, D)
    return out.transpose(0, 2, 1, 3).reshape(B, T, D)


# ---------------------------------- RoPE glue ----------------------------------
def rope_tables(T, dh):
    """([-sin | sin], [cos | cos]) tables of shape (T, dh) for the half-split
    (rotate-half) RoPE formulation used inside the attention kernel."""
    inv_freq = 1.0 / (10000.0 ** (jnp.arange(0, dh, 2, dtype=jnp.float32) / dh))
    t = jnp.arange(T, dtype=jnp.float32)
    freqs = jnp.einsum("i,j->ij", t, inv_freq)               # (T, dh//2)
    sin, cos = jnp.sin(freqs), jnp.cos(freqs)
    sin_signed = jnp.concatenate([-sin, sin], axis=-1)       # (T, dh)
    cos_full = jnp.concatenate([cos, cos], axis=-1)          # (T, dh)
    return sin_signed, cos_full


# ------------------------------- parameters ------------------------------------
def init_raw_params(key, d_model, n_heads, dtype=jnp.bfloat16):
    ks = jax.random.split(key, 8)

    def lin(k, fi, fo):
        w = (jax.random.normal(k, (fi, fo), jnp.float32) * 0.02).astype(dtype)
        b = jnp.zeros((fo,), jnp.float32)
        return w, b

    wq, bq = lin(ks[0], d_model, d_model)
    wk, bk = lin(ks[1], d_model, d_model)
    wv, bv = lin(ks[2], d_model, d_model)
    wo, bo = lin(ks[3], d_model, d_model)
    w1, b1 = lin(ks[4], d_model, 4 * d_model)
    w2, b2 = lin(ks[5], 4 * d_model, d_model)
    g1 = 1.0 + 0.1 * jax.random.normal(ks[6], (d_model,), jnp.float32)
    g2 = 1.0 + 0.1 * jax.random.normal(ks[7], (d_model,), jnp.float32)
    return dict(wq=wq, bq=bq, wk=wk, bk=bk, wv=wv, bv=bv, wo=wo, bo=bo,
                w1=w1, b1=b1, w2=w2, b2=b2, norm1=g1, norm2=g2)


def pack_params(raw, n_heads, dtype=jnp.bfloat16):
    """Fold the RMSNorm gammas (diag(g) @ W) and 1/sqrt(Dh) into the weights,
    permute q/k columns per head to the [even | odd] half-split layout used by
    the in-kernel RoPE, and concatenate Q/K/V into one (D, 3D) projection."""
    d = raw["wq"].shape[0]
    dh = d // n_heads
    scale = 1.0 / math.sqrt(dh)
    perm = jnp.concatenate([jnp.arange(0, dh, 2), jnp.arange(1, dh, 2)])
    full = (jnp.arange(n_heads)[:, None] * dh + perm[None, :]).reshape(-1)
    g1 = raw["norm1"][:, None]
    g2 = raw["norm2"][:, None]

    wq = (g1 * raw["wq"].astype(jnp.float32))[:, full] * scale
    bq = raw["bq"][full] * scale
    wk = (g1 * raw["wk"].astype(jnp.float32))[:, full]
    bk = raw["bk"][full]
    wv = g1 * raw["wv"].astype(jnp.float32)
    bv = raw["bv"]
    wqkv = jnp.concatenate([wq, wk, wv], axis=1)             # (D, 3D)
    bqkv = jnp.concatenate([bq, bk, bv], axis=0)             # (3D,)
    w1 = g2 * raw["w1"].astype(jnp.float32)
    return dict(
        wqkv=wqkv.astype(dtype), bqkv=bqkv.astype(jnp.float32),
        wo=raw["wo"].astype(dtype), bo=raw["bo"].astype(jnp.float32),
        w1=w1.astype(dtype), b1=raw["b1"].astype(jnp.float32),
        w2=raw["w2"].astype(dtype), b2=raw["b2"].astype(jnp.float32),
    )


# ------------------------------ forward pass -----------------------------------
def transformer_block(x, params, n_heads, seq_tile=None):
    # TODO(synk): use_cache=True incremental-decode path (stateful k/v caches)
    # is not implemented; this reproduces the reference use_cache=False forward.
    B, T, D = x.shape
    H = n_heads
    Dh = D // H
    assert D % H == 0 and Dh % 2 == 0
    M = B * T
    xf = x.reshape(M, D)

    # attention sub-block: fused RMSNorm + packed QKV projection (gamma and
    # 1/sqrt(Dh) pre-folded into the weights).
    qkv = fused_norm_linear(xf, params["wqkv"], params["bqkv"])  # (M, 3D)
    qkv = qkv.reshape(B, T, 3 * D)                               # free reshape

    sin_s, cos_f = rope_tables(T, Dh)
    y = flash_attention(qkv, sin_s, cos_f, n_heads=H, out_dtype=x.dtype,
                        seq_tile=seq_tile)                       # (B, T, D)
    y = y.reshape(M, D)                                          # free reshape

    # output projection with the residual add fused into the kernel
    x1 = tiled_linear(y, params["wo"], params["bo"], residual=xf)

    # MLP sub-block: fused RMSNorm + up-proj + SiLU, then down-proj + residual
    h = fused_norm_linear(x1, params["w1"], params["b1"], activation="silu")
    x2 = tiled_linear(h, params["w2"], params["b2"], residual=x1)
    return x2.reshape(B, T, D)


# ------------------------- pure-JAX reference (spec) ----------------------------
def reference_block(x, raw, n_heads):
    x = x.astype(jnp.float32)
    B, T, D = x.shape
    H = n_heads
    Dh = D // H
    f32 = lambda a: a.astype(jnp.float32)

    def rms(v, g):
        norm = jnp.sqrt(jnp.mean(v * v, axis=-1, keepdims=True) + EPS)
        return g * (v / norm)

    xn = rms(x, raw["norm1"])

    def proj(w, b):
        return (xn @ f32(w) + b).reshape(B, T, H, Dh).transpose(0, 2, 1, 3)

    q, k, v = proj(raw["wq"], raw["bq"]), proj(raw["wk"], raw["bk"]), proj(raw["wv"], raw["bv"])

    inv_freq = 1.0 / (10000.0 ** (jnp.arange(0, Dh, 2, dtype=jnp.float32) / Dh))
    t = jnp.arange(T, dtype=jnp.float32)
    freqs = jnp.einsum("i,j->ij", t, inv_freq)
    sin, cos = jnp.sin(freqs)[None, None], jnp.cos(freqs)[None, None]

    def rot(a):
        a1, a2 = a[..., ::2], a[..., 1::2]
        return jnp.concatenate([a1 * cos - a2 * sin, a1 * sin + a2 * cos], axis=-1)

    qr, kr = rot(q), rot(k)
    att = jnp.einsum("bhqd,bhkd->bhqk", qr, kr) / math.sqrt(Dh)
    mask = jnp.tril(jnp.ones((T, T), bool))
    att = jnp.where(mask[None, None], att, -jnp.inf)
    att = jax.nn.softmax(att, axis=-1)
    y = jnp.einsum("bhqk,bhkd->bhqd", att, v)
    y = y.transpose(0, 2, 1, 3).reshape(B, T, D)
    x1 = x + (y @ f32(raw["wo"]) + raw["bo"])

    h = rms(x1, raw["norm2"]) @ f32(raw["w1"]) + raw["b1"]
    h = h * jax.nn.sigmoid(h)
    return x1 + (h @ f32(raw["w2"]) + raw["b2"])


# ----------------------------------- main ---------------------------------------
if __name__ == "__main__":
    D_MODEL = 256
    N_HEADS = 2            # head_dim = 128 -> lane-aligned direct QKV reads
    B, T = 2, 16

    key = jax.random.PRNGKey(0)
    k_params, k_x, k_x2 = jax.random.split(key, 3)
    raw = init_raw_params(k_params, D_MODEL, N_HEADS)
    params = pack_params(raw, N_HEADS)

    x = (jax.random.normal(k_x, (B, T, D_MODEL), jnp.float32) * 0.5
         ).astype(jnp.bfloat16)

    fwd = jax.jit(functools.partial(transformer_block, n_heads=N_HEADS))
    out = fwd(x, params)
    jax.block_until_ready(out)
    assert out.shape == (B, T, D_MODEL), out.shape
    out_f32 = out.astype(jnp.float32)
    assert bool(jnp.all(jnp.isfinite(out_f32))), "non-finite output"
    ref = reference_block(x, raw, N_HEADS)
    err = float(jnp.max(jnp.abs(out_f32 - ref)))
    assert err < 0.1, f"mismatch vs reference (single-tile path): {err}"

    # Second check: longer sequence with a forced small tile so the triangular
    # multi-tile schedule (interior mask-free tiles, diagonal masked tiles,
    # accumulator init/finalize, output revisiting) is exercised.
    T2 = 32
    x2 = (jax.random.normal(k_x2, (B, T2, D_MODEL), jnp.float32) * 0.5
          ).astype(jnp.bfloat16)
    fwd2 = jax.jit(functools.partial(transformer_block, n_heads=N_HEADS,
                                     seq_tile=8))
    out2 = fwd2(x2, params)
    jax.block_until_ready(out2)
    out2_f32 = out2.astype(jnp.float32)
    assert bool(jnp.all(jnp.isfinite(out2_f32))), "non-finite output (multi-tile)"
    ref2 = reference_block(x2, raw, N_HEADS)
    err2 = float(jnp.max(jnp.abs(out2_f32 - ref2)))
    assert err2 < 0.1, f"mismatch vs reference (multi-tile path): {err2}"

    print("KERNEL_OK")
</pallas_src>

<mosaic_0001>
module attributes {stable_mosaic.version = 11 : i64} {
  func.func @_norm_linear_kernel(%arg0: i32, %arg1: i32, %arg2: memref<32x256xbf16, #tpu.memory_space<vmem>>, %arg3: memref<256x512xbf16, #tpu.memory_space<vmem>>, %arg4: memref<1x512xf32, #tpu.memory_space<vmem>>, %arg5: memref<32x512xbf16, #tpu.memory_space<vmem>>, %arg6: memref<32x256xbf16, #tpu.memory_space<vmem>>) attributes {dimension_semantics = [#tpu.dimension_semantics<parallel>, #tpu.dimension_semantics<arbitrary>], iteration_bounds = array<i64: 1, 2>, scalar_prefetch = 0 : i64, scratch_operands = 1 : i64, tpu.core_type = #tpu.core_type<tc>, window_params = [{transform_indices = @transform_0, window_bounds = array<i64: 32, 256>}, {transform_indices = @transform_1, window_bounds = array<i64: 256, 512>}, {transform_indices = @transform_2, window_bounds = array<i64: 1, 512>}, {transform_indices = @transform_3, window_bounds = array<i64: 32, 512>}]} {
    %c0_i32 = arith.constant 0 : i32
    %0 = arith.cmpi eq, %arg1, %c0_i32 : i32
    %1 = arith.extui %0 : i1 to i32
    %c0_i32_0 = arith.constant 0 : i32
    %2 = arith.cmpi ne, %1, %c0_i32_0 : i32
    scf.if %2 {
      %c0_8 = arith.constant 0 : index
      %c0_9 = arith.constant 0 : index
      %11 = vector.load %arg2[%c0_8, %c0_9] : memref<32x256xbf16, #tpu.memory_space<vmem>>, vector<32x256xbf16>
      %12 = arith.extf %11 : vector<32x256xbf16> to vector<32x256xf32>
      %13 = arith.mulf %12, %12 : vector<32x256xf32>
      %cst_10 = arith.constant dense<0.000000e+00> : vector<32xf32>
      %14 = vector.multi_reduction <add>, %13, %cst_10 [1] : vector<32x256xf32> to vector<32xf32>
      %15 = vector.shape_cast %14 : vector<32xf32> to vector<32x1xf32>
      %cst_11 = arith.constant 2.560000e+02 : f32
      %16 = vector.broadcast %cst_11 : f32 to vector<32x1xf32>
      %17 = arith.divf %15, %16 : vector<32x1xf32>
      %cst_12 = arith.constant 9.99999974E-6 : f32
      %18 = vector.broadcast %cst_12 : f32 to vector<32x1xf32>
      %19 = arith.addf %17, %18 : vector<32x1xf32>
      %20 = math.rsqrt %19 : vector<32x1xf32>
      %21 = vector.broadcast %20 : vector<32x1xf32> to vector<32x256xf32>
      %22 = arith.mulf %12, %21 : vector<32x256xf32>
      %23 = arith.truncf %22 : vector<32x256xf32> to vector<32x256xbf16>
      %c0_13 = arith.constant 0 : index
      %c0_14 = arith.constant 0 : index
      %24 = vector.load %arg6[%c0_13, %c0_14] : memref<32x256xbf16, #tpu.memory_space<vmem>>, vector<32x256xbf16>
      tpu.vector_store %arg6[%c0_13, %c0_14], %23 {strides = array<i32>} : memref<32x256xbf16, #tpu.memory_space<vmem>>, vector<32x256xbf16>,
    } else {
    }
    %c0 = arith.constant 0 : index
    %c0_1 = arith.constant 0 : index
    %3 = vector.load %arg6[%c0, %c0_1] : memref<32x256xbf16, #tpu.memory_space<vmem>>, vector<32x256xbf16>
    %c0_2 = arith.constant 0 : index
    %c0_3 = arith.constant 0 : index
    %4 = vector.load %arg3[%c0_2, %c0_3] : memref<256x512xbf16, #tpu.memory_space<vmem>>, vector<256x512xbf16>
    %cst = arith.constant dense<0.000000e+00> : vector<32x512xf32>
    %5 = tpu.matmul %3, %4, %cst {dimension_numbers = #tpu.dot_dimension_numbers<[1], [0], [0], [1], [0, 0, 1, 1], [], []>} : vector<32x256xbf16>, vector<256x512xbf16>, vector<32x512xf32> -> vector<32x512xf32>
    %c0_4 = arith.constant 0 : index
    %c0_5 = arith.constant 0 : index
    %6 = vector.load %arg4[%c0_4, %c0_5] : memref<1x512xf32, #tpu.memory_space<vmem>>, vector<1x512xf32>
    %7 = vector.broadcast %6 : vector<1x512xf32> to vector<32x512xf32>
    %8 = arith.addf %5, %7 : vector<32x512xf32>
    %9 = arith.truncf %8 : vector<32x512xf32> to vector<32x512xbf16>
    %c0_6 = arith.constant 0 : index
    %c0_7 = arith.constant 0 : index
    %10 = vector.load %arg5[%c0_6, %c0_7] : memref<32x512xbf16, #tpu.memory_space<vmem>>, vector<32x512xbf16>
    tpu.vector_store %arg5[%c0_6, %c0_7], %9 {strides = array<i32>} : memref<32x512xbf16, #tpu.memory_space<vmem>>, vector<32x512xbf16>,
    return
  }
  func.func @transform_0(%arg0: i32, %arg1: i32) -> (i32, i32) {
    %c0_i32 = arith.constant 0 : i32
    %c0_i32_0 = arith.constant 0 : i32
    return %arg0, %c0_i32 : i32, i32
  }
  func.func @transform_1(%arg0: i32, %arg1: i32) -> (i32, i32) {
    %c0_i32 = arith.constant 0 : i32
    %c0_i32_0 = arith.constant 0 : i32
    return %c0_i32, %arg1 : i32, i32
  }
  func.func @transform_2(%arg0: i32, %arg1: i32) -> (i32, i32) {
    %c0_i32 = arith.constant 0 : i32
    %c0_i32_0 = arith.constant 0 : i32
    return %c0_i32, %arg1 : i32, i32
  }
  func.func @transform_3(%arg0: i32, %arg1: i32) -> (i32, i32) {
    %c0_i32 = arith.constant 0 : i32
    return %arg0, %arg1 : i32, i32
  }
}

module attributes {stable_mosaic.version = 11 : i64} {
  func.func @_linear_residual_kernel(%arg0: i32, %arg1: i32, %arg2: i32, %arg3: memref<32x256xbf16, #tpu.memory_space<vmem>>, %arg4: memref<256x256xbf16, #tpu.memory_space<vmem>>, %arg5: memref<1x256xf32, #tpu.memory_space<vmem>>, %arg6: memref<32x256xbf16, #tpu.memory_space<vmem>>, %arg7: memref<32x256xbf16, #tpu.memory_space<vmem>>, %arg8: memref<32x256xf32, #tpu.memory_space<vmem>>) attributes {dimension_semantics = [#tpu.dimension_semantics<parallel>, #tpu.dimension_semantics<parallel>, #tpu.dimension_semantics<arbitrary>], iteration_bounds = array<i64: 1, 1, 1>, scalar_prefetch = 0 : i64, scratch_operands = 1 : i64, tpu.core_type = #tpu.core_type<tc>, window_params = [{transform_indices = @transform_0, window_bounds = array<i64: 32, 256>}, {transform_indices = @transform_1, window_bounds = array<i64: 256, 256>}, {transform_indices = @transform_2, window_bounds = array<i64: 1, 256>}, {transform_indices = @transform_3, window_bounds = array<i64: 32, 256>}, {transform_indices = @transform_4, window_bounds = array<i64: 32, 256>}]} {
    %c0_i32 = arith.constant 0 : i32
    %0 = arith.cmpi eq, %arg2, %c0_i32 : i32
    %1 = arith.extui %0 : i1 to i32
    %c0_i32_0 = arith.constant 0 : i32
    %2 = arith.cmpi ne, %1, %c0_i32_0 : i32
    scf.if %2 {
      %cst_10 = arith.constant 0.000000e+00 : f32
      %12 = vector.broadcast %cst_10 : f32 to vector<32x256xf32>
      %c0_11 = arith.constant 0 : index
      %c0_12 = arith.constant 0 : index
      %13 = vector.load %arg8[%c0_11, %c0_12] : memref<32x256xf32, #tpu.memory_space<vmem>>, vector<32x256xf32>
      tpu.vector_store %arg8[%c0_11, %c0_12], %12 {strides = array<i32>} : memref<32x256xf32, #tpu.memory_space<vmem>>, vector<32x256xf32>,
    } else {
    }
    %c0 = arith.constant 0 : index
    %c0_1 = arith.constant 0 : index
    %3 = vector.load %arg8[%c0, %c0_1] : memref<32x256xf32, #tpu.memory_space<vmem>>, vector<32x256xf32>
    %c0_2 = arith.constant 0 : index
    %c0_3 = arith.constant 0 : index
    %4 = vector.load %arg3[%c0_2, %c0_3] : memref<32x256xbf16, #tpu.memory_space<vmem>>, vector<32x256xbf16>
    %c0_4 = arith.constant 0 : index
    %c0_5 = arith.constant 0 : index
    %5 = vector.load %arg4[%c0_4, %c0_5] : memref<256x256xbf16, #tpu.memory_space<vmem>>, vector<256x256xbf16>
    %cst = arith.constant dense<0.000000e+00> : vector<32x256xf32>
    %6 = tpu.matmul %4, %5, %cst {dimension_numbers = #tpu.dot_dimension_numbers<[1], [0], [0], [1], [0, 0, 1, 1], [], []>} : vector<32x256xbf16>, vector<256x256xbf16>, vector<32x256xf32> -> vector<32x256xf32>
    %7 = arith.addf %3, %6 : vector<32x256xf32>
    %c0_6 = arith.constant 0 : index
    %c0_7 = arith.constant 0 : index
    %8 = vector.load %arg8[%c0_6, %c0_7] : memref<32x256xf32, #tpu.memory_space<vmem>>, vector<32x256xf32>
    tpu.vector_store %arg8[%c0_6, %c0_7], %7 {strides = array<i32>} : memref<32x256xf32, #tpu.memory_space<vmem>>, vector<32x256xf32>,
    %c0_i32_8 = arith.constant 0 : i32
    %9 = arith.cmpi eq, %arg2, %c0_i32_8 : i32
    %10 = arith.extui %9 : i1 to i32
    %c0_i32_9 = arith.constant 0 : i32
    %11 = arith.cmpi ne, %10, %c0_i32_9 : i32
    scf.if %11 {
      %c0_10 = arith.constant 0 : index
      %c0_11 = arith.constant 0 : index
      %12 = vector.load %arg8[%c0_10, %c0_11] : memref<32x256xf32, #tpu.memory_space<vmem>>, vector<32x256xf32>
      %c0_12 = arith.constant 0 : index
      %c0_13 = arith.constant 0 : index
      %13 = vector.load %arg5[%c0_12, %c0_13] : memref<1x256xf32, #tpu.memory_space<vmem>>, vector<1x256xf32>
      %14 = vector.broadcast %13 : vector<1x256xf32> to vector<32x256xf32>
      %15 = arith.addf %12, %14 : vector<32x256xf32>
      %c0_14 = arith.constant 0 : index
      %c0_15 = arith.constant 0 : index
      %16 = vector.load %arg6[%c0_14, %c0_15] : memref<32x256xbf16, #tpu.memory_space<vmem>>, vector<32x256xbf16>
      %17 = arith.extf %16 : vector<32x256xbf16> to vector<32x256xf32>
      %18 = arith.addf %15, %17 : vector<32x256xf32>
      %19 = arith.truncf %18 : vector<32x256xf32> to vector<32x256xbf16>
      %c0_16 = arith.constant 0 : index
      %c0_17 = arith.constant 0 : index
      %20 = vector.load %arg7[%c0_16, %c0_17] : memref<32x256xbf16, #tpu.memory_space<vmem>>, vector<32x256xbf16>
      tpu.vector_store %arg7[%c0_16, %c0_17], %19 {strides = array<i32>} : memref<32x256xbf16, #tpu.memory_space<vmem>>, vector<32x256xbf16>,
    } else {
    }
    return
  }
  func.func @transform_0(%arg0: i32, %arg1: i32, %arg2: i32) -> (i32, i32) {
    %c0_i32 = arith.constant 0 : i32
    return %arg0, %arg2 : i32, i32
  }
  func.func @transform_1(%arg0: i32, %arg1: i32, %arg2: i32) -> (i32, i32) {
    %c0_i32 = arith.constant 0 : i32
    return %arg2, %arg1 : i32, i32
  }
  func.func @transform_2(%arg0: i32, %arg1: i32, %arg2: i32) -> (i32, i32) {
    %c0_i32 = arith.constant 0 : i32
    %c0_i32_0 = arith.constant 0 : i32
    return %c0_i32, %arg1 : i32, i32
  }
  func.func @transform_3(%arg0: i32, %arg1: i32, %arg2: i32) -> (i32, i32) {
    %c0_i32 = arith.constant 0 : i32
    return %arg0, %arg1 : i32, i32
  }
  func.func @transform_4(%arg0: i32, %arg1: i32, %arg2: i32) -> (i32, i32) {
    %c0_i32 = arith.constant 0 : i32
    return %arg0, %arg1 : i32, i32
  }
}

module attributes {stable_mosaic.version = 11 : i64} {
  func.func @_flash_attn_kernel(%arg0: i32, %arg1: i32, %arg2: i32, %arg3: memref<1xi32, #tpu.memory_space<smem>>, %arg4: memref<1xi32, #tpu.memory_space<smem>>, %arg5: memref<1x16x128xbf16, #tpu.memory_space<vmem>>, %arg6: memref<1x16x128xbf16, #tpu.memory_space<vmem>>, %arg7: memref<1x16x128xbf16, #tpu.memory_space<vmem>>, %arg8: memref<16x128xf32, #tpu.memory_space<vmem>>, %arg9: memref<16x128xf32, #tpu.memory_space<vmem>>, %arg10: memref<16x128xf32, #tpu.memory_space<vmem>>, %arg11: memref<16x128xf32, #tpu.memory_space<vmem>>, %arg12: memref<1x16x128xbf16, #tpu.memory_space<vmem>>, %arg13: memref<16x128xbf16, #tpu.memory_space<vmem>>, %arg14: memref<16x1xf32, #tpu.memory_space<vmem>>, %arg15: memref<16x1xf32, #tpu.memory_space<vmem>>, %arg16: memref<16x128xf32, #tpu.memory_space<vmem>>) attributes {dimension_semantics = [#tpu.dimension_semantics<parallel>, #tpu.dimension_semantics<parallel>, #tpu.dimension_semantics<arbitrary>], iteration_bounds = array<i64: 2, 2, 1>, scalar_prefetch = 2 : i64, scratch_operands = 4 : i64, tpu.core_type = #tpu.core_type<tc>, window_params = [{transform_indices = @transform_0, window_bounds = array<i64: 1, 16, 128>}, {transform_indices = @transform_1, window_bounds = array<i64: 1, 16, 128>}, {transform_indices = @transform_2, window_bounds = array<i64: 1, 16, 128>}, {transform_indices = @transform_3, window_bounds = array<i64: 16, 128>}, {transform_indices = @transform_4, window_bounds = array<i64: 16, 128>}, {transform_indices = @transform_5, window_bounds = array<i64: 16, 128>}, {transform_indices = @transform_6, window_bounds = array<i64: 16, 128>}, {transform_indices = @transform_7, window_bounds = array<i64: 1, 16, 128>}]} {
    %0 = arith.index_cast %arg2 : i32 to index
    %1 = memref.load %arg3[%0] : memref<1xi32, #tpu.memory_space<smem>>
    %2 = arith.index_cast %arg2 : i32 to index
    %3 = memref.load %arg4[%2] : memref<1xi32, #tpu.memory_space<smem>>
    %c0_i32 = arith.constant 0 : i32
    %4 = arith.cmpi eq, %3, %c0_i32 : i32
    %5 = arith.extui %4 : i1 to i32
    %c0_i32_0 = arith.constant 0 : i32
    %6 = arith.cmpi ne, %5, %c0_i32_0 : i32
    scf.if %6 {
      %cst_14 = arith.constant -1.000000e+30 : f32
      %27 = vector.broadcast %cst_14 : f32 to vector<16x1xf32>
      %c0_15 = arith.constant 0 : index
      %c0_16 = arith.constant 0 : index
      %28 = vector.load %arg14[%c0_15, %c0_16] : memref<16x1xf32, #tpu.memory_space<vmem>>, vector<16x1xf32>
      tpu.vector_store %arg14[%c0_15, %c0_16], %27 {strides = array<i32>} : memref<16x1xf32, #tpu.memory_space<vmem>>, vector<16x1xf32>,
      %cst_17 = arith.constant 0.000000e+00 : f32
      %29 = vector.broadcast %cst_17 : f32 to vector<16x1xf32>
      %c0_18 = arith.constant 0 : index
      %c0_19 = arith.constant 0 : index
      %30 = vector.load %arg15[%c0_18, %c0_19] : memref<16x1xf32, #tpu.memory_space<vmem>>, vector<16x1xf32>
      tpu.vector_store %arg15[%c0_18, %c0_19], %29 {strides = array<i32>} : memref<16x1xf32, #tpu.memory_space<vmem>>, vector<16x1xf32>,
      %cst_20 = arith.constant 0.000000e+00 : f32
      %31 = vector.broadcast %cst_20 : f32 to vector<16x128xf32>
      %c0_21 = arith.constant 0 : index
      %c0_22 = arith.constant 0 : index
      %32 = vector.load %arg16[%c0_21, %c0_22] : memref<16x128xf32, #tpu.memory_space<vmem>>, vector<16x128xf32>
      tpu.vector_store %arg16[%c0_21, %c0_22], %31 {strides = array<i32>} : memref<16x128xf32, #tpu.memory_space<vmem>>, vector<16x128xf32>,
      %c0_23 = arith.constant 0 : index
      %c0_24 = arith.constant 0 : index
      %c0_25 = arith.constant 0 : index
      %33 = vector.load %arg5[%c0_23, %c0_24, %c0_25] : memref<1x16x128xbf16, #tpu.memory_space<vmem>>, vector<1x16x128xbf16>
      %34 = vector.shape_cast %33 : vector<1x16x128xbf16> to vector<16x128xbf16>
      %35 = arith.extf %34 : vector<16x128xbf16> to vector<16x128xf32>
      %c0_26 = arith.constant 0 : index
      %c0_27 = arith.constant 0 : index
      %36 = vector.load %arg9[%c0_26, %c0_27] : memref<16x128xf32, #tpu.memory_space<vmem>>, vector<16x128xf32>
      %37 = arith.mulf %35, %36 : vector<16x128xf32>
      %c64_i32_28 = arith.constant 64 : i32
      %38 = tpu.dynamic_rotate %35 by %c64_i32_28 dim 1 : vector<16x128xf32>, i32 -> vector<16x128xf32>
      %c0_29 = arith.constant 0 : index
      %c0_30 = arith.constant 0 : index
      %39 = vector.load %arg8[%c0_29, %c0_30] : memref<16x128xf32, #tpu.memory_space<vmem>>, vector<16x128xf32>
      %40 = arith.mulf %38, %39 : vector<16x128xf32>
      %41 = arith.addf %37, %40 : vector<16x128xf32>
      %42 = arith.truncf %41 : vector<16x128xf32> to vector<16x128xbf16>
      %c0_31 = arith.constant 0 : index
      %c0_32 = arith.constant 0 : index
      %43 = vector.load %arg13[%c0_31, %c0_32] : memref<16x128xbf16, #tpu.memory_space<vmem>>, vector<16x128xbf16>
      tpu.vector_store %arg13[%c0_31, %c0_32], %42 {strides = array<i32>} : memref<16x128xbf16, #tpu.memory_space<vmem>>, vector<16x128xbf16>,
    } else {
    }
    %c0 = arith.constant 0 : index
    %c0_1 = arith.constant 0 : index
    %c0_2 = arith.constant 0 : index
    %7 = vector.load %arg6[%c0, %c0_1, %c0_2] : memref<1x16x128xbf16, #tpu.memory_space<vmem>>, vector<1x16x128xbf16>
    %8 = vector.shape_cast %7 : vector<1x16x128xbf16> to vector<16x128xbf16>
    %9 = arith.extf %8 : vector<16x128xbf16> to vector<16x128xf32>
    %c0_3 = arith.constant 0 : index
    %c0_4 = arith.constant 0 : index
    %10 = vector.load %arg11[%c0_3, %c0_4] : memref<16x128xf32, #tpu.memory_space<vmem>>, vector<16x128xf32>
    %11 = arith.mulf %9, %10 : vector<16x128xf32>
    %c64_i32 = arith.constant 64 : i32
    %12 = tpu.dynamic_rotate %9 by %c64_i32 dim 1 : vector<16x128xf32>, i32 -> vector<16x128xf32>
    %c0_5 = arith.constant 0 : index
    %c0_6 = arith.constant 0 : index
    %13 = vector.load %arg10[%c0_5, %c0_6] : memref<16x128xf32, #tpu.memory_space<vmem>>, vector<16x128xf32>
    %14 = arith.mulf %12, %13 : vector<16x128xf32>
    %15 = arith.addf %11, %14 : vector<16x128xf32>
    %16 = arith.truncf %15 : vector<16x128xf32> to vector<16x128xbf16>
    %c0_7 = arith.constant 0 : index
    %c0_8 = arith.constant 0 : index
    %c0_9 = arith.constant 0 : index
    %17 = vector.load %arg7[%c0_7, %c0_8, %c0_9] : memref<1x16x128xbf16, #tpu.memory_space<vmem>>, vector<1x16x128xbf16>
    %18 = vector.shape_cast %17 : vector<1x16x128xbf16> to vector<16x128xbf16>
    %c0_10 = arith.constant 0 : index
    %c0_11 = arith.constant 0 : index
    %19 = vector.load %arg13[%c0_10, %c0_11] : memref<16x128xbf16, #tpu.memory_space<vmem>>, vector<16x128xbf16>
    %cst = arith.constant dense<0.000000e+00> : vector<16x16xf32>
    %20 = tpu.matmul %19, %16, %cst {dimension_numbers = #tpu.dot_dimension_numbers<[1], [1], [0], [0], [0, 0, 1, 0], [], []>} : vector<16x128xbf16>, vector<16x128xbf16>, vector<16x16xf32> -> vector<16x16xf32>
    %21 = arith.cmpi slt, %3, %1 : i32
    %22 = arith.extui %21 : i1 to i32
    %c0_i32_12 = arith.constant 0 : i32
    %23 = arith.cmpi ne, %22, %c0_i32_12 : i32
    scf.if %23 {
      %c0_14 = arith.constant 0 : index
      %c0_15 = arith.constant 0 : index
      %27 = vector.load %arg14[%c0_14, %c0_15] : memref<16x1xf32, #tpu.memory_space<vmem>>, vector<16x1xf32>
      %cst_16 = arith.constant dense<0xFF800000> : vector<16xf32>
      %28 = vector.multi_reduction <maximumf>, %20, %cst_16 [1] : vector<16x16xf32> to vector<16xf32>
      %29 = vector.shape_cast %28 : vector<16xf32> to vector<16x1xf32>
      %30 = arith.maximumf %27, %29 : vector<16x1xf32>
      %31 = arith.subf %27, %30 : vector<16x1xf32>
      %32 = math.exp %31 : vector<16x1xf32>
      %33 = vector.broadcast %30 : vector<16x1xf32> to vector<16x16xf32>
      %34 = arith.subf %20, %33 : vector<16x16xf32>
      %35 = math.exp %34 : vector<16x16xf32>
      %c0_17 = arith.constant 0 : index
      %c0_18 = arith.constant 0 : index
      %36 = vector.load %arg15[%c0_17, %c0_18] : memref<16x1xf32, #tpu.memory_space<vmem>>, vector<16x1xf32>
      %37 = arith.mulf %32, %36 : vector<16x1xf32>
      %cst_19 = arith.constant dense<0.000000e+00> : vector<16xf32>
      %38 = vector.multi_reduction <add>, %35, %cst_19 [1] : vector<16x16xf32> to vector<16xf32>
      %39 = vector.shape_cast %38 : vector<16xf32> to vector<16x1xf32>
      %40 = arith.addf %37, %39 : vector<16x1xf32>
      %c0_20 = arith.constant 0 : index
      %c0_21 = arith.constant 0 : index
      %41 = vector.load %arg15[%c0_20, %c0_21] : memref<16x1xf32, #tpu.memory_space<vmem>>, vector<16x1xf32>
      tpu.vector_store %arg15[%c0_20, %c0_21], %40 {strides = array<i32>} : memref<16x1xf32, #tpu.memory_space<vmem>>, vector<16x1xf32>,
      %c0_22 = arith.constant 0 : index
      %c0_23 = arith.constant 0 : index
      %42 = vector.load %arg16[%c0_22, %c0_23] : memref<16x128xf32, #tpu.memory_space<vmem>>, vector<16x128xf32>
      %43 = vector.broadcast %32 : vector<16x1xf32> to vector<16x128xf32>
      %44 = arith.mulf %43, %42 : vector<16x128xf32>
      %45 = arith.truncf %35 : vector<16x16xf32> to vector<16x16xbf16>
      %cst_24 = arith.constant dense<0.000000e+00> : vector<16x128xf32>
      %46 = tpu.matmul %45, %18, %cst_24 {dimension_numbers = #tpu.dot_dimension_numbers<[1], [0], [0], [1], [0, 0, 1, 1], [], []>} : vector<16x16xbf16>, vector<16x128xbf16>, vector<16x128xf32> -> vector<16x128xf32>
      %47 = arith.addf %44, %46 : vector<16x128xf32>
      %c0_25 = arith.constant 0 : index
      %c0_26 = arith.constant 0 : index
      %48 = vector.load %arg16[%c0_25, %c0_26] : memref<16x128xf32, #tpu.memory_space<vmem>>, vector<16x128xf32>
      tpu.vector_store %arg16[%c0_25, %c0_26], %47 {strides = array<i32>} : memref<16x128xf32, #tpu.memory_space<vmem>>, vector<16x128xf32>,
      %c0_27 = arith.constant 0 : index
      %c0_28 = arith.constant 0 : index
      %49 = vector.load %arg14[%c0_27, %c0_28] : memref<16x1xf32, #tpu.memory_space<vmem>>, vector<16x1xf32>
      tpu.vector_store %arg14[%c0_27, %c0_28], %30 {strides = array<i32>} : memref<16x1xf32, #tpu.memory_space<vmem>>, vector<16x1xf32>,
    } else {
    }
    %24 = arith.cmpi eq, %3, %1 : i32
    %25 = arith.extui %24 : i1 to i32
    %c0_i32_13 = arith.constant 0 : i32
    %26 = arith.cmpi ne, %25, %c0_i32_13 : i32
    scf.if %26 {
      %27 = tpu.iota {dimensions = array<i32: 0>} : vector<16x16xi32>
      %28 = tpu.iota {dimensions = array<i32: 1>} : vector<16x16xi32>
      %29 = arith.cmpi sle, %28, %27 : vector<16x16xi32>
      %cst_14 = arith.constant -1.000000e+30 : f32
      %30 = vector.broadcast %cst_14 : f32 to vector<16x16xf32>
      %31 = arith.select %29, %20, %30 : vector<16x16xi1>, vector<16x16xf32>
      %c0_15 = arith.constant 0 : index
      %c0_16 = arith.constant 0 : index
      %32 = vector.load %arg14[%c0_15, %c0_16] : memref<16x1xf32, #tpu.memory_space<vmem>>, vector<16x1xf32>
      %cst_17 = arith.constant dense<0xFF800000> : vector<16xf32>
      %33 = vector.multi_reduction <maximumf>, %31, %cst_17 [1] : vector<16x16xf32> to vector<16xf32>
      %34 = vector.shape_cast %33 : vector<16xf32> to vector<16x1xf32>
      %35 = arith.maximumf %32, %34 : vector<16x1xf32>
      %36 = arith.subf %32, %35 : vector<16x1xf32>
      %37 = math.exp %36 : vector<16x1xf32>
      %38 = vector.broadcast %35 : vector<16x1xf32> to vector<16x16xf32>
      %39 = arith.subf %31, %38 : vector<16x16xf32>
      %40 = math.exp %39 : vector<16x16xf32>
      %c0_18 = arith.constant 0 : index
      %c0_19 = arith.constant 0 : index
      %41 = vector.load %arg15[%c0_18, %c0_19] : memref<16x1xf32, #tpu.memory_space<vmem>>, vector<16x1xf32>
      %42 = arith.mulf %37, %41 : vector<16x1xf32>
      %cst_20 = arith.constant dense<0.000000e+00> : vector<16xf32>
      %43 = vector.multi_reduction <add>, %40, %cst_20 [1] : vector<16x16xf32> to vector<16xf32>
      %44 = vector.shape_cast %43 : vector<16xf32> to vector<16x1xf32>
      %45 = arith.addf %42, %44 : vector<16x1xf32>
      %c0_21 = arith.constant 0 : index
      %c0_22 = arith.constant 0 : index
      %46 = vector.load %arg15[%c0_21, %c0_22] : memref<16x1xf32, #tpu.memory_space<vmem>>, vector<16x1xf32>
      tpu.vector_store %arg15[%c0_21, %c0_22], %45 {strides = array<i32>} : memref<16x1xf32, #tpu.memory_space<vmem>>, vector<16x1xf32>,
      %c0_23 = arith.constant 0 : index
      %c0_24 = arith.constant 0 : index
      %47 = vector.load %arg16[%c0_23, %c0_24] : memref<16x128xf32, #tpu.memory_space<vmem>>, vector<16x128xf32>
      %48 = vector.broadcast %37 : vector<16x1xf32> to vector<16x128xf32>
      %49 = arith.mulf %48, %47 : vector<16x128xf32>
      %50 = arith.truncf %40 : vector<16x16xf32> to vector<16x16xbf16>
      %cst_25 = arith.constant dense<0.000000e+00> : vector<16x128xf32>
      %51 = tpu.matmul %50, %18, %cst_25 {dimension_numbers = #tpu.dot_dimension_numbers<[1], [0], [0], [1], [0, 0, 1, 1], [], []>} : vector<16x16xbf16>, vector<16x128xbf16>, vector<16x128xf32> -> vector<16x128xf32>
      %52 = arith.addf %49, %51 : vector<16x128xf32>
      %c0_26 = arith.constant 0 : index
      %c0_27 = arith.constant 0 : index
      %53 = vector.load %arg16[%c0_26, %c0_27] : memref<16x128xf32, #tpu.memory_space<vmem>>, vector<16x128xf32>
      tpu.vector_store %arg16[%c0_26, %c0_27], %52 {strides = array<i32>} : memref<16x128xf32, #tpu.memory_space<vmem>>, vector<16x128xf32>,
      %c0_28 = arith.constant 0 : index
      %c0_29 = arith.constant 0 : index
      %54 = vector.load %arg14[%c0_28, %c0_29] : memref<16x1xf32, #tpu.memory_space<vmem>>, vector<16x1xf32>
      tpu.vector_store %arg14[%c0_28, %c0_29], %35 {strides = array<i32>} : memref<16x1xf32, #tpu.memory_space<vmem>>, vector<16x1xf32>,
      %c0_30 = arith.constant 0 : index
      %c0_31 = arith.constant 0 : index
      %55 = vector.load %arg16[%c0_30, %c0_31] : memref<16x128xf32, #tpu.memory_space<vmem>>, vector<16x128xf32>
      %c0_32 = arith.constant 0 : index
      %c0_33 = arith.constant 0 : index
      %56 = vector.load %arg15[%c0_32, %c0_33] : memref<16x1xf32, #tpu.memory_space<vmem>>, vector<16x1xf32>
      %57 = tpu.reciprocal %56 {approx = true} : vector<16x1xf32> -> vector<16x1xf32>
      %58 = vector.broadcast %57 : vector<16x1xf32> to vector<16x128xf32>
      %59 = arith.mulf %55, %58 : vector<16x128xf32>
      %60 = arith.truncf %59 : vector<16x128xf32> to vector<16x128xbf16>
      %61 = vector.shape_cast %60 : vector<16x128xbf16> to vector<1x16x128xbf16>
      %c0_34 = arith.constant 0 : index
      %c0_35 = arith.constant 0 : index
      %c0_36 = arith.constant 0 : index
      %62 = vector.load %arg12[%c0_34, %c0_35, %c0_36] : memref<1x16x128xbf16, #tpu.memory_space<vmem>>, vector<1x16x128xbf16>
      tpu.vector_store %arg12[%c0_34, %c0_35, %c0_36], %61 {strides = array<i32>} : memref<1x16x128xbf16, #tpu.memory_space<vmem>>, vector<1x16x128xbf16>,
    } else {
    }
    return
  }
  func.func @transform_0(%arg0: i32, %arg1: i32, %arg2: i32, %arg3: memref<1xi32, #tpu.memory_space<smem>>, %arg4: memref<1xi32, #tpu.memory_space<smem>>) -> (i32, i32, i32) {
    %0 = arith.index_cast %arg2 : i32 to index
    %1 = memref.load %arg3[%0] : memref<1xi32, #tpu.memory_space<smem>>
    %c0_i32 = arith.constant 0 : i32
    return %arg0, %1, %arg1 : i32, i32, i32
  }
  func.func @transform_1(%arg0: i32, %arg1: i32, %arg2: i32, %arg3: memref<1xi32, #tpu.memory_space<smem>>, %arg4: memref<1xi32, #tpu.memory_space<smem>>) -> (i32, i32, i32) {
    %0 = arith.index_cast %arg2 : i32 to index
    %1 = memref.load %arg4[%0] : memref<1xi32, #tpu.memory_space<smem>>
    %c2_i32 = arith.constant 2 : i32
    %2 = arith.addi %c2_i32, %arg1 : i32
    %c0_i32 = arith.constant 0 : i32
    return %arg0, %1, %2 : i32, i32, i32
  }
  func.func @transform_2(%arg0: i32, %arg1: i32, %arg2: i32, %arg3: memref<1xi32, #tpu.memory_space<smem>>, %arg4: memref<1xi32, #tpu.memory_space<smem>>) -> (i32, i32, i32) {
    %0 = arith.index_cast %arg2 : i32 to index
    %1 = memref.load %arg4[%0] : memref<1xi32, #tpu.memory_space<smem>>
    %c4_i32 = arith.constant 4 : i32
    %2 = arith.addi %c4_i32, %arg1 : i32
    %c0_i32 = arith.constant 0 : i32
    return %arg0, %1, %2 : i32, i32, i32
  }
  func.func @transform_3(%arg0: i32, %arg1: i32, %arg2: i32, %arg3: memref<1xi32, #tpu.memory_space<smem>>, %arg4: memref<1xi32, #tpu.memory_space<smem>>) -> (i32, i32) {
    %0 = arith.index_cast %arg2 : i32 to index
    %1 = memref.load %arg3[%0] : memref<1xi32, #tpu.memory_space<smem>>
    %c0_i32 = arith.constant 0 : i32
    %c0_i32_0 = arith.constant 0 : i32
    return %1, %c0_i32 : i32, i32
  }
  func.func @transform_4(%arg0: i32, %arg1: i32, %arg2: i32, %arg3: memref<1xi32, #tpu.memory_space<smem>>, %arg4: memref<1xi32, #tpu.memory_space<smem>>) -> (i32, i32) {
    %0 = arith.index_cast %arg2 : i32 to index
    %1 = memref.load %arg3[%0] : memref<1xi32, #tpu.memory_space<smem>>
    %c0_i32 = arith.constant 0 : i32
    %c0_i32_0 = arith.constant 0 : i32
    return %1, %c0_i32 : i32, i32
  }
  func.func @transform_5(%arg0: i32, %arg1: i32, %arg2: i32, %arg3: memref<1xi32, #tpu.memory_space<smem>>, %arg4: memref<1xi32, #tpu.memory_space<smem>>) -> (i32, i32) {
    %0 = arith.index_cast %arg2 : i32 to index
    %1 = memref.load %arg4[%0] : memref<1xi32, #tpu.memory_space<smem>>
    %c0_i32 = arith.constant 0 : i32
    %c0_i32_0 = arith.constant 0 : i32
    return %1, %c0_i32 : i32, i32
  }
  func.func @transform_6(%arg0: i32, %arg1: i32, %arg2: i32, %arg3: memref<1xi32, #tpu.memory_space<smem>>, %arg4: memref<1xi32, #tpu.memory_space<smem>>) -> (i32, i32) {
    %0 = arith.index_cast %arg2 : i32 to index
    %1 = memref.load %arg4[%0] : memref<1xi32, #tpu.memory_space<smem>>
    %c0_i32 = arith.constant 0 : i32
    %c0_i32_0 = arith.constant 0 : i32
    return %1, %c0_i32 : i32, i32
  }
  func.func @transform_7(%arg0: i32, %arg1: i32, %arg2: i32, %arg3: memref<1xi32, #tpu.memory_space<smem>>, %arg4: memref<1xi32, #tpu.memory_space<smem>>) -> (i32, i32, i32) {
    %0 = arith.index_cast %arg2 : i32 to index
    %1 = memref.load %arg3[%0] : memref<1xi32, #tpu.memory_space<smem>>
    %c0_i32 = arith.constant 0 : i32
    return %arg0, %1, %arg1 : i32, i32, i32
  }
}

module attributes {stable_mosaic.version = 11 : i64} {
  func.func @_norm_linear_kernel(%arg0: i32, %arg1: i32, %arg2: memref<32x256xbf16, #tpu.memory_space<vmem>>, %arg3: memref<256x512xbf16, #tpu.memory_space<vmem>>, %arg4: memref<1x512xf32, #tpu.memory_space<vmem>>, %arg5: memref<32x512xbf16, #tpu.memory_space<vmem>>, %arg6: memref<32x256xbf16, #tpu.memory_space<vmem>>) attributes {dimension_semantics = [#tpu.dimension_semantics<parallel>, #tpu.dimension_semantics<arbitrary>], iteration_bounds = array<i64: 1, 2>, scalar_prefetch = 0 : i64, scratch_operands = 1 : i64, tpu.core_type = #tpu.core_type<tc>, window_params = [{transform_indices = @transform_0, window_bounds = array<i64: 32, 256>}, {transform_indices = @transform_1, window_bounds = array<i64: 256, 512>}, {transform_indices = @transform_2, window_bounds = array<i64: 1, 512>}, {transform_indices = @transform_3, window_bounds = array<i64: 32, 512>}]} {
    %c0_i32 = arith.constant 0 : i32
    %0 = arith.cmpi eq, %arg1, %c0_i32 : i32
    %1 = arith.extui %0 : i1 to i32
    %c0_i32_0 = arith.constant 0 : i32
    %2 = arith.cmpi ne, %1, %c0_i32_0 : i32
    scf.if %2 {
      %c0_9 = arith.constant 0 : index
      %c0_10 = arith.constant 0 : index
      %17 = vector.load %arg2[%c0_9, %c0_10] : memref<32x256xbf16, #tpu.memory_space<vmem>>, vector<32x256xbf16>
      %18 = arith.extf %17 : vector<32x256xbf16> to vector<32x256xf32>
      %19 = arith.mulf %18, %18 : vector<32x256xf32>
      %cst_11 = arith.constant dense<0.000000e+00> : vector<32xf32>
      %20 = vector.multi_reduction <add>, %19, %cst_11 [1] : vector<32x256xf32> to vector<32xf32>
      %21 = vector.shape_cast %20 : vector<32xf32> to vector<32x1xf32>
      %cst_12 = arith.constant 2.560000e+02 : f32
      %22 = vector.broadcast %cst_12 : f32 to vector<32x1xf32>
      %23 = arith.divf %21, %22 : vector<32x1xf32>
      %cst_13 = arith.constant 9.99999974E-6 : f32
      %24 = vector.broadcast %cst_13 : f32 to vector<32x1xf32>
      %25 = arith.addf %23, %24 : vector<32x1xf32>
      %26 = math.rsqrt %25 : vector<32x1xf32>
      %27 = vector.broadcast %26 : vector<32x1xf32> to vector<32x256xf32>
      %28 = arith.mulf %18, %27 : vector<32x256xf32>
      %29 = arith.truncf %28 : vector<32x256xf32> to vector<32x256xbf16>
      %c0_14 = arith.constant 0 : index
      %c0_15 = arith.constant 0 : index
      %30 = vector.load %arg6[%c0_14, %c0_15] : memref<32x256xbf16, #tpu.memory_space<vmem>>, vector<32x256xbf16>
      tpu.vector_store %arg6[%c0_14, %c0_15], %29 {strides = array<i32>} : memref<32x256xbf16, #tpu.memory_space<vmem>>, vector<32x256xbf16>,
    } else {
    }
    %c0 = arith.constant 0 : index
    %c0_1 = arith.constant 0 : index
    %3 = vector.load %arg6[%c0, %c0_1] : memref<32x256xbf16, #tpu.memory_space<vmem>>, vector<32x256xbf16>
    %c0_2 = arith.constant 0 : index
    %c0_3 = arith.constant 0 : index
    %4 = vector.load %arg3[%c0_2, %c0_3] : memref<256x512xbf16, #tpu.memory_space<vmem>>, vector<256x512xbf16>
    %cst = arith.constant dense<0.000000e+00> : vector<32x512xf32>
    %5 = tpu.matmul %3, %4, %cst {dimension_numbers = #tpu.dot_dimension_numbers<[1], [0], [0], [1], [0, 0, 1, 1], [], []>} : vector<32x256xbf16>, vector<256x512xbf16>, vector<32x512xf32> -> vector<32x512xf32>
    %c0_4 = arith.constant 0 : index
    %c0_5 = arith.constant 0 : index
    %6 = vector.load %arg4[%c0_4, %c0_5] : memref<1x512xf32, #tpu.memory_space<vmem>>, vector<1x512xf32>
    %7 = vector.broadcast %6 : vector<1x512xf32> to vector<32x512xf32>
    %8 = arith.addf %5, %7 : vector<32x512xf32>
    %9 = arith.negf %8 : vector<32x512xf32>
    %10 = math.exp %9 : vector<32x512xf32>
    %cst_6 = arith.constant 1.000000e+00 : f32
    %11 = vector.broadcast %cst_6 : f32 to vector<32x512xf32>
    %12 = arith.addf %11, %10 : vector<32x512xf32>
    %13 = arith.divf %11, %12 : vector<32x512xf32>
    %14 = arith.mulf %8, %13 : vector<32x512xf32>
    %15 = arith.truncf %14 : vector<32x512xf32> to vector<32x512xbf16>
    %c0_7 = arith.constant 0 : index
    %c0_8 = arith.constant 0 : index
    %16 = vector.load %arg5[%c0_7, %c0_8] : memref<32x512xbf16, #tpu.memory_space<vmem>>, vector<32x512xbf16>
    tpu.vector_store %arg5[%c0_7, %c0_8], %15 {strides = array<i32>} : memref<32x512xbf16, #tpu.memory_space<vmem>>, vector<32x512xbf16>,
    return
  }
  func.func @transform_0(%arg0: i32, %arg1: i32) -> (i32, i32) {
    %c0_i32 = arith.constant 0 : i32
    %c0_i32_0 = arith.constant 0 : i32
    return %arg0, %c0_i32 : i32, i32
  }
  func.func @transform_1(%arg0: i32, %arg1: i32) -> (i32, i32) {
    %c0_i32 = arith.constant 0 : i32
    %c0_i32_0 = arith.constant 0 : i32
    return %c0_i32, %arg1 : i32, i32
  }
  func.func @transform_2(%arg0: i32, %arg1: i32) -> (i32, i32) {
    %c0_i32 = arith.constant 0 : i32
    %c0_i32_0 = arith.constant 0 : i32
    return %c0_i32, %arg1 : i32, i32
  }
  func.func @transform_3(%arg0: i32, %arg1: i32) -> (i32, i32) {
    %c0_i32 = arith.constant 0 : i32
    return %arg0, %arg1 : i32, i32
  }
}

module attributes {stable_mosaic.version = 11 : i64} {
  func.func @_linear_residual_kernel(%arg0: i32, %arg1: i32, %arg2: i32, %arg3: memref<32x512xbf16, #tpu.memory_space<vmem>>, %arg4: memref<512x256xbf16, #tpu.memory_space<vmem>>, %arg5: memref<1x256xf32, #tpu.memory_space<vmem>>, %arg6: memref<32x256xbf16, #tpu.memory_space<vmem>>, %arg7: memref<32x256xbf16, #tpu.memory_space<vmem>>, %arg8: memref<32x256xf32, #tpu.memory_space<vmem>>) attributes {dimension_semantics = [#tpu.dimension_semantics<parallel>, #tpu.dimension_semantics<parallel>, #tpu.dimension_semantics<arbitrary>], iteration_bounds = array<i64: 1, 1, 2>, scalar_prefetch = 0 : i64, scratch_operands = 1 : i64, tpu.core_type = #tpu.core_type<tc>, window_params = [{transform_indices = @transform_0, window_bounds = array<i64: 32, 512>}, {transform_indices = @transform_1, window_bounds = array<i64: 512, 256>}, {transform_indices = @transform_2, window_bounds = array<i64: 1, 256>}, {transform_indices = @transform_3, window_bounds = array<i64: 32, 256>}, {transform_indices = @transform_4, window_bounds = array<i64: 32, 256>}]} {
    %c0_i32 = arith.constant 0 : i32
    %0 = arith.cmpi eq, %arg2, %c0_i32 : i32
    %1 = arith.extui %0 : i1 to i32
    %c0_i32_0 = arith.constant 0 : i32
    %2 = arith.cmpi ne, %1, %c0_i32_0 : i32
    scf.if %2 {
      %cst_9 = arith.constant 0.000000e+00 : f32
      %12 = vector.broadcast %cst_9 : f32 to vector<32x256xf32>
      %c0_10 = arith.constant 0 : index
      %c0_11 = arith.constant 0 : index
      %13 = vector.load %arg8[%c0_10, %c0_11] : memref<32x256xf32, #tpu.memory_space<vmem>>, vector<32x256xf32>
      tpu.vector_store %arg8[%c0_10, %c0_11], %12 {strides = array<i32>} : memref<32x256xf32, #tpu.memory_space<vmem>>, vector<32x256xf32>,
    } else {
    }
    %c0 = arith.constant 0 : index
    %c0_1 = arith.constant 0 : index
    %3 = vector.load %arg8[%c0, %c0_1] : memref<32x256xf32, #tpu.memory_space<vmem>>, vector<32x256xf32>
    %c0_2 = arith.constant 0 : index
    %c0_3 = arith.constant 0 : index
    %4 = vector.load %arg3[%c0_2, %c0_3] : memref<32x512xbf16, #tpu.memory_space<vmem>>, vector<32x512xbf16>
    %c0_4 = arith.constant 0 : index
    %c0_5 = arith.constant 0 : index
    %5 = vector.load %arg4[%c0_4, %c0_5] : memref<512x256xbf16, #tpu.memory_space<vmem>>, vector<512x256xbf16>
    %cst = arith.constant dense<0.000000e+00> : vector<32x256xf32>
    %6 = tpu.matmul %4, %5, %cst {dimension_numbers = #tpu.dot_dimension_numbers<[1], [0], [0], [1], [0, 0, 1, 1], [], []>} : vector<32x512xbf16>, vector<512x256xbf16>, vector<32x256xf32> -> vector<32x256xf32>
    %7 = arith.addf %3, %6 : vector<32x256xf32>
    %c0_6 = arith.constant 0 : index
    %c0_7 = arith.constant 0 : index
    %8 = vector.load %arg8[%c0_6, %c0_7] : memref<32x256xf32, #tpu.memory_space<vmem>>, vector<32x256xf32>
    tpu.vector_store %arg8[%c0_6, %c0_7], %7 {strides = array<i32>} : memref<32x256xf32, #tpu.memory_space<vmem>>, vector<32x256xf32>,
    %c1_i32 = arith.constant 1 : i32
    %9 = arith.cmpi eq, %arg2, %c1_i32 : i32
    %10 = arith.extui %9 : i1 to i32
    %c0_i32_8 = arith.constant 0 : i32
    %11 = arith.cmpi ne, %10, %c0_i32_8 : i32
    scf.if %11 {
      %c0_9 = arith.constant 0 : index
      %c0_10 = arith.constant 0 : index
      %12 = vector.load %arg8[%c0_9, %c0_10] : memref<32x256xf32, #tpu.memory_space<vmem>>, vector<32x256xf32>
      %c0_11 = arith.constant 0 : index
      %c0_12 = arith.constant 0 : index
      %13 = vector.load %arg5[%c0_11, %c0_12] : memref<1x256xf32, #tpu.memory_space<vmem>>, vector<1x256xf32>
      %14 = vector.broadcast %13 : vector<1x256xf32> to vector<32x256xf32>
      %15 = arith.addf %12, %14 : vector<32x256xf32>
      %c0_13 = arith.constant 0 : index
      %c0_14 = arith.constant 0 : index
      %16 = vector.load %arg6[%c0_13, %c0_14] : memref<32x256xbf16, #tpu.memory_space<vmem>>, vector<32x256xbf16>
      %17 = arith.extf %16 : vector<32x256xbf16> to vector<32x256xf32>
      %18 = arith.addf %15, %17 : vector<32x256xf32>
      %19 = arith.truncf %18 : vector<32x256xf32> to vector<32x256xbf16>
      %c0_15 = arith.constant 0 : index
      %c0_16 = arith.constant 0 : index
      %20 = vector.load %arg7[%c0_15, %c0_16] : memref<32x256xbf16, #tpu.memory_space<vmem>>, vector<32x256xbf16>
      tpu.vector_store %arg7[%c0_15, %c0_16], %19 {strides = array<i32>} : memref<32x256xbf16, #tpu.memory_space<vmem>>, vector<32x256xbf16>,
    } else {
    }
    return
  }
  func.func @transform_0(%arg0: i32, %arg1: i32, %arg2: i32) -> (i32, i32) {
    %c0_i32 = arith.constant 0 : i32
    return %arg0, %arg2 : i32, i32
  }
  func.func @transform_1(%arg0: i32, %arg1: i32, %arg2: i32) -> (i32, i32) {
    %c0_i32 = arith.constant 0 : i32
    return %arg2, %arg1 : i32, i32
  }
  func.func @transform_2(%arg0: i32, %arg1: i32, %arg2: i32) -> (i32, i32) {
    %c0_i32 = arith.constant 0 : i32
    %c0_i32_0 = arith.constant 0 : i32
    return %c0_i32, %arg1 : i32, i32
  }
  func.func @transform_3(%arg0: i32, %arg1: i32, %arg2: i32) -> (i32, i32) {
    %c0_i32 = arith.constant 0 : i32
    return %arg0, %arg1 : i32, i32
  }
  func.func @transform_4(%arg0: i32, %arg1: i32, %arg2: i32) -> (i32, i32) {
    %c0_i32 = arith.constant 0 : i32
    return %arg0, %arg1 : i32, i32
  }
}

</mosaic_0001>

<bundles_post_ra>
// kernel: transformer_block.7
= control target key start
LH: loop header
LB: loop body
LE: loop exit
PB: predicated region body
PF: predicated region fallthrough
CT: control target
= control target key end

     0   :  { %v335_v36 = vlaneseq  ;;  %s695_s1 = inlined_call_operand.vmem [shape: bf16[256,256], index: 1, kind: input, shape index: {}]   ;;  %s696_s0 = inlined_call_operand.vmem [shape: bf16[32,256], index: 0, kind: input, shape index: {}]   ;;  %s697_s2 = inlined_call_operand.vmem [shape: f32[1,256], index: 2, kind: input, shape index: {}]   ;;  %s698_s3 = inlined_call_operand.vmem [shape: bf16[32,256], index: 3, kind: input, shape index: {}]   ;;  %s699_s4 = inlined_call_operand.vmem [shape: bf16[32,256], index: 4, kind: output, shape index: {}]  }
   0x1   :  { %v481_v0 = vld [vmem:[%s695_s1 + $0x4] ss:$8 sps:$4 sm:$0xff]   ;;  %v483_v1 = vld [vmem:[%s695_s1] ss:$8 sps:$4 sm:$0xff]   ;;  %v484_v2 = vld [vmem:[%s695_s1 + $0x14] ss:$8 sps:$4 sm:$0xff]  }
   0x2   :  { %253 = vmatprep.subr.bf16.mxu0 %v481_v0  ;;  %449 = vmatprep.subr.bf16.mxu1 %v481_v0  ;;  %v486_v3 = vld [vmem:[%s695_s1 + $0x10] ss:$8 sps:$4 sm:$0xff]   ;;  %v487_v4 = vld [vmem:[%s695_s1 + $0x24] ss:$8 sps:$4 sm:$0xff]   ;;  %v489_v5 = vld [vmem:[%s695_s1 + $0x20] ss:$8 sps:$4 sm:$0xff]  }
   0x3   :  { %254 = vmatpush1.bf16.msra.mxu0 %v483_v1  ;;  %465 = vmatpush1.bf16.msra.mxu1 %v483_v1  ;;  %v490_v6 = vld [vmem:[%s695_s1 + $0x34] ss:$8 sps:$4 sm:$0xff]   ;;  %v492_v7 = vld [vmem:[%s695_s1 + $0x30] ss:$8 sps:$4 sm:$0xff]   ;;  %v493_v8 = vld [vmem:[%s695_s1 + $0x44] ss:$8 sps:$4 sm:$0xff]  }
   0x4   :  { %255 = vmatprep.subr.bf16.mxu0 %v484_v2  ;;  %450 = vmatprep.subr.bf16.mxu1 %v484_v2  ;;  %v495_v9 = vld [vmem:[%s695_s1 + $0x40] ss:$8 sps:$4 sm:$0xff]   ;;  %v496_v10 = vld [vmem:[%s695_s1 + $0x54] ss:$8 sps:$4 sm:$0xff]   ;;  %v498_v11 = vld [vmem:[%s695_s1 + $0x50] ss:$8 sps:$4 sm:$0xff]  }
   0x5   :  { %v499_v12 = vld [vmem:[%s695_s1 + $0x64] ss:$8 sps:$4 sm:$0xff]   ;;  %v501_v14 = vld [vmem:[%s695_s1 + $0x60] ss:$8 sps:$4 sm:$0xff]   ;;  %v534_v15 = vld [vmem:[%s696_s0 + $0x14] ss:$8 sps:$4 sm:$0xff]  }
   0x6   :  { %v531_v13 = vld [vmem:[%s696_s0 + $0x4] ss:$8 sps:$4 sm:$0xff]   ;;  %v502_v16 = vld [vmem:[%s695_s1 + $0x74] ss:$8 sps:$4 sm:$0xff]   ;;  %295 = vmatprep.mubr.bf16.mxu1 %v534_v15  ;;  %v504_v17 = vld [vmem:[%s695_s1 + $0x70] ss:$8 sps:$4 sm:$0xff]  }
   0x7   :  { %256 = vmatpush1.bf16.msra.mxu0 %v486_v3  ;;  %466 = vmatpush1.bf16.msra.mxu1 %v486_v3  ;;  %v505_v18 = vld [vmem:[%s695_s1 + $0x84] ss:$8 sps:$4 sm:$0xff]   ;;  %v507_v19 = vld [vmem:[%s695_s1 + $0x80] ss:$8 sps:$4 sm:$0xff]   ;;  %v508_v20 = vld [vmem:[%s695_s1 + $0x94] ss:$8 sps:$4 sm:$0xff]  }
   0x8   :  { %257 = vmatprep.subr.bf16.mxu0 %v487_v4  ;;  %451 = vmatprep.subr.bf16.mxu1 %v487_v4  ;;  %v510_v21 = vld [vmem:[%s695_s1 + $0x90] ss:$8 sps:$4 sm:$0xff]   ;;  %v511_v22 = vld [vmem:[%s695_s1 + $0xa4] ss:$8 sps:$4 sm:$0xff]   ;;  %v513_v23 = vld [vmem:[%s695_s1 + $0xa0] ss:$8 sps:$4 sm:$0xff]  }
   0x9   :  { %285 = vmatprep.mubr.bf16.mxu0 %v531_v13  ;;  %v514_v24 = vld [vmem:[%s695_s1 + $0xb4] ss:$8 sps:$4 sm:$0xff]   ;;  %v516_v25 = vld [vmem:[%s695_s1 + $0xb0] ss:$8 sps:$4 sm:$0xff]   ;;  %v517_v26 = vld [vmem:[%s695_s1 + $0xc4] ss:$8 sps:$4 sm:$0xff]  }
   0xa   :  { %v519_v27 = vld [vmem:[%s695_s1 + $0xc0] ss:$8 sps:$4 sm:$0xff]   ;;  %v520_v28 = vld [vmem:[%s695_s1 + $0xd4] ss:$8 sps:$4 sm:$0xff]   ;;  %v522_v29 = vld [vmem:[%s695_s1 + $0xd0] ss:$8 sps:$4 sm:$0xff]  }
   0xb   :  { %258 = vmatpush1.bf16.msra.mxu0 %v489_v5  ;;  %467 = vmatpush1.bf16.msra.mxu1 %v489_v5  ;;  %v523_v30 = vld [vmem:[%s695_s1 + $0xe4] ss:$8 sps:$4 sm:$0xff]   ;;  %v525_v31 = vld [vmem:[%s695_s1 + $0xe0] ss:$8 sps:$4 sm:$0xff]   ;;  %v526_v32 = vld [vmem:[%s695_s1 + $0xf4] ss:$8 sps:$4 sm:$0xff]  }
   0xc   :  { %259 = vmatprep.subr.bf16.mxu0 %v490_v6  ;;  %452 = vmatprep.subr.bf16.mxu1 %v490_v6  ;;  %v528_v33 = vld [vmem:[%s695_s1 + $0xf0] ss:$8 sps:$4 sm:$0xff]   ;;  %v529_v34 = vld [vmem:[%s696_s0] ss:$8 sps:$4 sm:$0xff]   ;;  %v336_v37 = vshrl.u32 %v335_v36, 7 }
   0xd   :  { %v532_v35 = vld [vmem:[%s696_s0 + $0x10] ss:$8 sps:$4 sm:$0xff]   ;;  %v333_v39 = vld [vmem:[%s697_s2] sm:$0x3]  ;;  %v354_v45 = vld [vmem:[%s698_s3 + $0x8] sm:$0xff] }
   0xe   :  { %v337_v38 = vsub.s32 0, %v336_v37  ;;  %v341_v40 = vsub.s32 1, %v336_v37  ;;  %v353_v41 = vld [vmem:[%s698_s3] sm:$0xff]  ;;  %v355_v42 = vld [vmem:[%s698_s3 + $0x10] sm:$0xff]  ;;  %v356_v46 = vld [vmem:[%s698_s3 + $0x18] sm:$0xff]  ;;  %v359_v57 = vunpack.c.l.bf16 %v354_v45  ;;  %v360_v63 = vunpack.c.h.bf16 %v354_v45 }
   0xf   :  { %260 = vmatpush1.bf16.msra.mxu0 %v492_v7  ;;  %468 = vmatpush1.bf16.msra.mxu1 %v492_v7  ;;  %v357_v47 = vunpack.c.l.bf16 %v353_v41  ;;  %v361_v48 = vunpack.c.l.bf16 %v355_v42  ;;  %v358_v51 = vunpack.c.h.bf16 %v353_v41  ;;  %v362_v52 = vunpack.c.h.bf16 %v355_v42 }
  0x10   :  { %261 = vmatprep.subr.bf16.mxu0 %v493_v8  ;;  %453 = vmatprep.subr.bf16.mxu1 %v493_v8  ;;  %v338_v43 = vrot.slane %v333_v39, %v337_v38  ;;  %v342_v44 = vrot.slane %v333_v39, %v341_v40  ;;  %v363_v58 = vunpack.c.l.bf16 %v356_v46  ;;  %v364_v0 = vunpack.c.h.bf16 %v356_v46 }
  0x13   :  { %262 = vmatpush1.bf16.msra.mxu0 %v495_v9  ;;  %469 = vmatpush1.bf16.msra.mxu1 %v495_v9 }
  0x14   :  { %263 = vmatprep.subr.bf16.mxu0 %v496_v10  ;;  %454 = vmatprep.subr.bf16.mxu1 %v496_v10 }
  0x17   :  { %264 = vmatpush1.bf16.msra.mxu0 %v498_v11  ;;  %470 = vmatpush1.bf16.msra.mxu1 %v498_v11 }
  0x18   :  { %265 = vmatprep.subr.bf16.mxu0 %v499_v12  ;;  %455 = vmatprep.subr.bf16.mxu1 %v499_v12 }
  0x1b   :  { %266 = vmatpush1.bf16.msra.mxu0 %v501_v14  ;;  %471 = vmatpush1.bf16.msra.mxu1 %v501_v14 }
  0x1c   :  { %267 = vmatprep.subr.bf16.mxu0 %v502_v16  ;;  %456 = vmatprep.subr.bf16.mxu1 %v502_v16 }
  0x1f   :  { %268 = vmatpush1.bf16.msra.mxu0 %v504_v17  ;;  %472 = vmatpush1.bf16.msra.mxu1 %v504_v17 }
  0x20   :  { %269 = vmatprep.subr.bf16.mxu0 %v505_v18  ;;  %457 = vmatprep.subr.bf16.mxu1 %v505_v18 }
  0x23   :  { %270 = vmatpush1.bf16.msra.mxu0 %v507_v19  ;;  %473 = vmatpush1.bf16.msra.mxu1 %v507_v19 }
  0x24   :  { %271 = vmatprep.subr.bf16.mxu0 %v508_v20  ;;  %458 = vmatprep.subr.bf16.mxu1 %v508_v20 }
  0x27   :  { %272 = vmatpush1.bf16.msra.mxu0 %v510_v21  ;;  %474 = vmatpush1.bf16.msra.mxu1 %v510_v21 }
  0x28   :  { %273 = vmatprep.subr.bf16.mxu0 %v511_v22  ;;  %459 = vmatprep.subr.bf16.mxu1 %v511_v22 }
  0x2b   :  { %274 = vmatpush1.bf16.msra.mxu0 %v513_v23  ;;  %475 = vmatpush1.bf16.msra.mxu1 %v513_v23 }
  0x2c   :  { %275 = vmatprep.subr.bf16.mxu0 %v514_v24  ;;  %460 = vmatprep.subr.bf16.mxu1 %v514_v24 }
  0x2f   :  { %276 = vmatpush1.bf16.msra.mxu0 %v516_v25  ;;  %476 = vmatpush1.bf16.msra.mxu1 %v516_v25 }
  0x30   :  { %277 = vmatprep.subr.bf16.mxu0 %v517_v26  ;;  %461 = vmatprep.subr.bf16.mxu1 %v517_v26 }
  0x33   :  { %278 = vmatpush1.bf16.msra.mxu0 %v519_v27  ;;  %477 = vmatpush1.bf16.msra.mxu1 %v519_v27 }
  0x34   :  { %279 = vmatprep.subr.bf16.mxu0 %v520_v28  ;;  %462 = vmatprep.subr.bf16.mxu1 %v520_v28 }
  0x37   :  { %280 = vmatpush1.bf16.msra.mxu0 %v522_v29  ;;  %478 = vmatpush1.bf16.msra.mxu1 %v522_v29 }
  0x38   :  { %281 = vmatprep.subr.bf16.mxu0 %v523_v30  ;;  %463 = vmatprep.subr.bf16.mxu1 %v523_v30 }
  0x3b   :  { %282 = vmatpush1.bf16.msra.mxu0 %v525_v31  ;;  %479 = vmatpush1.bf16.msra.mxu1 %v525_v31 }
  0x3c   :  { %283 = vmatprep.subr.bf16.mxu0 %v526_v32  ;;  %464 = vmatprep.subr.bf16.mxu1 %v526_v32 }
  0x3f   :  { %284 = vmatpush1.bf16.msra.mxu0 %v528_v33  ;;  %480 = vmatpush1.bf16.msra.mxu1 %v528_v33 }
  0x42   :  { %286 = vmatmul.mubr.bf16.vlgmr.msra.gmra.mrb[0].mxu0 %v529_v34  ;;  %296 = vmatmul.mubr.bf16.vlgmr.msra.gmra.mrb[0].mxu1 %v532_v35 }
 0x115   :  { %v287_v49 = vpop.f32.mrb[0].mxu0  ;;  %v297_v50 = vpop.f32.mrb[0].mxu1 }
 0x116   :  { %v345_v53 = vadd.f32 %v338_v43, %v287_v49  ;;  %v349_v54 = vadd.f32 %v338_v43, %v297_v50  ;;  %v289_v55 = vpop.f32.mrb[1].mxu0  ;;  %v299_v56 = vpop.f32.mrb[1].mxu1 }
 0x117   :  { %v346_v59 = vadd.f32 %v342_v44, %v289_v55  ;;  %v350_v60 = vadd.f32 %v342_v44, %v299_v56  ;;  %v291_v61 = vpop.f32.mrb[2].mxu0  ;;  %v301_v62 = vpop.f32.mrb[2].mxu1 }
 0x118   :  { %v365_v1 = vadd.f32 %v357_v47, %v345_v53  ;;  %v369_v2 = vadd.f32 %v361_v48, %v349_v54  ;;  %v347_v3 = vadd.f32 %v338_v43, %v291_v61  ;;  %v351_v4 = vadd.f32 %v338_v43, %v301_v62  ;;  %v293_v5 = vpop.f32.mrb[3].mxu0  ;;  %v303_v6 = vpop.f32.mrb[3].mxu1 }
 0x119   :  { %v366_v7 = vadd.f32 %v358_v51, %v346_v59  ;;  %v370_v8 = vadd.f32 %v362_v52, %v350_v60  ;;  %v348_v9 = vadd.f32 %v342_v44, %v293_v5  ;;  %v352_v10 = vadd.f32 %v342_v44, %v303_v6 }
 0x11a   :  { %v367_v11 = vadd.f32 %v359_v57, %v347_v3  ;;  %v371_v12 = vadd.f32 %v363_v58, %v351_v4 }
 0x11b   :  { %v445_v13 = vpack.c.bf16 %v366_v7, %v365_v1  ;;  %v447_v14 = vpack.c.bf16 %v370_v8, %v369_v2  ;;  %v368_v15 = vadd.f32 %v360_v63, %v348_v9  ;;  %v372_v16 = vadd.f32 %v364_v0, %v352_v10 }
 0x11d   :  { %397 = vst [vmem:[%s699_s4] sm:$0xff] %v445_v13  ;;  %399 = vst [vmem:[%s699_s4 + $0x10] sm:$0xff] %v447_v14  ;;  %v446_v17 = vpack.c.bf16 %v368_v15, %v367_v11  ;;  %v448_v18 = vpack.c.bf16 %v372_v16, %v371_v12 }
 0x11f   :  { %398 = vst [vmem:[%s699_s4 + $0x8] sm:$0xff] %v446_v17  ;;  %400 = vst [vmem:[%s699_s4 + $0x18] sm:$0xff] %v448_v18 }

// kernel: transformer_block.6
= control target key start
LH: loop header
LB: loop body
LE: loop exit
PB: predicated region body
PF: predicated region fallthrough
CT: control target
= control target key end

     0   :  { %s1976_s0 = inlined_call_operand.<no memory space> [shape: s32[1], index: 0, kind: input, shape index: {}, may-alias: {0,1}]   ;;  %s1977_s1 = inlined_call_operand.<no memory space> [shape: s32[1], index: 1, kind: input, shape index: {}, may-alias: {0,1}]   ;;  %s1978_s2 = inlined_call_operand.vmem [shape: bf16[2,16,768], index: 2, kind: input, shape index: {}, may-alias: {2,3,4}]   ;;  %s1979_s3 = inlined_call_operand.vmem [shape: bf16[2,16,768], index: 3, kind: input, shape index: {}, may-alias: {2,3,4}]   ;;  %s1980_s4 = inlined_call_operand.vmem [shape: bf16[2,16,768], index: 4, kind: input, shape index: {}, may-alias: {2,3,4}]   ;;  %s1981_s5 = inlined_call_operand.vmem [shape: f32[16,128], index: 5, kind: input, shape index: {}, may-alias: {5,7}]   ;;  %s1982_s6 = inlined_call_operand.vmem [shape: f32[16,128], index: 6, kind: input, shape index: {}, may-alias: {6,8}]   ;;  %s1983_s7 = inlined_call_operand.vmem [shape: f32[16,128], index: 7, kind: input, shape index: {}, may-alias: {5,7}]   ;;  %s1984_s8 = inlined_call_operand.vmem [shape: f32[16,128], index: 8, kind: input, shape index: {}, may-alias: {6,8}]   ;;  %s1985_s9 = inlined_call_operand.vmem [shape: bf16[2,16,256], index: 9, kind: output, shape index: {}]  }
   0x1   :  { %1993 = sst [smem:[#allocation26_spill]] %s1978_s2 }
   0x2   :  { %1994 = sst [smem:[#allocation27_spill]] %s1979_s3 }
   0x3   :  { %1995 = sst [smem:[#allocation28_spill]] %s1980_s4 }
   0x4   :  { %1996 = sst [smem:[#allocation29_spill]] %s1981_s5 }
   0x5   :  { %1997 = sst [smem:[#allocation30_spill]] %s1982_s6 }
   0x6   :  { %1998 = sst [smem:[#allocation31_spill]] %s1983_s7 }
   0x7   :  { %1999 = sst [smem:[#allocation32_spill]] %s1984_s8 }
   0x8   :  { %2000 = sst [smem:[#allocation33_spill]] %s1985_s9 }
   0x9   :  { %14 = sst [smem:[#allocation7]] %s1976_s0 }
   0xa   :  { %15 = sst [smem:[#allocation8]] %s1977_s1 }
   0xb   :  { %s1677_s13 = smov 0   ;;  %s1679_s14 = smov 0  }
   0xc   :  { %s1681_s15 = smov 0   ;;  %s1683_s16 = smov 0  }
   0xd   :  { %s1685_s17 = smov 0   ;;  %s1687_s18 = smov 0  }
   0xe   :  { %s1689_s19 = smov 0   ;;  %s1691_s20 = smov 0  }
   0xf   :  { %s1693_s0 = smov 0   ;;  %s1695_s21 = smov 0  }
  0x10   :  { %s1697_s1 = smov 0   ;;  %s1699_s22 = smov 0  }
  0x11   :  { %s1701_s23 = smov 0  }
  0x12 LB: > { %2001 = sst [smem:[#allocation13_spill]] %s1571_s16  ;;  %s36_s25 = sadd.s32 1, %s1599_s1  ;;  %s1607_s23 = sphi %s1701_s23, %s21_s23   ;;  %s1603_s22 = sphi %s1699_s22, %s2040_s22   ;;  %s1599_s1 = sphi %s1697_s1, %s2039_s1   ;;  %s1595_s21 = sphi %s1695_s21, %s2038_s21   ;;  %s1591_s0 = sphi %s1693_s0, %s2037_s0   ;;  %s1587_s20 = sphi %s1691_s20, %s2036_s20   ;;  %s1583_s19 = sphi %s1689_s19, %s2035_s19   ;;  %s1579_s18 = sphi %s1687_s18, %s2034_s18   ;;  %s1575_s17 = sphi %s1685_s17, %s2033_s17   ;;  %s1571_s16 = sphi %s1683_s16, %s2032_s16   ;;  %s1567_s15 = sphi %s1681_s15, %s2031_s15   ;;  %s1563_s14 = sphi %s1679_s14, %s2042_s14   ;;  %s1559_s13 = sphi %s1677_s13, %s2041_s13  }
  0x13   : > { %2002 = sst [smem:[#allocation14_spill]] %s1579_s18  ;;  %p38_p0 = scmp.ge.s32.totalorder %s36_s25, 2 }
  0x14   : > { %2003 = sst [smem:[#allocation15_spill]] %s1587_s20  ;;  %s40_s26 = sadd.s32 1, %s1603_s22 }
  0x15   : > { %2004 = sst [smem:[#allocation16_spill]] %s1591_s0  ;;  %s53_s27 = sadd.s32 1, %s1587_s20 }
  0x16   : > { %2005 = sst [smem:[#allocation17_spill]] %s1595_s21  ;;  %s2044_s25 = smov (%p38_p0, %s36_s25), 0 }
  0x17   : > { %2006 = sst [smem:[#allocation18_spill]] %s1599_s1  ;;  %s2046_s26 = smov (!%p38_p0, %s40_s26), %s1603_s22 }
  0x18   : > { %2007 = sst [smem:[#allocation19_spill]] %s1603_s22  ;;  %s49_s28 = ssub.s32 %s1599_s1, %s2044_s25 }
  0x19   : > { %2008 = sst [smem:[#allocation20_spill]] %s2044_s25  ;;  %p60_p1 = scmp.ne.s32.totalorder %s1587_s20, %s1583_s19 }
  0x1a   : > { %p42_p2 = scmp.ge.s32.totalorder %s2046_s26, 2  ;;  %p61_p3 = scmp.eq.s32.totalorder %s1607_s23, 0 }
  0x1b   : > { %s77_s29 = sadd.s32 2, %s1599_s1  ;;  %s79_s11 = sadd.s32 2, %s2044_s25 }
  0x1c   : > { %s2048_s26 = smov (%p42_p2, %s2046_s26), 0  ;;  %p1759_p4 = por %p61_p3, %p60_p1 }
  0x1d   : > { %2009 = sst [smem:[#allocation21_spill]] %s2048_s26  ;;  %s46_s10 = ssub.s32 %s1603_s22, %s2048_s26 }
  0x1e   : > { %s83_s12 = ssub.s32 %s77_s29, %s79_s11  ;;  %s50_s24 = sor.u32 %s49_s28, %s46_s10 }
  0x1f   : > { %s87_s9 = sadd.s32 1, %s1579_s18  ;;  %p51_p5 = scmp.eq.s32.totalorder %s50_s24, 0 }
  0x20   : > { %p94_p6 = scmp.ne.s32.totalorder %s1579_s18, %s1575_s17  ;;  %s84_s21 = sor.u32 %s83_s12, %s46_s10 }
  0x21   : > { %s1771_s0 = scalar_select %p51_p5, %s1587_s20, %s53_s27  }
  0x22   : > { %p1775_p7 = por %p94_p6, %p61_p3  ;;  %p85_p8 = scmp.eq.s32.totalorder %s84_s21, 0 }
  0x23   : > { %2011 = sst [smem:[#allocation22_spill]] %s1771_s0  ;;  %s111_s28 = sadd.s32 4, %s1599_s1 }
  0x24   : > { %s113_s29 = sadd.s32 4, %s2044_s25  ;;  %s121_s11 = sadd.s32 1, %s1571_s16 }
  0x25   : > { %s1783_s8 = scalar_select %p85_p8, %s1579_s18, %s87_s9  }
  0x26   : > { %s117_s7 = ssub.s32 %s111_s28, %s113_s29  ;;  %p128_p9 = scmp.ne.s32.totalorder %s1571_s16, %s1567_s15 }
  0x27   : > { %2013 = sst [smem:[#allocation23_spill]] %s1783_s8  ;;  %s118_s6 = sor.u32 %s117_s7, %s46_s10 }
  0x28   : > { %p119_p10 = scmp.eq.s32.totalorder %s118_s6, 0  ;;  %p1789_p11 = por %p128_p9, %p61_p3 }
  0x29   : > { %s265_s12 = sadd.s32 1, %s1563_s14  ;;  %p275_p12 = scmp.ne.s32.totalorder %s1563_s14, %s1559_s13 }
  0x2a   : > { %s1795_s0 = scalar_select %p119_p10, %s1571_s16, %s121_s11  }
  0x2b   : > { %s1799_s5 = scalar_select %p51_p5, %s1563_s14, %s265_s12  }
  0x2c   : > { %2015 = sst [smem:[#allocation24_spill]] %s1795_s0  ;;  %s2017_s21 = sadd.s32 4294967295, %s1607_s23  }
  0x2d   : > { %2016 = sst [smem:[#allocation25_spill]] %s1799_s5  ;;  %p276_p13 = scmp.eq.s32.totalorder %s2017_s21, 3 }
  0x2e   : > { %p1271_p1 = scmp.ge.s32.totalorder %s1607_s23, 4 }
  0x2f   : > { %p1805_p0 = por %p276_p13, %p275_p12 }
  0x30   : > { %342 = sbr.rel (%p1271_p1) target bundleno = 97 (0x61), region = 32 }
  0x37   : > { %345 = sbr.rel (!%p1759_p4) target bundleno = 69 (0x45), region = 36  ;;  %s350_s6 = sld [smem:[#allocation7]] (%p1759_p4) }
  0x38   : > { %s347_s7 = sand.u32 (%p1759_p4), 1, %s1587_s20   ;;  %s1354_s24 = smul.u32 (%p1759_p4), 12, %s1603_s22 }
  0x39   : > { %s1272_s28 = sshll.u32 (%p1759_p4), %s347_s7, 3  ;;  %s2019_s2 = sld [smem:[#allocation26_spill]] (%p1759_p4) }
  0x3a   : > { %s349_s0 = scalar_lea.vmem (%p1759_p4), [#allocation9], %s1272_s28 }
  0x3d   : > { %s1353_s10 = smul.u32 (%p1759_p4), 12, %s350_s6 }
  0x3f   : > { %s353_s29 = sadd.s32 %s1599_s1, %s1353_s10 }
  0x40   : > { %s355_s11 = sadd.s32 %s1354_s24, %s353_s29 }
  0x41   : > { %s1275_s12 = sshll.u32 %s355_s11, 2 }
  0x42   : > { %s357_s8 = scalar_lea.vmem %s2019_s2, %s1275_s12 }
  0x43   : > { %v373_v0 = vld [vmem:[%s357_s8] sm:$0xf]  ;;  %v375_v1 = vld [vmem:[%s357_s8 + $0x18] sm:$0xf] }
  0x44   : > { %374 = vst [vmem:[%s349_s0] sm:$0xf] %v373_v0  ;;  %376 = vst [vmem:[%s349_s0 + $0x4] sm:$0xf] %v375_v1 }
  0x45 PF: > { %403 = sbr.rel (!%p1775_p7) target bundleno = 83 (0x53), region = 77  ;;  %s408_s30 = sld [smem:[#allocation8]] (%p1775_p7) }
  0x46   : > { %s405_s6 = sand.u32 (%p1775_p7), 1, %s1579_s18   ;;  %s1115_s7 = smul.u32 (%p1775_p7), 12, %s1603_s22 }
  0x47   : > { %s1276_s10 = sshll.u32 (%p1775_p7), %s405_s6, 3  ;;  %s2020_s3 = sld [smem:[#allocation27_spill]] (%p1775_p7) }
  0x48   : > { %s407_s0 = scalar_lea.vmem (%p1775_p7), [#allocation10], %s1276_s10 }
  0x4b   : > { %s1113_s24 = smul.u32 (%p1775_p7), 12, %s408_s30 }
  0x4d   : > { %s1114_s29 = sadd.s32 %s1599_s1, %s1113_s24 }
  0x4e   : > { %s1116_s25 = sadd.s32 %s1115_s7, %s1114_s29 }
  0x4f   : > { %s1277_s11 = sshll.u32 %s1116_s25, 2 }
  0x50   : > { %s1118_s28 = scalar_lea.vmem %s2020_s3, %s1277_s11 }
  0x51   : > { %v1278_v2 = vld [vmem:[%s1118_s28 + $0x8] sm:$0xf]  ;;  %v1279_v3 = vld [vmem:[%s1118_s28 + $0x20] sm:$0xf] }
  0x52   : > { %433 = vst [vmem:[%s407_s0] sm:$0xf] %v1278_v2  ;;  %435 = vst [vmem:[%s407_s0 + $0x4] sm:$0xf] %v1279_v3 }
  0x53 PF: > { %462 = sbr.rel (!%p1789_p11) target bundleno = 97 (0x61), region = 118  ;;  %s467_s26 = sld [smem:[#allocation8]] (%p1789_p11) }
  0x54   : > { %s464_s21 = sand.u32 (%p1789_p11), 1, %s1571_s16   ;;  %s1124_s30 = smul.u32 (%p1789_p11), 12, %s1603_s22 }
  0x55   : > { %s1280_s7 = sshll.u32 (%p1789_p11), %s464_s21, 3  ;;  %s2021_s4 = sld [smem:[#allocation28_spill]] (%p1789_p11) }
  0x56   : > { %s466_s8 = scalar_lea.vmem (%p1789_p11), [#allocation11], %s1280_s7 }
  0x59   : > { %s1122_s6 = smul.u32 (%p1789_p11), 12, %s467_s26 }
  0x5b   : > { %s1123_s24 = sadd.s32 %s1599_s1, %s1122_s6 }
  0x5c   : > { %s1125_s29 = sadd.s32 %s1124_s30, %s1123_s24 }
  0x5d   : > { %s1281_s25 = sshll.u32 %s1125_s29, 2 }
  0x5e   : > { %s1127_s10 = scalar_lea.vmem %s2021_s4, %s1281_s25 }
  0x5f   : > { %v1282_v4 = vld [vmem:[%s1127_s10 + $0x10] sm:$0xf]  ;;  %v1283_v5 = vld [vmem:[%s1127_s10 + $0x28] sm:$0xf] }
  0x60   : > { %492 = vst [vmem:[%s466_s8] sm:$0xf] %v1282_v4  ;;  %494 = vst [vmem:[%s466_s8 + $0x4] sm:$0xf] %v1283_v5 }
  0x61 PF: > { %p1284_p2 = scmp.ge.s32.totalorder %s1607_s23, 1  ;;  %p520_p3 = scmp.lt.s32.totalorder %s1607_s23, 5 }
  0x63   : > { %p521_p4 = pnand %p1284_p2, %p520_p3 }
  0x64   : > { %s527_s27 = sand.u32 (!%p521_p4), 1, %s1583_s19   ;;  %s534_s28 = sand.u32 (!%p521_p4), 1, %s1575_s17  }
  0x65   : > { %524 = sbr.rel (%p521_p4) target bundleno = 1712 (0x6b0), region = 159  ;;  %s1285_s0 = sshll.u32 (!%p521_p4), %s527_s27, 3 }
  0x66   : > { %s1838_s26 = sshll.u32 (!%p521_p4), %s534_s28, 3  ;;  %s541_s21 = sand.u32 (!%p521_p4), 1, %s1567_s15  }
  0x67   : > { %s600_s30 = sand.u32 (!%p521_p4), 1, %s1559_s13   ;;  %s1842_s6 = sshll.u32 (!%p521_p4), %s541_s21, 3 }
  0x68   : > { %s1288_s7 = sshll.u32 (!%p521_p4), %s600_s30, 3  ;;  %s1844_s24 = sld [smem:[#allocation7]] (!%p521_p4) }
  0x69   : > { %s1846_s29 = sld [smem:[#allocation8]] (!%p521_p4)  ;;  %s2022_s19 = sld [smem:[#allocation29_spill]] (!%p521_p4) }
  0x6a   : > { %s2023_s27 = sld [smem:[#allocation30_spill]] (!%p521_p4)  ;;  %s2024_s3 = sld [smem:[#allocation31_spill]] (!%p521_p4) }
  0x6b   : > { %s2025_s20 = sld [smem:[#allocation32_spill]] (!%p521_p4)  ;;  %s536_s16 = scalar_lea.vmem (!%p521_p4), [#allocation10], %s1838_s26 }
  0x6c   : > { %s543_s5 = scalar_lea.vmem [#allocation11], %s1842_s6  ;;  %s1868_s15 = scalar_lea.vmem [#allocation12], %s1288_s7 }
  0x6e   : > { %s1289_s25 = sshll.u32 %s1844_s24, 1 }
  0x6f   : > { %s1293_s11 = sshll.u32 %s1846_s29, 1  ;;  %p613_p5 = scmp.lt.s32.totalorder %s1289_s25, 1 }
  0x70   : > { %p629_p6 = scmp.lt.s32.totalorder %s1293_s11, 1  ;;  %p1297_p7 = scmp.ne.s32.totalorder %s1846_s29, 0 }
  0x71   : > { %s2050_s25 = smov (!%p613_p5, %s1289_s25), 1  ;;  %vm652_vm0 = vcmask (!%p1297_p7), 7168   ;;  %v1609_v9 = vmov (!%p1297_p7), 0.0   ;;  %v1610_v10 = vmov (!%p1297_p7), -1e+30   ;;  %s1611_s2 = smov (!%p1297_p7), 64  }
  0x72   : > { %s2052_s11 = smov (!%p629_p6, %s1293_s11), 1  ;;  %s1290_s17 = sshll.u32 %s2050_s25, 3  ;;  %655 = vst.msk [vmem:[#allocation4] sm:$0xff] (!%p1297_p7), %vm652_vm0, %v1609_v9  ;;  %656 = vst.msk [vmem:[#allocation4 + $0x8] sm:$0xff] (!%p1297_p7), %vm652_vm0, %v1609_v9 }
  0x73   : > { %s616_s12 = scalar_lea.vmem %s2022_s19, %s1290_s17  ;;  %s624_s28 = scalar_lea.vmem %s2023_s27, %s1290_s17  ;;  %657 = vst [vmem:[#allocation5] sm:$0xff] (!%p1297_p7), %v1609_v9  ;;  %658 = vst [vmem:[#allocation5 + $0x8] sm:$0xff] (!%p1297_p7), %v1609_v9 }
  0x74   : > { %s1294_s21 = sshll.u32 %s2052_s11, 3  ;;  %s529_s25 = scalar_lea.vmem [#allocation9], %s1285_s0  ;;  %653 = vst.msk [vmem:[#allocation3] sm:$0xff] (!%p1297_p7), %vm652_vm0, %v1610_v10  ;;  %654 = vst.msk [vmem:[#allocation3 + $0x8] sm:$0xff] (!%p1297_p7), %vm652_vm0, %v1610_v10  ;;  %v663_v12 = vld [vmem:[%s624_s28] sm:$0xff] (!%p1297_p7)  ;;  %v664_v13 = vld [vmem:[%s624_s28 + $0x8] sm:$0xff] (!%p1297_p7) }
  0x75   : > { %s1859_s4 = scalar_lea.vmem %s2024_s3, %s1294_s21  ;;  %s1864_s18 = scalar_lea.vmem %s2025_s20, %s1294_s21  ;;  %v1317_v6 = vld [vmem:[%s529_s25] sm:$0xff] (!%p1297_p7)   ;;  %v672_v15 = vld [vmem:[%s616_s12 + $0x8] sm:$0xff] (!%p1297_p7) }
  0x76   : > { %651 = sbr.rel (%p1297_p7) target bundleno = 246 (0xf6), region = 175  ;;  %v1318_v7 = vunpack.c.l.bf16 (!%p1297_p7), %v1317_v6  ;;  %v1319_v8 = vunpack.c.h.bf16 (!%p1297_p7), %v1317_v6  ;;  %v671_v14 = vld [vmem:[%s616_s12] sm:$0xff] (!%p1297_p7) }
  0x78   : > { %v1471_v11 = vpack.i.bf16 (!%p1297_p7), %v1319_v8, %v1318_v7  ;;  %v666_v17 = vmul.f32 (!%p1297_p7), %v1319_v8, %v664_v13  ;;  %v665_v18 = vmul.f32 (!%p1297_p7), %v1318_v7, %v663_v12 }
  0x7a   : > { %1472 = vrot.lane.b32.xlu0 (!%p1297_p7), %v1471_v11, %s1611_s2 }
  0xec   : > { %v1473_v16 = vpop.permute.xlu0 %1472 }
  0xed   : > { %v1475_v19 = vunpack.i.h.bf16 %v1473_v16  ;;  %v1474_v20 = vunpack.i.l.bf16 %v1473_v16 }
  0xef   : > { %v674_v21 = vmul.f32 %v1475_v19, %v672_v15  ;;  %v673_v22 = vmul.f32 %v1474_v20, %v671_v14 }
  0xf1   : > { %v676_v23 = vadd.f32 %v674_v21, %v666_v17  ;;  %v675_v24 = vadd.f32 %v673_v22, %v665_v18 }
  0xf3   : > { %v677_v25 = vpack.c.bf16 %v676_v23, %v675_v24 }
  0xf5   : > { %678 = vst [vmem:[#allocation2] sm:$0xff] %v677_v25 }
  0xf6 PF: > { %v1321_v26 = vld [vmem:[%s536_s16] sm:$0xff]   ;;  %v1875_v29 = vld [vmem:[%s543_s5] sm:$0xf]  ;;  %v1879_v30 = vld [vmem:[%s543_s5 + $0x4] sm:$0xf]  ;;  %v1612_v31 = vmov 0.0   ;;  %p1298_p8 = scmp.ge.s32.totalorder %s1846_s29, %s1844_s24 }
  0xf7   : > { %v1322_v27 = vunpack.c.l.bf16 %v1321_v26  ;;  %v1323_v28 = vunpack.c.h.bf16 %v1321_v26  ;;  %1335 = vmatprep.subr.bf16.mxu0 %v1612_v31  ;;  %vm1613_vm1 = vmmov 0   ;;  %s1614_s3 = smov 64   ;;  %v683_v33 = vld [vmem:[%s1864_s18] sm:$0xff]  ;;  %v684_v34 = vld [vmem:[%s1864_s18 + $0x8] sm:$0xff]  ;;  %vm748_vm2 = vcmask (!%p1298_p8), 130048   ;;  %v747_v58 = vld [vmem:[#allocation3 + $0x8] sm:$0xff] (!%p1298_p8) }
  0xf8   : > { %1337 = vmatprep.mubr.msk.bf16.mxu0 %vm1613_vm1, %v1612_v31  ;;  %v691_v35 = vld [vmem:[%s1859_s4] sm:$0xff]  ;;  %v692_v36 = vld [vmem:[%s1859_s4 + $0x8] sm:$0xff]  ;;  %v1615_v54 = vmov (!%p1298_p8), 0   ;;  %vm791_vm3 = vcmask (!%p1298_p8), 7168   ;;  %v1299_v63 = vcombine.low (!%p1298_p8), %v1875_v29, %v1879_v30  ;;  %v1616_v0 = vmov (!%p1298_p8), 0.0   ;;  %v779_v16 = vld [vmem:[#allocation4] sm:$0xff] (!%p1298_p8) }
  0xf9   : > { %v1476_v32 = vpack.i.bf16 %v1323_v28, %v1322_v27  ;;  %v685_v40 = vmul.f32 %v1322_v27, %v683_v33  ;;  %v686_v41 = vmul.f32 %v1323_v28, %v684_v34  ;;  %1481 = vset.pattern.permute.xlu1 (!%p1298_p8), %v1615_v54  ;;  %1482 = vset.pattern.permute.xlu0 (!%p1298_p8), %v1615_v54  ;;  %v746_v55 = vld [vmem:[#allocation3] sm:$0xff] (!%p1298_p8)  ;;  %vm1617_vm4 = vmmov (!%p1298_p8), 0   ;;  %v780_v19 = vld [vmem:[#allocation4 + $0x8] sm:$0xff] (!%p1298_p8)  ;;  %v795_v26 = vld [vmem:[#allocation5 + $0x8] sm:$0xff] (!%p1298_p8) }
  0xfa   : > { %v794_v24 = vld [vmem:[#allocation5] sm:$0xff] (!%p1298_p8) }
  0xfb   : > { %1477 = vrot.lane.b32.xlu0 %v1476_v32, %s1614_s3 }
  0xfc   : > { %v700_v47 = vld [vmem:[#allocation2] sm:$0xff] }
 0x16d   : > { %v1478_v37 = vpop.permute.xlu0 %1477 }
 0x16e   : > { %v1480_v38 = vunpack.i.h.bf16 %v1478_v37  ;;  %v1479_v39 = vunpack.i.l.bf16 %v1478_v37 }
 0x170   : > { %v694_v42 = vmul.f32 %v1480_v38, %v692_v36  ;;  %v693_v43 = vmul.f32 %v1479_v39, %v691_v35 }
 0x172   : > { %v695_v44 = vadd.f32 %v693_v43, %v685_v40  ;;  %v696_v45 = vadd.f32 %v694_v42, %v686_v41 }
 0x174   : > { %v697_v46 = vpack.c.bf16 %v696_v45, %v695_v44 }
 0x176   : > { %1336 = vmatpush3.bf16.xpose.msra.mxu0 %v697_v46 }
 0x177   : > { %1341 = vmatprep.subr.bf16.mxu0 (!%p1298_p8), %v1616_v0 }
 0x17d   : > { %1338 = vmatmul.mubr.bf16.vlgmr.msra.gmra.mrb[0].mxu0 %v700_v47 }
 0x17e   : > { %1343 = vmatprep.mubr.msk.bf16.mxu0 (!%p1298_p8), %vm1617_vm4, %v1616_v0  ;;  %1342 = vmatpush3.bf16.msra.mxu0 (!%p1298_p8), %v1299_v63 }
 0x24d   : > { %745 = sbr.rel (%p1298_p8) target bundleno = 1104 (0x450), region = 179 }
 0x250   : > { %v1885_v48 = vpop.f32.mrb[0].mxu0 }
 0x251   : > { %v1339_v49 = vpop.f32.mrb[1].mxu0  ;;  %v749_v52 = vsel (!%p1298_p8), %vm748_vm2, %v1885_v48, -inf }
 0x252   : > { %v1887_v50 = vpop.f32.mrb[2].mxu0  ;;  %750 = vmax.xlane.f32.xlu0 (!%p1298_p8), %v749_v52 }
 0x253   : > { %v1340_v51 = vpop.f32.mrb[3].mxu0  ;;  %v752_v53 = vsel (!%p1298_p8), %vm748_vm2, %v1887_v50, -inf }
 0x256   : > { %753 = vmax.xlane.f32.xlu0 %v752_v53 }
 0x2df   : > { %v751_v56 = vpop.xlane.xlu0 %750 }
 0x2e0   : > { %v755_v57 = vmax.f32 %v746_v55, %v751_v56 }
 0x2e2   : > { %v757_v59 = vsub.f32 %v746_v55, %v755_v57  ;;  %863 = vst.msk [vmem:[#allocation3] sm:$0xff] %vm791_vm3, %v755_v57  ;;  %765 = vperm.xlu1 %1481, %v755_v57  }
 0x2e3   : > { %v754_v60 = vpop.xlane.xlu0 %753 }
 0x2e4   : > { %v756_v61 = vmax.f32 %v747_v58, %v754_v60  ;;  %v759_v13 = vmul.f32 1.442695, %v757_v59 }
 0x2e6   : > { %v758_v62 = vsub.f32 %v747_v58, %v756_v61  ;;  %864 = vst.msk [vmem:[#allocation3 + $0x8] sm:$0xff] %vm791_vm3, %v756_v61  ;;  %770 = vperm.xlu1 %1481, %v756_v61  }
 0x2e8   : > { %v761_v12 = vmul.f32 1.442695, %v758_v62 }
 0x361   : > { %v766_v1 = vpop.permute.xlu1 %765 }
 0x362   : > { %v773_v2 = vsub.f32 %v1885_v48, %v766_v1 }
 0x364   : > { %v775_v3 = vmul.f32 1.442695, %v773_v2 }
 0x365   : > { %v771_v4 = vpop.permute.xlu1 %770 }
 0x366   : > { %1483 = vpow2.f32 %v775_v3  ;;  %v774_v5 = vsub.f32 %v1887_v50, %v771_v4 }
 0x368   : > { %v777_v6 = vmul.f32 1.442695, %v774_v5 }
 0x36a   : > { %1485 = vpow2.f32 %v777_v6 }
 0x36b   : > { %1487 = vpow2.f32 %v761_v12 }
 0x36c   : > { %1489 = vpow2.f32 %v759_v13 }
 0x370   : > { %v1484_v7 = vpop.eup %1483 }
 0x371   : > { %v783_v8 = vsel %vm748_vm2, %v1484_v7, 0.0 }
 0x372   : > { %784 = vadd.xlane.f32.xlu0 %v783_v8 }
 0x374   : > { %v1486_v9 = vpop.eup %1485 }
 0x375   : > { %v786_v10 = vsel %vm748_vm2, %v1486_v9, 0.0  ;;  %v808_v11 = vpack.c.bf16 %v1486_v9, %v1484_v7  ;;  %v1488_v14 = vpop.eup %1487 }
 0x376   : > { %787 = vadd.xlane.f32.xlu1 %v786_v10  ;;  %v1490_v15 = vpop.eup %1489  ;;  %v782_v21 = vmul.f32 %v1488_v14, %v780_v19 }
 0x377   : > { %1344 = vmatmul.mubr.msk.bf16.vlgmr.msra.gmra.mrb[0].mxu0 %vm748_vm2, %v808_v11  ;;  %v781_v17 = vmul.f32 %v1490_v15, %v779_v16 }
 0x387   : > { %803 = vperm.xlu1 %1481, %v1488_v14  }
 0x388   : > { %798 = vperm.xlu0 %1482, %v1490_v15  }
 0x3ff   : > { %v785_v18 = vpop.xlane.xlu0 %784 }
 0x400   : > { %v789_v20 = vadd.f32 %v785_v18, %v781_v17 }
 0x402   : > { %792 = vst.msk [vmem:[#allocation4] sm:$0xff] %vm791_vm3, %v789_v20 }
 0x403   : > { %v788_v22 = vpop.xlane.xlu1 %787 }
 0x404   : > { %v790_v23 = vadd.f32 %v788_v22, %v782_v21 }
 0x406   : > { %793 = vst.msk [vmem:[#allocation4 + $0x8] sm:$0xff] %vm791_vm3, %v790_v23 }
 0x407   : > { %v799_v25 = vpop.permute.xlu0 %798  ;;  %v804_v27 = vpop.permute.xlu1 %803 }
 0x408   : > { %v806_v28 = vmul.f32 %v799_v25, %v794_v24  ;;  %v807_v32 = vmul.f32 %v804_v27, %v795_v26 }
 0x44a   : > { %v852_v31 = vpop.f32.mrb[0].mxu0 }
 0x44b   : > { %v859_v33 = vadd.f32 %v852_v31, %v806_v28  ;;  %v1345_v34 = vpop.f32.mrb[1].mxu0 }
 0x44c   : > { %v855_v35 = vpop.f32.mrb[2].mxu0 }
 0x44d   : > { %861 = vst [vmem:[#allocation5] sm:$0xff] %v859_v33  ;;  %v860_v36 = vadd.f32 %v855_v35, %v807_v32  ;;  %v1346_v37 = vpop.f32.mrb[3].mxu0 }
 0x44f   : > { %862 = vst [vmem:[#allocation5 + $0x8] sm:$0xff] %v860_v36 }
 0x450 PF: > { %p1301_p9 = scmp.ne.s32.totalorder %s1846_s29, %s1844_s24 }
 0x451   : > { %v869_v38 = vlaneseq (!%p1301_p9)  ;;  %vm880_vm5 = vcmask (!%p1301_p9), 130048   ;;  %v1618_v46 = vmov (!%p1301_p9), 0   ;;  %v878_v47 = vld [vmem:[#allocation3] sm:$0xff] (!%p1301_p9)  ;;  %vm923_vm8 = vcmask (!%p1301_p9), 7168   ;;  %v879_v52 = vld [vmem:[#allocation3 + $0x8] sm:$0xff] (!%p1301_p9)  ;;  %v911_v6 = vld [vmem:[#allocation4] sm:$0xff] (!%p1301_p9) }
 0x452   : > { %868 = sbr.rel (%p1301_p9) target bundleno = 1700 (0x6a4), region = 183  ;;  %1491 = vset.pattern.permute.xlu1 (!%p1301_p9), %v1618_v46  ;;  %1492 = vset.pattern.permute.xlu0 (!%p1301_p9), %v1618_v46  ;;  %v1619_v56 = vmov (!%p1301_p9), 0.0   ;;  %vm1620_vm9 = vmmov (!%p1301_p9), 0   ;;  %v912_v9 = vld [vmem:[#allocation4 + $0x8] sm:$0xff] (!%p1301_p9) }
 0x453   : > { %v870_v39 = vshrl.u32 (!%p1301_p9), %v869_v38, 7  ;;  %v873_v40 = vand.u32 (!%p1301_p9), 127, %v869_v38  ;;  %1347 = vmatprep.subr.bf16.mxu0 (!%p1301_p9), %v1619_v56  ;;  %1349 = vmatprep.mubr.msk.bf16.mxu0 (!%p1301_p9), %vm1620_vm9, %v1619_v56 }
 0x454   : > { %v926_v18 = vld [vmem:[#allocation5] sm:$0xff] (!%p1301_p9) }
 0x455   : > { %vm874_vm6 = vcmp.le.s32.totalorder (!%p1301_p9), %v873_v40, %v870_v39  ;;  %v871_v41 = vadd.s32 (!%p1301_p9), 8, %v870_v39 }
 0x456   : > { %v876_v42 = vsel (!%p1301_p9), %vm874_vm6, %v1885_v48, -1e+30  ;;  %v927_v20 = vld [vmem:[#allocation5 + $0x8] sm:$0xff] (!%p1301_p9) }
 0x457   : > { %v881_v43 = vsel (!%p1301_p9), %vm880_vm5, %v876_v42, -inf  ;;  %vm875_vm7 = vcmp.le.s32.totalorder (!%p1301_p9), %v873_v40, %v871_v41 }
 0x458   : > { %882 = vmax.xlane.f32.xlu0 (!%p1301_p9), %v881_v43  ;;  %v877_v44 = vsel (!%p1301_p9), %vm875_vm7, %v1887_v50, -1e+30  ;;  %v1302_v50 = vcombine.low (!%p1301_p9), %v1875_v29, %v1879_v30 }
 0x459   : > { %v884_v45 = vsel %vm880_vm5, %v877_v44, -inf }
 0x45a   : > { %1348 = vmatpush3.bf16.msra.mxu0 %v1302_v50 }
 0x45c   : > { %885 = vmax.xlane.f32.xlu0 %v884_v45 }
 0x4e5   : > { %v883_v49 = vpop.xlane.xlu0 %882 }
 0x4e6   : > { %v887_v51 = vmax.f32 %v878_v47, %v883_v49 }
 0x4e8   : > { %v889_v53 = vsub.f32 %v878_v47, %v887_v51  ;;  %995 = vst.msk [vmem:[#allocation3] sm:$0xff] %vm923_vm8, %v887_v51  ;;  %897 = vperm.xlu1 %1491, %v887_v51  }
 0x4e9   : > { %v886_v48 = vpop.xlane.xlu0 %885 }
 0x4ea   : > { %v888_v54 = vmax.f32 %v879_v52, %v886_v48  ;;  %v891_v3 = vmul.f32 1.442695, %v889_v53 }
 0x4ec   : > { %v890_v55 = vsub.f32 %v879_v52, %v888_v54  ;;  %996 = vst.msk [vmem:[#allocation3 + $0x8] sm:$0xff] %vm923_vm8, %v888_v54  ;;  %902 = vperm.xlu1 %1491, %v888_v54  }
 0x4ee   : > { %v893_v2 = vmul.f32 1.442695, %v890_v55 }
 0x567   : > { %v898_v57 = vpop.permute.xlu1 %897 }
 0x568   : > { %v905_v58 = vsub.f32 %v876_v42, %v898_v57 }
 0x56a   : > { %v907_v59 = vmul.f32 1.442695, %v905_v58 }
 0x56b   : > { %v903_v60 = vpop.permute.xlu1 %902 }
 0x56c   : > { %1493 = vpow2.f32 %v907_v59  ;;  %v906_v61 = vsub.f32 %v877_v44, %v903_v60 }
 0x56e   : > { %v909_v62 = vmul.f32 1.442695, %v906_v61 }
 0x570   : > { %1495 = vpow2.f32 %v909_v62 }
 0x571   : > { %1497 = vpow2.f32 %v893_v2 }
 0x572   : > { %1499 = vpow2.f32 %v891_v3 }
 0x576   : > { %v1494_v63 = vpop.eup %1493 }
 0x577   : > { %v915_v0 = vsel %vm880_vm5, %v1494_v63, 0.0 }
 0x578   : > { %916 = vadd.xlane.f32.xlu0 %v915_v0 }
 0x57a   : > { %v1496_v1 = vpop.eup %1495 }
 0x57b   : > { %v918_v29 = vsel %vm880_vm5, %v1496_v1, 0.0  ;;  %v940_v30 = vpack.c.bf16 %v1496_v1, %v1494_v63  ;;  %v1498_v4 = vpop.eup %1497 }
 0x57c   : > { %919 = vadd.xlane.f32.xlu1 %v918_v29  ;;  %v1500_v5 = vpop.eup %1499  ;;  %v914_v11 = vmul.f32 %v1498_v4, %v912_v9 }
 0x57d   : > { %1350 = vmatmul.mubr.msk.bf16.vlgmr.msra.gmra.mrb[0].mxu0 %vm880_vm5, %v940_v30  ;;  %v913_v7 = vmul.f32 %v1500_v5, %v911_v6 }
 0x58d   : > { %935 = vperm.xlu1 %1491, %v1498_v4  }
 0x58e   : > { %930 = vperm.xlu0 %1492, %v1500_v5  }
 0x605   : > { %v917_v8 = vpop.xlane.xlu0 %916 }
 0x606   : > { %v921_v10 = vadd.f32 %v917_v8, %v913_v7 }
 0x608   : > { %924 = vst.msk [vmem:[#allocation4] sm:$0xff] %vm923_vm8, %v921_v10 }
 0x609   : > { %v920_v12 = vpop.xlane.xlu1 %919 }
 0x60a   : > { %v922_v13 = vadd.f32 %v920_v12, %v914_v11 }
 0x60c   : > { %925 = vst.msk [vmem:[#allocation4 + $0x8] sm:$0xff] %vm923_vm8, %v922_v13 }
 0x60d   : > { %v931_v19 = vpop.permute.xlu0 %930  ;;  %v936_v21 = vpop.permute.xlu1 %935 }
 0x60e   : > { %v938_v22 = vmul.f32 %v931_v19, %v926_v18  ;;  %v939_v24 = vmul.f32 %v936_v21, %v927_v20 }
 0x60f   : > { %v999_v14 = vld [vmem:[#allocation4] sm:$0xff] }
 0x610   : > { %1501 = vrcp.f32 %v999_v14 }
 0x613   : > { %v1000_v15 = vld [vmem:[#allocation4 + $0x8] sm:$0xff] }
 0x614   : > { %1503 = vrcp.f32 %v1000_v15 }
 0x61a   : > { %v1502_v16 = vpop.eup %1501 }
 0x61b   : > { %1005 = vperm.xlu0 %1492, %v1502_v16  }
 0x61e   : > { %v1504_v17 = vpop.eup %1503 }
 0x61f   : > { %1010 = vperm.xlu0 %1492, %v1504_v17  }
 0x650   : > { %v984_v23 = vpop.f32.mrb[0].mxu0 }
 0x651   : > { %v991_v25 = vadd.f32 %v984_v23, %v938_v22  ;;  %v1351_v26 = vpop.f32.mrb[1].mxu0 }
 0x652   : > { %v987_v27 = vpop.f32.mrb[2].mxu0 }
 0x653   : > { %993 = vst [vmem:[#allocation5] sm:$0xff] %v991_v25  ;;  %v992_v28 = vadd.f32 %v987_v27, %v939_v24  ;;  %v1352_v31 = vpop.f32.mrb[3].mxu0 }
 0x655   : > { %994 = vst [vmem:[#allocation5 + $0x8] sm:$0xff] %v992_v28 }
 0x69a   : > { %v1006_v32 = vpop.permute.xlu0 %1005 }
 0x69b   : > { %v1013_v34 = vmul.f32 %v1006_v32, %v991_v25 }
 0x69e   : > { %v1011_v33 = vpop.permute.xlu0 %1010 }
 0x69f   : > { %v1014_v35 = vmul.f32 %v1011_v33, %v992_v28 }
 0x6a1   : > { %v1327_v36 = vpack.c.bf16 %v1014_v35, %v1013_v34 }
 0x6a3   : > { %1328 = vst [vmem:[%s1868_s15] sm:$0xff] %v1327_v36  }
 0x6a4 PF: > { %1031 = sbr.rel (!%p1805_p0) target bundleno = 1712 (0x6b0), region = 187  ;;  %s1032_s4 = sld [smem:[#allocation7]] (%p1805_p0) }
 0x6a5   : > { %s2026_s5 = sld [smem:[#allocation17_spill]] (%p1805_p0)  ;;  %s2027_s16 = sld [smem:[#allocation16_spill]] (%p1805_p0) }
 0x6a6   : > { %s2028_s7 = sld [smem:[#allocation33_spill]] (%p1805_p0) }
 0x6aa   : > { %s1315_s20 = sshll.u32 (%p1805_p0), %s1032_s4, 2  ;;  %v1055_v37 = vld [vmem:[%s1868_s15] sm:$0xf] (%p1805_p0)  ;;  %v1057_v38 = vld [vmem:[%s1868_s15 + $0x4] sm:$0xf] (%p1805_p0) }
 0x6ab   : > { %s1309_s18 = sshll.u32 %s2026_s5, 2  ;;  %s1035_s1 = sadd.s32 %s2027_s16, %s1315_s20 }
 0x6ac   : > { %s1037_s22 = sadd.s32 %s1309_s18, %s1035_s1 }
 0x6ad   : > { %s1310_s0 = sshll.u32 %s1037_s22, 2 }
 0x6ae   : > { %s1039_s24 = scalar_lea.vmem %s2028_s7, %s1310_s0 }
 0x6af   : > { %1056 = vst [vmem:[%s1039_s24] sm:$0xf] %v1055_v37  ;;  %1058 = vst [vmem:[%s1039_s24 + $0x8] sm:$0xf] %v1057_v38 }
 0x6b0 PF: > { %s21_s23 = sadd.s32 1, %s1607_s23   ;;  %s2030_s29 = sld [smem:[#allocation25_spill]] }
 0x6b1   : > { %p1932_p10 = scmp.ge.s32.totalorder %s21_s23, 6   ;;  %s2031_s15 = sld [smem:[#allocation13_spill]] }
 0x6b2   : > { %s2032_s16 = sld [smem:[#allocation24_spill]]  ;;  %s2034_s18 = sld [smem:[#allocation23_spill]] }
 0x6b3   : > { %s2033_s17 = sld [smem:[#allocation14_spill]]  ;;  %s2035_s19 = sld [smem:[#allocation15_spill]] }
 0x6b4   : > { %s2036_s20 = sld [smem:[#allocation22_spill]]  ;;  %s2037_s0 = sld [smem:[#allocation18_spill]] }
 0x6b5   : > { %s2038_s21 = sld [smem:[#allocation19_spill]]  ;;  %s2039_s1 = sld [smem:[#allocation20_spill]] }
 0x6b6   : > { %s2040_s22 = sld [smem:[#allocation21_spill]]  ;;  %s2041_s13 = smov %s1563_s14 }
 0x6b7   : > { %s2042_s14 = smov %s2030_s29  ;;  %20 = sbr.rel (!%p1932_p10) target bundleno = 18 (0x12), region = 287 }

// kernel: transformer_block.5
= control target key start
LH: loop header
LB: loop body
LE: loop exit
PB: predicated region body
PF: predicated region fallthrough
CT: control target
= control target key end

     0   :  { %8 = vsyncpa [#allocation4], 0  ;;  %s2794_s0 = inlined_call_operand.hbm [shape: bf16[32,256], index: 0, kind: input, shape index: {}]   ;;  %s2795_s1 = inlined_call_operand.hbm [shape: bf16[256,768], index: 1, kind: input, shape index: {}]   ;;  %s2796_s2 = inlined_call_operand.vmem [shape: f32[1,768], index: 2, kind: input, shape index: {}]   ;;  %s2797_s3 = inlined_call_operand.vmem [shape: bf16[32,768], index: 3, kind: output, shape index: {}]  }
   0x1   :  { %9 = vsyncpa [#allocation6], 0 }
   0x2   :  { %11 = vsyncpa [#allocation6 + $0x1], 0  ;;  %s2241_s12 = smov 0   ;;  %s2243_s13 = smov 0  }
   0x3   :  { %s2245_s14 = smov 0   ;;  %s2247_s15 = smov 0  }
   0x4   :  { %s2249_s16 = smov 0   ;;  %s2251_s17 = smov 0  }
   0x5 LB: > { %s1539_s18 = sadd.s32 4294967295, %s2147_s17   ;;  %s26_s19 = sadd.s32 1, %s2143_s16  ;;  %s2147_s17 = sphi %s2251_s17, %s17_s17   ;;  %s2143_s16 = sphi %s2249_s16, %s2829_s16   ;;  %s2139_s15 = sphi %s2247_s15, %s2828_s15   ;;  %s2135_s14 = sphi %s2245_s14, %s2827_s14   ;;  %s2131_s13 = sphi %s2243_s13, %s2826_s13   ;;  %s2127_s12 = sphi %s2241_s12, %s2825_s12  }
   0x6   : > { %p27_p0 = scmp.ge.s32.totalorder %s26_s19, 2  ;;  %s62_s20 = sadd.s32 1, %s2135_s14 }
   0x7   : > { %p69_p1 = scmp.ne.s32.totalorder %s2135_s14, %s2131_s13  ;;  %p70_p2 = scmp.eq.s32.totalorder %s2147_s17, 0 }
   0x8   : > { %s2831_s19 = smov (%p27_p0, %s26_s19), 0  ;;  %p75_p4 = scmp.ne.s32.totalorder %s2131_s13, %s2127_s12 }
   0x9   : > { %p2277_p3 = por %p70_p2, %p69_p1  ;;  %s59_s22 = ssub.s32 %s2143_s16, %s2831_s19 }
   0xa   : > { %p2284_p5 = scmp.eq.s32.totalorder %s1539_s18, 0  ;;  %p60_p6 = scmp.eq.s32.totalorder %s59_s22, 0 }
   0xb   : > { %s2802_s21 = scalar_select %p2277_p3, 1, 0 }
   0xc   : > { %s2803_s23 = scalar_select %p2284_p5, 1, 0 }
   0xd   : > { %p127_p7 = scmp.eq.s32.totalorder %s1539_s18, 1  ;;  %p2290_p8 = por %p2284_p5, %p75_p4 }
   0xe   : > { %p1541_p9 = scmp.ge.s32.totalorder %s2147_s17, 1  ;;  %p140_p11 = scmp.lt.s32.totalorder %s2147_s17, 3 }
   0xf   : > { %s2804_s24 = scalar_select %p2290_p8, 1, 0 }
  0x10   : > { %s2296_s25 = scalar_select %p60_p6, %s2135_s14, %s62_s20  }
  0x11   : > { %p2298_p10 = por %p127_p7, %p69_p1  ;;  %p2303_p12 = pnand %p1541_p9, %p140_p11 }
  0x12   : > { %s2213_s28 = smov [#allocation3]   ;;  %s1973_s6 = scalar_lea.hbm %s2794_s0, 512 }
  0x13   : > { %s2805_s26 = scalar_select %p2298_p10, 1, 0 }
  0x14   : > { %s2806_s27 = scalar_select %p2303_p12, 1, 0 }
  0x15   : > { %s156_s29 = sshll.u32 %s2213_s28, 4  ;;  %p1680_p13 = pneg %p2303_p12  ;;  %s157_s29 = int_to_ptr.vmem [resolvable:$true] %s156_s29 }
  0x16   : > { %p1974_p1 = scmp.ne.s32.totalorder %s2794_s0, %s1973_s6  ;;  %p1980_p7 = scmp.lt.u32.totalorder %s1973_s6, %s2794_s0 }
  0x17   : > { %p2311_p0 = pnand %p1680_p13, %p2284_p5 }
  0x19   : > { %p1975_p2 = pneg %p2311_p0 }
  0x1b   : > { %p1976_p4 = pnand %p1975_p2, %p1974_p1 }
  0x1d   : > { %p1977_p6 = pneg %p1976_p4 }
  0x1f   : > { %p1982_p9 = pnand %p1980_p7, %p1977_p6 }
  0x21   : > { %1985 = shalt.err (!%p1982_p9)
}
  0x22   : > { %s1986_s11 = scalar_lea.vmem %s157_s29, 512  ;;  %p1994_p8 = scmp.lt.s32.totalorder %s157_s29, %s157_s29 }
  0x23   : > { %p1987_p11 = scmp.ne.s32.totalorder %s157_s29, %s1986_s11  ;;  %p1995_p5 = scmp.lt.s32.totalorder %s1986_s11, %s1986_s11 }
  0x25   : > { %p1989_p13 = pnand %p1987_p11, %p1975_p2  ;;  %p1996_p12 = por %p1995_p5, %p1994_p8 }
  0x27   : > { %p1990_p10 = pneg %p1989_p13 }
  0x29   : > { %p1997_p3 = pnand %p1996_p12, %p1990_p10 }
  0x2b   : > { %2000 = shalt.err (!%p1997_p3)
}
  0x2c   : > { %s2214_s12 = smov 128   ;;  %s2215_s18 = smov 8  }
  0x2d   : > { %1683 = dma.hbm_to_vmem [thread:$0]  (!%p2311_p0), %s2794_s0, 512, %s157_s29, [#allocation4], %s2214_s12, %s2214_s12, %s2215_s18  }
  0x2e   : > { %p1543_p1 = scmp.ge.s32.totalorder %s2147_s17, 2 }
  0x2f   : > { %p2808_p4 = scmp.ne.s32.totalorder (!%p1543_p1), %s2802_s21, 0 }
  0x30   : > { %166 = sbr.rel (%p1543_p1) target bundleno = 90 (0x5a), region = 20 }
  0x37   : > { %169 = sbr.rel (!%p2808_p4) target bundleno = 90 (0x5a), region = 24  ;;  %s170_s28 = sand.u32 (%p2808_p4), 1, %s2135_s14  }
  0x38   : > { %s1545_s4 = sshll.u32 (%p2808_p4), %s2143_s16, 2  ;;  %s1544_s5 = sshll.u32 (%p2808_p4), %s170_s28, 9 }
  0x39   : > { %s176_s6 = ssub.s32 (%p2808_p4), 6, %s1545_s4  ;;  %s2342_s7 = scalar_lea.sflag (%p2808_p4), [#allocation6], %s170_s28 }
  0x3a   : > { %p177_p3 = scmp.lt.s32.totalorder (%p2808_p4), %s176_s6, 4  ;;  %s174_s8 = scalar_lea.vmem (%p2808_p4), [#allocation5], %s1544_s5 }
  0x3e   : > { %s2833_s6 = smov (!%p177_p3, %s176_s6), 4 }
  0x3f   : > { %s2339_s30 = sshll.u32 %s2833_s6, 11 }
  0x40   : > { %s181_s29 = ssub.s32 8192, %s2339_s30 }
  0x41   : > { %182 = vsyncadd %s2342_s7, %s181_s29  ;;  %p1547_p5 = scmp.ne.s32.totalorder %s2339_s30, 0  ;;  %s1659_s21 = sshll.u32 %s2143_s16, 8 }
  0x42   : > { %s2350_s11 = scalar_lea.hbm %s2795_s1, %s1659_s21  ;;  %s1549_s12 = sshll.u32 %s2833_s6, 2 }
  0x43   : > { %s188_s18 = sshll.u32 %s174_s8, 4  ;;  %s2001_s20 = scalar_lea.hbm %s2350_s11, %s2339_s30  ;;  %s2353_s18 = int_to_ptr.vmem [resolvable:$true] %s188_s18 }
  0x44   : > { %p2002_p8 = scmp.ne.s32.totalorder %s2350_s11, %s2001_s20  ;;  %s2005_s4 = scalar_lea.hbm %s2795_s1, 12288 }
  0x45   : > { %p2006_p0 = scmp.lt.u32.totalorder %s2350_s11, %s2795_s1  ;;  %p2007_p2 = scmp.lt.u32.totalorder %s2005_s4, %s2001_s20 }
  0x46   : > { %p2003_p10 = pnand %p2002_p8, %p1547_p5  ;;  %p2009_p7 = scmp.lt.u32.totalorder %s2001_s20, %s2350_s11 }
  0x47   : > { %p2008_p6 = por %p2007_p2, %p2006_p0 }
  0x48   : > { %p2004_p12 = pneg %p2003_p10 }
  0x49   : > { %p2010_p9 = por %p2009_p7, %p2008_p6 }
  0x4b   : > { %p2011_p11 = pnand %p2010_p9, %p2004_p12 }
  0x4d   : > { %2014 = shalt.err (!%p2011_p11)
}
  0x4e   : > { %s2015_s8 = scalar_lea.vmem %s2353_s18, %s2339_s30  ;;  %s2216_s21 = smov [#allocation5]  }
  0x4f   : > { %p2016_p13 = scmp.ne.s32.totalorder %s2353_s18, %s2015_s8  ;;  %s2019_s9 = sshll.u32 %s2216_s21, 4  ;;  %s2020_s9 = int_to_ptr.vmem [resolvable:$false] %s2019_s9 }
  0x50   : > { %s2021_s10 = scalar_lea.vmem %s2020_s9, 16384  ;;  %p2022_p3 = scmp.lt.s32.totalorder %s2353_s18, %s2020_s9 }
  0x51   : > { %p2017_p1 = pnand %p2016_p13, %p1547_p5  ;;  %p2023_p8 = scmp.lt.s32.totalorder %s2021_s10, %s2015_s8 }
  0x53   : > { %p2018_p4 = pneg %p2017_p1  ;;  %p2024_p10 = por %p2023_p8, %p2022_p3 }
  0x55   : > { %p2025_p0 = pnand %p2024_p10, %p2018_p4 }
  0x57   : > { %2028 = shalt.err (!%p2025_p0)
}
  0x58   : > { %s2217_s20 = smov 384   ;;  %s2218_s22 = smov 256  }
  0x59   : > { %194 = dma.hbm_to_vmem [thread:$0]  (%p1547_p5), %s2350_s11, %s2339_s30, %s2353_s18, %s2342_s7, %s2217_s20, %s2218_s22, %s1549_s12  }
  0x5a PF: > { %p2809_p12 = scmp.ne.s32.totalorder %s2806_s27, 0 }
  0x5b   : > { %p2810_p2 = scmp.ne.s32.totalorder (!%p2809_p12), %s2803_s23, 0 }
  0x5c   : > { %216 = sbr.rel (%p2809_p12) target bundleno = 704 (0x2c0), region = 32 }
  0x63   : > { %2118 = dma.done.wait (%p2810_p2), [#allocation4], 512  }
  0x64   : > { %2120 = vsyncadd (%p2810_p2), [#allocation4], 4294966784  ;;  %s222_s28 = sand.u32 1, %s2131_s13   ;;  %p2811_p6 = scmp.ne.s32.totalorder %s2804_s24, 0 }
  0x65   : > { %s1554_s4 = sshll.u32 %s222_s28, 9  ;;  %s223_s5 = scalar_lea.sflag [#allocation6], %s222_s28 }
  0x66   : > { %s2389_s29 = scalar_lea.vmem [#allocation5], %s1554_s4 }
  0x67   : > { %2122 = dma.done.wait (%p2811_p6), %s223_s5, 8192  }
  0x68   : > { %2124 = vsyncadd (%p2811_p6), %s223_s5, 4294959104  ;;  %s1555_s27 = sshll.u32 %s222_s28, 6  ;;  %s2396_s6 = sshll.u32 %s2139_s15, 2 }
  0x69   : > { %p267_p5 = scmp.lt.s32.totalorder %s2396_s6, 5  ;;  %s2406_s12 = scalar_lea.vmem [#allocation7], %s1555_s27  }
  0x6a   : > { %p1557_p7 = scmp.ne.s32.totalorder %s2139_s15, 0 }
  0x6b   : > { %s2400_s23 = scalar_select %p267_p5, %s2396_s6, 5 }
  0x6c   : > { %284 = sbr.rel (%p1557_p7) target bundleno = 282 (0x11a), region = 44  ;;  %v287_v0 = vld [vmem:[#allocation3 + $0x10] sm:$0xff] (!%p1557_p7)  ;;  %v285_v1 = vld [vmem:[#allocation3] sm:$0xff] (!%p1557_p7)  ;;  %v288_v2 = vld [vmem:[#allocation3 + $0x18] sm:$0xff] (!%p1557_p7) }
  0x6d   : > { %s269_s11 = scalar_lea.vmem %s2796_s2, %s2400_s23  ;;  %v293_v3 = vunpack.c.l.bf16 (!%p1557_p7), %v287_v0  ;;  %v294_v4 = vunpack.c.h.bf16 (!%p1557_p7), %v287_v0  ;;  %v289_v5 = vunpack.c.l.bf16 (!%p1557_p7), %v285_v1  ;;  %v290_v6 = vunpack.c.h.bf16 (!%p1557_p7), %v285_v1  ;;  %v286_v7 = vld [vmem:[#allocation3 + $0x8] sm:$0xff] (!%p1557_p7) }
  0x6e   : > { %v295_v8 = vunpack.c.l.bf16 (!%p1557_p7), %v288_v2  ;;  %v296_v9 = vunpack.c.h.bf16 (!%p1557_p7), %v288_v2  ;;  %v291_v10 = vunpack.c.l.bf16 (!%p1557_p7), %v286_v7  ;;  %v292_v11 = vunpack.c.h.bf16 (!%p1557_p7), %v286_v7 }
  0x6f   : > { %v301_v12 = vmul.f32 (!%p1557_p7), %v293_v3, %v293_v3  ;;  %v302_v13 = vmul.f32 (!%p1557_p7), %v294_v4, %v294_v4  ;;  %v297_v14 = vmul.f32 (!%p1557_p7), %v289_v5, %v289_v5  ;;  %v298_v15 = vmul.f32 (!%p1557_p7), %v290_v6, %v290_v6 }
  0x70   : > { %v303_v16 = vmul.f32 (!%p1557_p7), %v295_v8, %v295_v8  ;;  %v304_v17 = vmul.f32 (!%p1557_p7), %v296_v9, %v296_v9  ;;  %v299_v18 = vmul.f32 (!%p1557_p7), %v291_v10, %v291_v10  ;;  %v300_v19 = vmul.f32 (!%p1557_p7), %v292_v11, %v292_v11 }
  0x71   : > { %v311_v20 = vadd.f32 (!%p1557_p7), %v302_v13, %v301_v12  ;;  %v305_v21 = vadd.f32 (!%p1557_p7), %v298_v15, %v297_v14 }
  0x72   : > { %v314_v22 = vadd.f32 (!%p1557_p7), %v304_v17, %v303_v16  ;;  %v308_v23 = vadd.f32 (!%p1557_p7), %v300_v19, %v299_v18 }
  0x73   : > { %312 = vadd.xlane.f32.xlu1 %v311_v20  ;;  %306 = vadd.xlane.f32.xlu0 %v305_v21 }
  0x77   : > { %315 = vadd.xlane.f32.xlu1 %v314_v22  ;;  %309 = vadd.xlane.f32.xlu0 %v308_v23 }
 0x100   : > { %v313_v24 = vpop.xlane.xlu1 %312  ;;  %v307_v25 = vpop.xlane.xlu0 %306 }
 0x101   : > { %v320_v26 = vmul.f32 0.00390625, %v313_v24  ;;  %v318_v27 = vmul.f32 0.00390625, %v307_v25 }
 0x103   : > { %v324_v28 = vadd.f32 1e-05, %v320_v26  ;;  %v322_v29 = vadd.f32 1e-05, %v318_v27 }
 0x104   : > { %v316_v30 = vpop.xlane.xlu1 %315  ;;  %v310_v31 = vpop.xlane.xlu0 %309 }
 0x105   : > { %v321_v32 = vmul.f32 0.00390625, %v316_v30  ;;  %v319_v33 = vmul.f32 0.00390625, %v310_v31  ;;  %1869 = vrsqrt.f32 %v324_v28 }
 0x106   : > { %1871 = vrsqrt.f32 %v322_v29 }
 0x107   : > { %v325_v34 = vadd.f32 1e-05, %v321_v32  ;;  %v323_v35 = vadd.f32 1e-05, %v319_v33 }
 0x109   : > { %1873 = vrsqrt.f32 %v325_v34 }
 0x10a   : > { %1875 = vrsqrt.f32 %v323_v35 }
 0x10f   : > { %v1870_v36 = vpop.eup %1869 }
 0x110   : > { %v1872_v37 = vpop.eup %1871  ;;  %v334_v40 = vmul.f32 %v1870_v36, %v293_v3  ;;  %v335_v41 = vmul.f32 %v1870_v36, %v294_v4 }
 0x111   : > { %v330_v44 = vmul.f32 %v1872_v37, %v289_v5  ;;  %v331_v45 = vmul.f32 %v1872_v37, %v290_v6 }
 0x113   : > { %v1874_v38 = vpop.eup %1873 }
 0x114   : > { %v1876_v39 = vpop.eup %1875  ;;  %v336_v42 = vmul.f32 %v1874_v38, %v295_v8  ;;  %v337_v43 = vmul.f32 %v1874_v38, %v296_v9 }
 0x115   : > { %v332_v46 = vmul.f32 %v1876_v39, %v291_v10  ;;  %v333_v47 = vmul.f32 %v1876_v39, %v292_v11 }
 0x116   : > { %v340_v48 = vpack.c.bf16 %v336_v42, %v334_v40  ;;  %v341_v49 = vpack.c.bf16 %v337_v43, %v335_v41 }
 0x117   : > { %v338_v50 = vpack.c.bf16 %v332_v46, %v330_v44  ;;  %v339_v51 = vpack.c.bf16 %v333_v47, %v331_v45 }
 0x118   : > { %344 = vst [vmem:[#allocation2 + $0x10] sm:$0xff] %v340_v48  ;;  %345 = vst [vmem:[#allocation2 + $0x18] sm:$0xff] %v341_v49 }
 0x119   : > { %342 = vst [vmem:[#allocation2] sm:$0xff] %v338_v50  ;;  %343 = vst [vmem:[#allocation2 + $0x8] sm:$0xff] %v339_v51 }
 0x11a PF: > { %v1877_v52 = vld [vmem:[%s2389_s29 + $0x4] ss:$16 sps:$4 sm:$0xff]   ;;  %v1879_v53 = vld [vmem:[%s2389_s29 + $0xc] ss:$16 sps:$4 sm:$0xff]   ;;  %v1881_v54 = vld [vmem:[%s2389_s29] ss:$16 sps:$4 sm:$0xff]  }
 0x11b   : > { %756 = vmatprep.subr.bf16.mxu0 %v1877_v52  ;;  %v1882_v55 = vld [vmem:[%s2389_s29 + $0x8] ss:$16 sps:$4 sm:$0xff]   ;;  %809 = vmatprep.subr.bf16.mxu1 %v1879_v53  ;;  %v1883_v56 = vld [vmem:[%s2389_s29 + $0x24] ss:$16 sps:$4 sm:$0xff]   ;;  %v1885_v57 = vld [vmem:[%s2389_s29 + $0x2c] ss:$16 sps:$4 sm:$0xff]  }
 0x11c   : > { %757 = vmatpush1.bf16.msra.mxu0 %v1881_v54  ;;  %810 = vmatpush1.bf16.msra.mxu1 %v1882_v55  ;;  %v1887_v58 = vld [vmem:[%s2389_s29 + $0x20] ss:$16 sps:$4 sm:$0xff]   ;;  %v1888_v59 = vld [vmem:[%s2389_s29 + $0x28] ss:$16 sps:$4 sm:$0xff]   ;;  %v1889_v60 = vld [vmem:[%s2389_s29 + $0x44] ss:$16 sps:$4 sm:$0xff]  }
 0x11d   : > { %758 = vmatprep.subr.bf16.mxu0 %v1883_v56  ;;  %811 = vmatprep.subr.bf16.mxu1 %v1885_v57  ;;  %v1891_v61 = vld [vmem:[%s2389_s29 + $0x4c] ss:$16 sps:$4 sm:$0xff]   ;;  %v1893_v62 = vld [vmem:[%s2389_s29 + $0x40] ss:$16 sps:$4 sm:$0xff]   ;;  %v1894_v63 = vld [vmem:[%s2389_s29 + $0x48] ss:$16 sps:$4 sm:$0xff]   ;;  %v416_v56 = vlaneseq }
 0x11e   : > { %v1895_v0 = vld [vmem:[%s2389_s29 + $0x64] ss:$16 sps:$4 sm:$0xff]   ;;  %v1897_v1 = vld [vmem:[%s2389_s29 + $0x6c] ss:$16 sps:$4 sm:$0xff]   ;;  %v1899_v2 = vld [vmem:[%s2389_s29 + $0x60] ss:$16 sps:$4 sm:$0xff]  }
 0x11f   : > { %v1900_v3 = vld [vmem:[%s2389_s29 + $0x68] ss:$16 sps:$4 sm:$0xff]   ;;  %v1901_v4 = vld [vmem:[%s2389_s29 + $0x84] ss:$16 sps:$4 sm:$0xff]   ;;  %v1903_v5 = vld [vmem:[%s2389_s29 + $0x8c] ss:$16 sps:$4 sm:$0xff]  }
 0x120   : > { %759 = vmatpush1.bf16.msra.mxu0 %v1887_v58  ;;  %812 = vmatpush1.bf16.msra.mxu1 %v1888_v59  ;;  %v1905_v6 = vld [vmem:[%s2389_s29 + $0x80] ss:$16 sps:$4 sm:$0xff]   ;;  %v1906_v7 = vld [vmem:[%s2389_s29 + $0x88] ss:$16 sps:$4 sm:$0xff]   ;;  %v1907_v8 = vld [vmem:[%s2389_s29 + $0xa4] ss:$16 sps:$4 sm:$0xff]  }
 0x121   : > { %760 = vmatprep.subr.bf16.mxu0 %v1889_v60  ;;  %813 = vmatprep.subr.bf16.mxu1 %v1891_v61  ;;  %v1909_v9 = vld [vmem:[%s2389_s29 + $0xac] ss:$16 sps:$4 sm:$0xff]   ;;  %v1911_v10 = vld [vmem:[%s2389_s29 + $0xa0] ss:$16 sps:$4 sm:$0xff]   ;;  %v1912_v11 = vld [vmem:[%s2389_s29 + $0xa8] ss:$16 sps:$4 sm:$0xff]  }
 0x122   : > { %v1913_v12 = vld [vmem:[%s2389_s29 + $0xc4] ss:$16 sps:$4 sm:$0xff]   ;;  %v1915_v13 = vld [vmem:[%s2389_s29 + $0xcc] ss:$16 sps:$4 sm:$0xff]   ;;  %v1917_v14 = vld [vmem:[%s2389_s29 + $0xc0] ss:$16 sps:$4 sm:$0xff]  }
 0x123   : > { %v1918_v15 = vld [vmem:[%s2389_s29 + $0xc8] ss:$16 sps:$4 sm:$0xff]   ;;  %v1919_v16 = vld [vmem:[%s2389_s29 + $0xe4] ss:$16 sps:$4 sm:$0xff]   ;;  %v1921_v17 = vld [vmem:[%s2389_s29 + $0xec] ss:$16 sps:$4 sm:$0xff]  }
 0x124   : > { %761 = vmatpush1.bf16.msra.mxu0 %v1893_v62  ;;  %814 = vmatpush1.bf16.msra.mxu1 %v1894_v63  ;;  %v1923_v18 = vld [vmem:[%s2389_s29 + $0xe0] ss:$16 sps:$4 sm:$0xff]   ;;  %v1924_v19 = vld [vmem:[%s2389_s29 + $0xe8] ss:$16 sps:$4 sm:$0xff]   ;;  %v1925_v20 = vld [vmem:[%s2389_s29 + $0x104] ss:$16 sps:$4 sm:$0xff]  }
 0x125   : > { %762 = vmatprep.subr.bf16.mxu0 %v1895_v0  ;;  %815 = vmatprep.subr.bf16.mxu1 %v1897_v1  ;;  %v1927_v21 = vld [vmem:[%s2389_s29 + $0x10c] ss:$16 sps:$4 sm:$0xff]   ;;  %v1929_v22 = vld [vmem:[%s2389_s29 + $0x100] ss:$16 sps:$4 sm:$0xff]   ;;  %v1930_v23 = vld [vmem:[%s2389_s29 + $0x108] ss:$16 sps:$4 sm:$0xff]  }
 0x126   : > { %v1931_v24 = vld [vmem:[%s2389_s29 + $0x124] ss:$16 sps:$4 sm:$0xff]   ;;  %v1933_v25 = vld [vmem:[%s2389_s29 + $0x12c] ss:$16 sps:$4 sm:$0xff]   ;;  %v1935_v26 = vld [vmem:[%s2389_s29 + $0x120] ss:$16 sps:$4 sm:$0xff]  }
 0x127   : > { %v1936_v27 = vld [vmem:[%s2389_s29 + $0x128] ss:$16 sps:$4 sm:$0xff]   ;;  %v1937_v28 = vld [vmem:[%s2389_s29 + $0x144] ss:$16 sps:$4 sm:$0xff]   ;;  %v1939_v29 = vld [vmem:[%s2389_s29 + $0x14c] ss:$16 sps:$4 sm:$0xff]  }
 0x128   : > { %763 = vmatpush1.bf16.msra.mxu0 %v1899_v2  ;;  %816 = vmatpush1.bf16.msra.mxu1 %v1900_v3  ;;  %v1941_v30 = vld [vmem:[%s2389_s29 + $0x140] ss:$16 sps:$4 sm:$0xff]   ;;  %v1942_v31 = vld [vmem:[%s2389_s29 + $0x148] ss:$16 sps:$4 sm:$0xff]   ;;  %v1943_v32 = vld [vmem:[%s2389_s29 + $0x164] ss:$16 sps:$4 sm:$0xff]  }
 0x129   : > { %764 = vmatprep.subr.bf16.mxu0 %v1901_v4  ;;  %817 = vmatprep.subr.bf16.mxu1 %v1903_v5  ;;  %v1945_v33 = vld [vmem:[%s2389_s29 + $0x16c] ss:$16 sps:$4 sm:$0xff]   ;;  %v1947_v35 = vld [vmem:[%s2389_s29 + $0x160] ss:$16 sps:$4 sm:$0xff]   ;;  %v1948_v36 = vld [vmem:[%s2389_s29 + $0x168] ss:$16 sps:$4 sm:$0xff]  }
 0x12a   : > { %v347_v34 = vld [vmem:[#allocation2 + $0x8] sm:$0xff]  ;;  %v1949_v37 = vld [vmem:[%s2389_s29 + $0x184] ss:$16 sps:$4 sm:$0xff]   ;;  %v1953_v39 = vld [vmem:[%s2389_s29 + $0x180] ss:$16 sps:$4 sm:$0xff]   ;;  %v417_v57 = vshrl.u32 %v416_v56, 7 }
 0x12b   : > { %788 = vmatprep.mubr.bf16.mxu0 %v347_v34  ;;  %841 = vmatprep.mubr.bf16.mxu1 %v347_v34  ;;  %v1951_v38 = vld [vmem:[%s2389_s29 + $0x18c] ss:$16 sps:$4 sm:$0xff]   ;;  %v1954_v40 = vld [vmem:[%s2389_s29 + $0x188] ss:$16 sps:$4 sm:$0xff]   ;;  %v1955_v41 = vld [vmem:[%s2389_s29 + $0x1a4] ss:$16 sps:$4 sm:$0xff]  }
 0x12c   : > { %765 = vmatpush1.bf16.msra.mxu0 %v1905_v6  ;;  %818 = vmatpush1.bf16.msra.mxu1 %v1906_v7  ;;  %v1957_v42 = vld [vmem:[%s2389_s29 + $0x1ac] ss:$16 sps:$4 sm:$0xff]   ;;  %v1959_v43 = vld [vmem:[%s2389_s29 + $0x1a0] ss:$16 sps:$4 sm:$0xff]   ;;  %v1960_v44 = vld [vmem:[%s2389_s29 + $0x1a8] ss:$16 sps:$4 sm:$0xff]  }
 0x12d   : > { %766 = vmatprep.subr.bf16.mxu0 %v1907_v8  ;;  %819 = vmatprep.subr.bf16.mxu1 %v1909_v9  ;;  %v1961_v45 = vld [vmem:[%s2389_s29 + $0x1c4] ss:$16 sps:$4 sm:$0xff]   ;;  %v1963_v46 = vld [vmem:[%s2389_s29 + $0x1cc] ss:$16 sps:$4 sm:$0xff]   ;;  %v1965_v47 = vld [vmem:[%s2389_s29 + $0x1c0] ss:$16 sps:$4 sm:$0xff]  }
 0x12e   : > { %v1966_v48 = vld [vmem:[%s2389_s29 + $0x1c8] ss:$16 sps:$4 sm:$0xff]   ;;  %v1967_v49 = vld [vmem:[%s2389_s29 + $0x1e4] ss:$16 sps:$4 sm:$0xff]   ;;  %v1969_v50 = vld [vmem:[%s2389_s29 + $0x1ec] ss:$16 sps:$4 sm:$0xff]  }
 0x12f   : > { %v1971_v51 = vld [vmem:[%s2389_s29 + $0x1e0] ss:$16 sps:$4 sm:$0xff]   ;;  %v1972_v52 = vld [vmem:[%s2389_s29 + $0x1e8] ss:$16 sps:$4 sm:$0xff]   ;;  %v418_v58 = vsub.s32 0, %v417_v57  ;;  %v426_v59 = vsub.s32 2, %v417_v57 }
 0x130   : > { %767 = vmatpush1.bf16.msra.mxu0 %v1911_v10  ;;  %820 = vmatpush1.bf16.msra.mxu1 %v1912_v11  ;;  %v346_v53 = vld [vmem:[#allocation2] sm:$0xff]  ;;  %v349_v54 = vld [vmem:[#allocation2 + $0x18] sm:$0xff]  ;;  %v348_v55 = vld [vmem:[#allocation2 + $0x10] sm:$0xff]  ;;  %v422_v61 = vsub.s32 1, %v417_v57  ;;  %v430_v62 = vsub.s32 3, %v417_v57  ;;  %p2812_p9 = scmp.ne.s32.totalorder %s2805_s26, 0 }
 0x131   : > { %768 = vmatprep.subr.bf16.mxu0 %v1913_v12  ;;  %821 = vmatprep.subr.bf16.mxu1 %v1915_v13  ;;  %v414_v60 = vld [vmem:[%s269_s11] sm:$0xf]  ;;  %s927_s8 = ssub.s32 (%p2812_p9), 6, %s2396_s6  ;;  %s1670_s21 = sshll.u32 (%p2812_p9), %s2139_s15, 4 }
 0x132   : > { %v419_v63 = vrot.slane %v414_v60, %v418_v58  ;;  %v427_v0 = vrot.slane %v414_v60, %v426_v59  ;;  %v423_v1 = vrot.slane %v414_v60, %v422_v61  ;;  %v431_v2 = vrot.slane %v414_v60, %v430_v62  ;;  %p928_p11 = scmp.lt.s32.totalorder (%p2812_p9), %s927_s8, 4  ;;  %s2493_s20 = scalar_lea.vmem (%p2812_p9), %s2797_s3, %s1670_s21  }
 0x134   : > { %769 = vmatpush1.bf16.msra.mxu0 %v1917_v14  ;;  %822 = vmatpush1.bf16.msra.mxu1 %v1918_v15 }
 0x135   : > { %770 = vmatprep.subr.bf16.mxu0 %v1919_v16  ;;  %823 = vmatprep.subr.bf16.mxu1 %v1921_v17 }
 0x138   : > { %771 = vmatpush1.bf16.msra.mxu0 %v1923_v18  ;;  %824 = vmatpush1.bf16.msra.mxu1 %v1924_v19 }
 0x139   : > { %772 = vmatprep.subr.bf16.mxu0 %v1925_v20  ;;  %825 = vmatprep.subr.bf16.mxu1 %v1927_v21 }
 0x13c   : > { %773 = vmatpush1.bf16.msra.mxu0 %v1929_v22  ;;  %826 = vmatpush1.bf16.msra.mxu1 %v1930_v23 }
 0x13d   : > { %774 = vmatprep.subr.bf16.mxu0 %v1931_v24  ;;  %827 = vmatprep.subr.bf16.mxu1 %v1933_v25 }
 0x140   : > { %775 = vmatpush1.bf16.msra.mxu0 %v1935_v26  ;;  %828 = vmatpush1.bf16.msra.mxu1 %v1936_v27 }
 0x141   : > { %776 = vmatprep.subr.bf16.mxu0 %v1937_v28  ;;  %829 = vmatprep.subr.bf16.mxu1 %v1939_v29 }
 0x144   : > { %777 = vmatpush1.bf16.msra.mxu0 %v1941_v30  ;;  %830 = vmatpush1.bf16.msra.mxu1 %v1942_v31 }
 0x145   : > { %778 = vmatprep.subr.bf16.mxu0 %v1943_v32  ;;  %831 = vmatprep.subr.bf16.mxu1 %v1945_v33 }
 0x148   : > { %779 = vmatpush1.bf16.msra.mxu0 %v1947_v35  ;;  %832 = vmatpush1.bf16.msra.mxu1 %v1948_v36 }
 0x149   : > { %780 = vmatprep.subr.bf16.mxu0 %v1949_v37  ;;  %833 = vmatprep.subr.bf16.mxu1 %v1951_v38 }
 0x14c   : > { %781 = vmatpush1.bf16.msra.mxu0 %v1953_v39  ;;  %834 = vmatpush1.bf16.msra.mxu1 %v1954_v40 }
 0x14d   : > { %782 = vmatprep.subr.bf16.mxu0 %v1955_v41  ;;  %835 = vmatprep.subr.bf16.mxu1 %v1957_v42 }
 0x150   : > { %783 = vmatpush1.bf16.msra.mxu0 %v1959_v43  ;;  %836 = vmatpush1.bf16.msra.mxu1 %v1960_v44 }
 0x151   : > { %784 = vmatprep.subr.bf16.mxu0 %v1961_v45  ;;  %837 = vmatprep.subr.bf16.mxu1 %v1963_v46 }
 0x154   : > { %785 = vmatpush1.bf16.msra.mxu0 %v1965_v47  ;;  %838 = vmatpush1.bf16.msra.mxu1 %v1966_v48 }
 0x155   : > { %786 = vmatprep.subr.bf16.mxu0 %v1967_v49  ;;  %839 = vmatprep.subr.bf16.mxu1 %v1969_v50 }
 0x158   : > { %787 = vmatpush1.bf16.msra.mxu0 %v1971_v51  ;;  %840 = vmatpush1.bf16.msra.mxu1 %v1972_v52 }
 0x15b   : > { %789 = vmatmul.mubr.bf16.vlgmr.msra.gmra.mrb[0].mxu0 %v346_v53  ;;  %842 = vmatmul.mubr.bf16.vlgmr.msra.gmra.mrb[0].mxu1 %v346_v53 }
 0x15c   : > { %798 = vmatprep.mubr.bf16.mxu0 %v349_v54  ;;  %851 = vmatprep.mubr.bf16.mxu1 %v349_v54 }
 0x163   : > { %799 = vmatmul.mubr.bf16.gmra.mrb[4].mxu0 %v348_v55  ;;  %852 = vmatmul.mubr.bf16.gmra.mrb[4].mxu1 %v348_v55 }
 0x22e   : > { %v790_v3 = vpop.f32.mrb[0].mxu0  ;;  %v843_v4 = vpop.f32.mrb[0].mxu1 }
 0x22f   : > { %v791_v5 = vadd.f32 %v790_v3, %v419_v63  ;;  %v844_v6 = vadd.f32 %v843_v4, %v427_v0  ;;  %v792_v7 = vpop.f32.mrb[1].mxu0  ;;  %v845_v8 = vpop.f32.mrb[1].mxu1 }
 0x230   : > { %v793_v9 = vadd.f32 %v792_v7, %v423_v1  ;;  %v846_v10 = vadd.f32 %v845_v8, %v431_v2  ;;  %v794_v11 = vpop.f32.mrb[2].mxu0  ;;  %v847_v12 = vpop.f32.mrb[2].mxu1 }
 0x231   : > { %v795_v13 = vadd.f32 %v794_v11, %v419_v63  ;;  %v848_v14 = vadd.f32 %v847_v12, %v427_v0  ;;  %v796_v15 = vpop.f32.mrb[3].mxu0  ;;  %v849_v16 = vpop.f32.mrb[3].mxu1 }
 0x232   : > { %v1662_v17 = vpack.c.bf16 %v793_v9, %v791_v5  ;;  %v1663_v18 = vpack.c.bf16 %v846_v10, %v844_v6  ;;  %v797_v19 = vadd.f32 %v796_v15, %v423_v1  ;;  %v850_v20 = vadd.f32 %v849_v16, %v431_v2 }
 0x234   : > { %910 = vst [vmem:[%s2406_s12] sm:$0xff] %v1662_v17  ;;  %911 = vst [vmem:[%s2406_s12 + $0x8] sm:$0xff] %v1663_v18  ;;  %v1664_v21 = vpack.c.bf16 %v797_v19, %v795_v13  ;;  %v1665_v22 = vpack.c.bf16 %v850_v20, %v848_v14 }
 0x236   : > { %912 = vst [vmem:[%s2406_s12 + $0x10] sm:$0xff] %v1664_v21  ;;  %913 = vst [vmem:[%s2406_s12 + $0x18] sm:$0xff] %v1665_v22  ;;  %v800_v23 = vpop.f32.mrb[4].mxu0  ;;  %v853_v24 = vpop.f32.mrb[4].mxu1 }
 0x237   : > { %v801_v25 = vadd.f32 %v800_v23, %v419_v63  ;;  %v854_v26 = vadd.f32 %v853_v24, %v427_v0  ;;  %v802_v27 = vpop.f32.mrb[5].mxu0  ;;  %v855_v28 = vpop.f32.mrb[5].mxu1 }
 0x238   : > { %v803_v29 = vadd.f32 %v802_v27, %v423_v1  ;;  %v856_v30 = vadd.f32 %v855_v28, %v431_v2  ;;  %v804_v31 = vpop.f32.mrb[6].mxu0  ;;  %v857_v32 = vpop.f32.mrb[6].mxu1  ;;  %924 = sbr.rel (!%p2812_p9) target bundleno = 704 (0x2c0), region = 48 }
 0x239   : > { %v805_v33 = vadd.f32 %v804_v31, %v419_v63  ;;  %v858_v34 = vadd.f32 %v857_v32, %v427_v0  ;;  %v806_v35 = vpop.f32.mrb[7].mxu0  ;;  %v859_v36 = vpop.f32.mrb[7].mxu1 }
 0x23a   : > { %v1666_v37 = vpack.c.bf16 %v803_v29, %v801_v25  ;;  %v1667_v38 = vpack.c.bf16 %v856_v30, %v854_v26  ;;  %v807_v39 = vadd.f32 %v806_v35, %v423_v1  ;;  %v860_v40 = vadd.f32 %v859_v36, %v431_v2 }
 0x23c   : > { %914 = vst [vmem:[%s2406_s12 + $0x20] sm:$0xff] %v1666_v37  ;;  %915 = vst [vmem:[%s2406_s12 + $0x28] sm:$0xff] %v1667_v38  ;;  %v1668_v41 = vpack.c.bf16 %v807_v39, %v805_v33  ;;  %v1669_v42 = vpack.c.bf16 %v860_v40, %v858_v34 }
 0x23e   : > { %916 = vst [vmem:[%s2406_s12 + $0x30] sm:$0xff] %v1668_v41  ;;  %917 = vst [vmem:[%s2406_s12 + $0x38] sm:$0xff] %v1669_v42 }
 0x23f   : > { %s2835_s8 = smov (!%p928_p11, %s927_s8), 4 }
 0x240   : > { %s1632_s22 = sshll.u32 %s2835_s8, 8  ;;  %s2495_s28 = sshll.u32 %s2835_s8, 2 }
 0x241   : > { %p1636_p13 = scmp.eq.s32.totalorder %s1632_s22, 0 }
 0x242   : > { %p940_p1 = scmp.lt.u32.totalorder (!%p1636_p13), %s2495_s28, 8 }
 0x243   : > { %939 = sbr.rel (%p1636_p13) target bundleno = 704 (0x2c0), region = 52 }
 0x24a   : > { %943 = sbr.rel (%p940_p1) target bundleno = 695 (0x2b7), region = 56  ;;  %s2499_s26 = sand.u32 (!%p940_p1), 7, %s2495_s28  }
 0x24b   : > { %p965_p4 = scmp.eq.s32.totalorder (!%p940_p1), %s2499_s26, 0  ;;  %p1637_p3 = scmp.ne.s32.totalorder (!%p940_p1), %s2499_s26, 0 }
 0x251   : > { %968 = sbr.rel (%p1637_p3) target bundleno = 641 (0x281), region = 71  ;;  %s969_s15 = sshrl.u32 (!%p1637_p3), %s2495_s28, 3 }
 0x252   : > { %s2506_s4 = sshrl.u32 (!%p1637_p3), %s969_s15, 4 }
 0x253   : > { %p1638_p8 = scmp.le.s32.totalorder (!%p1637_p3), %s2506_s4, 0 }
 0x258   : > { %1441 = sbr.rel (%p1638_p8) target bundleno = 621 (0x26d), region = 163  ;;  %s2813_s5 = smov (!%p1638_p8), %s2493_s20 }
 0x259   : > { %s2814_s29 = smov (!%p1638_p8), %s2406_s12  ;;  %s2515_s27 = smov (!%p1638_p8), 0  }
 0x25a   : > { %s2517_s6 = smov (!%p1638_p8), 0  }
 0x25f LB: >> { %v982_v43 = vld [vmem:[%s2155_s29] sm:$0xff]  ;;  %v984_v44 = vld [vmem:[%s2155_s29 + $0x8] sm:$0xff]  ;;  %v986_v45 = vld [vmem:[%s2155_s29 + $0x10] sm:$0xff]  ;;  %s1110_s23 = sadd.s32 1, %s2159_s27  ;;  %s976_s6 = sadd.s32 1, %s2163_s6   ;;  %s2163_s6 = sphi %s2517_s6, %s976_s6   ;;  %s2159_s27 = sphi %s2515_s27, %s2815_s27   ;;  %s2155_s29 = sphi %s2814_s29, %s1115_s29   ;;  %s2151_s5 = sphi %s2813_s5, %s1116_s5  }
 0x260   : >> { %983 = vst [vmem:[%s2151_s5] sm:$0xff] %v982_v43  ;;  %985 = vst [vmem:[%s2151_s5 + $0x8] sm:$0xff] %v984_v44  ;;  %v1016_v46 = vld [vmem:[%s2155_s29 + $0x18] sm:$0xff]  ;;  %v1018_v47 = vld [vmem:[%s2155_s29 + $0x20] sm:$0xff]  ;;  %p1111_p10 = scmp.ge.s32.totalorder %s1110_s23, %s2506_s4  ;;  %p975_p0 = scmp.ge.s32.totalorder %s976_s6, %s2506_s4 }
 0x261   : >> { %987 = vst [vmem:[%s2151_s5 + $0x10] sm:$0xff] %v986_v45  ;;  %1015 = vst [vmem:[%s2151_s5 + $0x18] sm:$0xff] %v986_v45  ;;  %v1048_v48 = vld [vmem:[%s2155_s29 + $0x28] sm:$0xff]  ;;  %v1050_v49 = vld [vmem:[%s2155_s29 + $0x30] sm:$0xff] }
 0x262   : >> { %1017 = vst [vmem:[%s2151_s5 + $0x20] sm:$0xff] %v1016_v46  ;;  %1019 = vst [vmem:[%s2151_s5 + $0x28] sm:$0xff] %v1018_v47  ;;  %v1080_v50 = vld [vmem:[%s2155_s29 + $0x38] sm:$0xff]  ;;  %v1082_v51 = vld [vmem:[%s2155_s29 + $0x40] sm:$0xff]  ;;  %s2837_s23 = smov (%p1111_p10, %s1110_s23), 0 }
 0x263   : >> { %1047 = vst [vmem:[%s2151_s5 + $0x30] sm:$0xff] %v1018_v47  ;;  %1049 = vst [vmem:[%s2151_s5 + $0x38] sm:$0xff] %v1048_v48  ;;  %v1084_v52 = vld [vmem:[%s2155_s29 + $0x48] sm:$0xff]  ;;  %v1086_v53 = vld [vmem:[%s2155_s29 + $0x50] sm:$0xff]  ;;  %s1639_s30 = sshll.u32 %s2837_s23, 7  ;;  %s2815_s27 = smov %s2837_s23 }
 0x264   : >> { %1051 = vst [vmem:[%s2151_s5 + $0x40] sm:$0xff] %v1050_v49  ;;  %1079 = vst [vmem:[%s2151_s5 + $0x48] sm:$0xff] %v1050_v49  ;;  %v1088_v54 = vld [vmem:[%s2155_s29 + $0x58] sm:$0xff]  ;;  %v1090_v55 = vld [vmem:[%s2155_s29 + $0x60] sm:$0xff] }
 0x265   : >> { %1081 = vst [vmem:[%s2151_s5 + $0x50] sm:$0xff] %v1080_v50  ;;  %1083 = vst [vmem:[%s2151_s5 + $0x58] sm:$0xff] %v1082_v51  ;;  %v1092_v56 = vld [vmem:[%s2155_s29 + $0x68] sm:$0xff]  ;;  %v1094_v57 = vld [vmem:[%s2155_s29 + $0x70] sm:$0xff] }
 0x266   : >> { %1085 = vst [vmem:[%s2151_s5 + $0x60] sm:$0xff] %v1084_v52  ;;  %1087 = vst [vmem:[%s2151_s5 + $0x68] sm:$0xff] %v1086_v53  ;;  %v1096_v58 = vld [vmem:[%s2155_s29 + $0x78] sm:$0xff]  ;;  %v1098_v59 = vld [vmem:[%s2155_s29 + $0x80] sm:$0xff]  ;;  %978 = sbr.rel (!%p975_p0) target bundleno = 607 (0x25f), region = 169 }
 0x267   : >> { %1089 = vst [vmem:[%s2151_s5 + $0x70] sm:$0xff] %v1088_v54  ;;  %1091 = vst [vmem:[%s2151_s5 + $0x78] sm:$0xff] %v1090_v55  ;;  %v1100_v60 = vld [vmem:[%s2155_s29 + $0x88] sm:$0xff]  ;;  %v1102_v61 = vld [vmem:[%s2155_s29 + $0x90] sm:$0xff] }
 0x268   : >> { %1093 = vst [vmem:[%s2151_s5 + $0x80] sm:$0xff] %v1092_v56  ;;  %1095 = vst [vmem:[%s2151_s5 + $0x88] sm:$0xff] %v1094_v57  ;;  %v1104_v62 = vld [vmem:[%s2155_s29 + $0x98] sm:$0xff]  ;;  %v1106_v63 = vld [vmem:[%s2155_s29 + $0xa0] sm:$0xff] }
 0x269   : >> { %1097 = vst [vmem:[%s2151_s5 + $0x90] sm:$0xff] %v1096_v58  ;;  %1099 = vst [vmem:[%s2151_s5 + $0x98] sm:$0xff] %v1098_v59  ;;  %v1108_v0 = vld [vmem:[%s2155_s29 + $0xa8] sm:$0xff]  ;;  %s1115_s29 = scalar_lea.vmem %s2406_s12, %s1639_s30 [#allocation7]  }
 0x26a   : >> { %1101 = vst [vmem:[%s2151_s5 + $0xa0] sm:$0xff] %v1100_v60  ;;  %1103 = vst [vmem:[%s2151_s5 + $0xa8] sm:$0xff] %v1102_v61 }
 0x26b   : >> { %1105 = vst [vmem:[%s2151_s5 + $0xb0] sm:$0xff] %v1104_v62  ;;  %1107 = vst [vmem:[%s2151_s5 + $0xb8] sm:$0xff] %v1106_v63 }
 0x26c   : >> { %1109 = vst [vmem:[%s2151_s5 + $0xc0] sm:$0xff] %v1108_v0  ;;  %s1116_s5 = scalar_lea.vmem %s2493_s20, %s1639_s30  }
 0x26d PF: > { %s2594_s7 = sand.u32 15, %s969_s15   ;;  %s1671_s11 = sshll.u32 %s2506_s4, 11 }
 0x26e   : > { %s1121_s24 = sshra.s32 %s1671_s11, 4  ;;  %p1644_p12 = scmp.le.s32.totalorder %s2594_s7, 0 }
 0x26f   : > { %s2598_s18 = scalar_lea.vmem %s2406_s12, %s1121_s24 [#allocation7]   ;;  %s2601_s8 = scalar_lea.vmem %s2493_s20, %s1121_s24  }
 0x270   : > { %1455 = sbr.rel (%p1644_p12) target bundleno = 641 (0x281), region = 174  ;;  %s2816_s21 = smov (!%p1644_p12), %s2601_s8 }
 0x271   : > { %s2817_s9 = smov (!%p1644_p12), %s2598_s18  ;;  %s2610_s10 = smov (!%p1644_p12), 0  }
 0x272   : > { %s2177_s22 = smov (!%p1644_p12), 0  }
 0x277 LB: >> { %v1137_v1 = vld [vmem:[%s2171_s9] sm:$0xff]  ;;  %v1139_v2 = vld [vmem:[%s2171_s9 + $0x10] sm:$0xff]  ;;  %s1145_s15 = sadd.s32 1, %s2175_s10  ;;  %s1131_s22 = sadd.s32 1, %s2179_s22   ;;  %s2179_s22 = sphi %s2177_s22, %s1131_s22   ;;  %s2175_s10 = sphi %s2610_s10, %s2818_s10   ;;  %s2171_s9 = sphi %s2817_s9, %s1150_s9   ;;  %s2167_s21 = sphi %s2816_s21, %s1151_s21  }
 0x278   : >> { %v1141_v3 = vld [vmem:[%s2171_s9 + $0x20] sm:$0xff]  ;;  %1138 = vst [vmem:[%s2167_s21] sm:$0xff] %v1137_v1  ;;  %1140 = vst [vmem:[%s2167_s21 + $0x18] sm:$0xff] %v1139_v2  ;;  %v1143_v4 = vld [vmem:[%s2171_s9 + $0x30] sm:$0xff]  ;;  %p1146_p2 = scmp.ge.s32.totalorder %s1145_s15, %s2594_s7  ;;  %p1130_p6 = scmp.ge.s32.totalorder %s1131_s22, %s2594_s7 }
 0x279   : >> { %1142 = vst [vmem:[%s2167_s21 + $0x30] sm:$0xff] %v1141_v3  ;;  %1144 = vst [vmem:[%s2167_s21 + $0x48] sm:$0xff] %v1143_v4 }
 0x27a   : >> { %s2839_s15 = smov (%p1146_p2, %s1145_s15), 0  ;;  %1133 = sbr.rel (!%p1130_p6) target bundleno = 631 (0x277), region = 180 }
 0x27b   : >> { %s1645_s4 = sshll.u32 %s2839_s15, 3  ;;  %s2818_s10 = smov %s2839_s15 }
 0x27c   : >> { %s1150_s9 = scalar_lea.vmem %s2598_s18, %s1645_s4 [#allocation7]   ;;  %s1151_s21 = scalar_lea.vmem %s2601_s8, %s1645_s4  }
 0x281 PF: > { %1154 = sbr.rel (%p965_p4) target bundleno = 695 (0x2b7), region = 89  ;;  %s1156_s5 = ssub.s32 (!%p965_p4), %s2495_s28, %s2499_s26 }
 0x282   : > { %s1160_s29 = sshrl.u32 (!%p965_p4), %s2495_s28, 3  ;;  %s2631_s27 = scalar_lea.vmem (!%p965_p4), %s2406_s12, %s1156_s5 [#allocation7] }
 0x283   : > { %s2634_s6 = scalar_lea.vmem (!%p965_p4), %s2493_s20, %s1156_s5  ;;  %s2638_s23 = sshrl.u32 (!%p965_p4), %s1160_s29, 4 }
 0x284   : > { %p1647_p5 = scmp.le.s32.totalorder (!%p965_p4), %s2638_s23, 0 }
 0x288   : > { %1469 = sbr.rel (%p1647_p5) target bundleno = 669 (0x29d), region = 185  ;;  %s2819_s30 = smov (!%p1647_p5), %s2493_s20 }
 0x289   : > { %s2820_s7 = smov (!%p1647_p5), %s2406_s12  ;;  %s2647_s11 = smov (!%p1647_p5), 0  }
 0x28a   : > { %s2649_s24 = smov (!%p1647_p5), 0  }
 0x28f LB: >> { %v1173_v5 = vld [vmem:[%s2187_s7] sm:$0xff]  ;;  %v1175_v6 = vld [vmem:[%s2187_s7 + $0x8] sm:$0xff]  ;;  %v1177_v7 = vld [vmem:[%s2187_s7 + $0x10] sm:$0xff]  ;;  %s1301_s18 = sadd.s32 1, %s2191_s11  ;;  %s1167_s24 = sadd.s32 1, %s2195_s24   ;;  %s2195_s24 = sphi %s2649_s24, %s1167_s24   ;;  %s2191_s11 = sphi %s2647_s11, %s2821_s11   ;;  %s2187_s7 = sphi %s2820_s7, %s1306_s7   ;;  %s2183_s30 = sphi %s2819_s30, %s1307_s30  }
 0x290   : >> { %1174 = vst [vmem:[%s2183_s30] sm:$0xff] %v1173_v5  ;;  %1176 = vst [vmem:[%s2183_s30 + $0x8] sm:$0xff] %v1175_v6  ;;  %v1207_v8 = vld [vmem:[%s2187_s7 + $0x18] sm:$0xff]  ;;  %v1209_v9 = vld [vmem:[%s2187_s7 + $0x20] sm:$0xff]  ;;  %p1302_p7 = scmp.ge.s32.totalorder %s1301_s18, %s2638_s23  ;;  %p1166_p9 = scmp.ge.s32.totalorder %s1167_s24, %s2638_s23 }
 0x291   : >> { %1178 = vst [vmem:[%s2183_s30 + $0x10] sm:$0xff] %v1177_v7  ;;  %1206 = vst [vmem:[%s2183_s30 + $0x18] sm:$0xff] %v1177_v7  ;;  %v1239_v10 = vld [vmem:[%s2187_s7 + $0x28] sm:$0xff]  ;;  %v1241_v11 = vld [vmem:[%s2187_s7 + $0x30] sm:$0xff] }
 0x292   : >> { %1208 = vst [vmem:[%s2183_s30 + $0x20] sm:$0xff] %v1207_v8  ;;  %1210 = vst [vmem:[%s2183_s30 + $0x28] sm:$0xff] %v1209_v9  ;;  %v1271_v12 = vld [vmem:[%s2187_s7 + $0x38] sm:$0xff]  ;;  %v1273_v13 = vld [vmem:[%s2187_s7 + $0x40] sm:$0xff]  ;;  %s2841_s18 = smov (%p1302_p7, %s1301_s18), 0 }
 0x293   : >> { %1238 = vst [vmem:[%s2183_s30 + $0x30] sm:$0xff] %v1209_v9  ;;  %1240 = vst [vmem:[%s2183_s30 + $0x38] sm:$0xff] %v1239_v10  ;;  %v1275_v14 = vld [vmem:[%s2187_s7 + $0x48] sm:$0xff]  ;;  %v1277_v15 = vld [vmem:[%s2187_s7 + $0x50] sm:$0xff]  ;;  %s1648_s8 = sshll.u32 %s2841_s18, 7  ;;  %s2821_s11 = smov %s2841_s18 }
 0x294   : >> { %1242 = vst [vmem:[%s2183_s30 + $0x40] sm:$0xff] %v1241_v11  ;;  %1270 = vst [vmem:[%s2183_s30 + $0x48] sm:$0xff] %v1241_v11  ;;  %v1279_v16 = vld [vmem:[%s2187_s7 + $0x58] sm:$0xff]  ;;  %v1281_v17 = vld [vmem:[%s2187_s7 + $0x60] sm:$0xff] }
 0x295   : >> { %1272 = vst [vmem:[%s2183_s30 + $0x50] sm:$0xff] %v1271_v12  ;;  %1274 = vst [vmem:[%s2183_s30 + $0x58] sm:$0xff] %v1273_v13  ;;  %v1283_v18 = vld [vmem:[%s2187_s7 + $0x68] sm:$0xff]  ;;  %v1285_v19 = vld [vmem:[%s2187_s7 + $0x70] sm:$0xff] }
 0x296   : >> { %1276 = vst [vmem:[%s2183_s30 + $0x60] sm:$0xff] %v1275_v14  ;;  %1278 = vst [vmem:[%s2183_s30 + $0x68] sm:$0xff] %v1277_v15  ;;  %v1287_v20 = vld [vmem:[%s2187_s7 + $0x78] sm:$0xff]  ;;  %v1289_v21 = vld [vmem:[%s2187_s7 + $0x80] sm:$0xff]  ;;  %1169 = sbr.rel (!%p1166_p9) target bundleno = 655 (0x28f), region = 191 }
 0x297   : >> { %1280 = vst [vmem:[%s2183_s30 + $0x70] sm:$0xff] %v1279_v16  ;;  %1282 = vst [vmem:[%s2183_s30 + $0x78] sm:$0xff] %v1281_v17  ;;  %v1291_v22 = vld [vmem:[%s2187_s7 + $0x88] sm:$0xff]  ;;  %v1293_v23 = vld [vmem:[%s2187_s7 + $0x90] sm:$0xff] }
 0x298   : >> { %1284 = vst [vmem:[%s2183_s30 + $0x80] sm:$0xff] %v1283_v18  ;;  %1286 = vst [vmem:[%s2183_s30 + $0x88] sm:$0xff] %v1285_v19  ;;  %v1295_v24 = vld [vmem:[%s2187_s7 + $0x98] sm:$0xff]  ;;  %v1297_v25 = vld [vmem:[%s2187_s7 + $0xa0] sm:$0xff] }
 0x299   : >> { %1288 = vst [vmem:[%s2183_s30 + $0x90] sm:$0xff] %v1287_v20  ;;  %1290 = vst [vmem:[%s2183_s30 + $0x98] sm:$0xff] %v1289_v21  ;;  %v1299_v26 = vld [vmem:[%s2187_s7 + $0xa8] sm:$0xff]  ;;  %s1306_s7 = scalar_lea.vmem %s2406_s12, %s1648_s8 [#allocation7]  }
 0x29a   : >> { %1292 = vst [vmem:[%s2183_s30 + $0xa0] sm:$0xff] %v1291_v22  ;;  %1294 = vst [vmem:[%s2183_s30 + $0xa8] sm:$0xff] %v1293_v23 }
 0x29b   : >> { %1296 = vst [vmem:[%s2183_s30 + $0xb0] sm:$0xff] %v1295_v24  ;;  %1298 = vst [vmem:[%s2183_s30 + $0xb8] sm:$0xff] %v1297_v25 }
 0x29c   : >> { %1300 = vst [vmem:[%s2183_s30 + $0xc0] sm:$0xff] %v1299_v26  ;;  %s1307_s30 = scalar_lea.vmem %s2493_s20, %s1648_s8  }
 0x29d PF: > { %s2726_s21 = sand.u32 15, %s1160_s29   ;;  %s1673_s9 = sshll.u32 %s2638_s23, 11 }
 0x29e   : > { %s1312_s10 = sshra.s32 %s1673_s9, 4  ;;  %p1653_p11 = scmp.le.s32.totalorder %s2726_s21, 0 }
 0x29f   : > { %s2730_s22 = scalar_lea.vmem %s2406_s12, %s1312_s10 [#allocation7]   ;;  %s2733_s15 = scalar_lea.vmem %s2493_s20, %s1312_s10  }
 0x2a0   : > { %1483 = sbr.rel (%p1653_p11) target bundleno = 689 (0x2b1), region = 196  ;;  %s2822_s4 = smov (!%p1653_p11), %s2733_s15 }
 0x2a1   : > { %s2823_s5 = smov (!%p1653_p11), %s2730_s22  ;;  %s2742_s30 = smov (!%p1653_p11), 0  }
 0x2a2   : > { %s2209_s7 = smov (!%p1653_p11), 0  }
 0x2a7 LB: >> { %v1328_v27 = vld [vmem:[%s2203_s5] sm:$0xff]  ;;  %v1330_v28 = vld [vmem:[%s2203_s5 + $0x10] sm:$0xff]  ;;  %s1336_s29 = sadd.s32 1, %s2207_s30  ;;  %s1322_s7 = sadd.s32 1, %s2211_s7   ;;  %s2211_s7 = sphi %s2209_s7, %s1322_s7   ;;  %s2207_s30 = sphi %s2742_s30, %s2824_s30   ;;  %s2203_s5 = sphi %s2823_s5, %s1341_s5   ;;  %s2199_s4 = sphi %s2822_s4, %s1342_s4  }
 0x2a8   : >> { %v1332_v29 = vld [vmem:[%s2203_s5 + $0x20] sm:$0xff]  ;;  %1329 = vst [vmem:[%s2199_s4] sm:$0xff] %v1328_v27  ;;  %1331 = vst [vmem:[%s2199_s4 + $0x18] sm:$0xff] %v1330_v28  ;;  %v1334_v30 = vld [vmem:[%s2203_s5 + $0x30] sm:$0xff]  ;;  %p1337_p13 = scmp.ge.s32.totalorder %s1336_s29, %s2726_s21  ;;  %p1321_p1 = scmp.ge.s32.totalorder %s1322_s7, %s2726_s21 }
 0x2a9   : >> { %1333 = vst [vmem:[%s2199_s4 + $0x30] sm:$0xff] %v1332_v29  ;;  %1335 = vst [vmem:[%s2199_s4 + $0x48] sm:$0xff] %v1334_v30 }
 0x2aa   : >> { %s2843_s29 = smov (%p1337_p13, %s1336_s29), 0  ;;  %1324 = sbr.rel (!%p1321_p1) target bundleno = 679 (0x2a7), region = 202 }
 0x2ab   : >> { %s1654_s23 = sshll.u32 %s2843_s29, 3  ;;  %s2824_s30 = smov %s2843_s29 }
 0x2ac   : >> { %s1341_s5 = scalar_lea.vmem %s2730_s22, %s1654_s23 [#allocation7]   ;;  %s1342_s4 = scalar_lea.vmem %s2733_s15, %s1654_s23  }
 0x2b1 PF: > { %s2219_s11 = smov 0  }
 0x2b2   : > { %s1343_s24 = sshllo.u32 %s2219_s11, %s2499_s26 }
 0x2b3   : > { %v1352_v31 = vld [vmem:[%s2631_s27] sm:%s1343_s24]  ;;  %v1354_v32 = vld [vmem:[%s2631_s27 + $0x10] sm:%s1343_s24] }
 0x2b4   : > { %1353 = vst [vmem:[%s2634_s6] sm:%s1343_s24] %v1352_v31  ;;  %1355 = vst [vmem:[%s2634_s6 + $0x18] sm:%s1343_s24] %v1354_v32 }
 0x2b5   : > { %v1356_v33 = vld [vmem:[%s2631_s27 + $0x20] sm:%s1343_s24]  ;;  %v1358_v34 = vld [vmem:[%s2631_s27 + $0x30] sm:%s1343_s24] }
 0x2b6   : > { %1357 = vst [vmem:[%s2634_s6 + $0x30] sm:%s1343_s24] %v1356_v33  ;;  %1359 = vst [vmem:[%s2634_s6 + $0x48] sm:%s1343_s24] %v1358_v34 }
 0x2b7 PF: > { %p1656_p4 = scmp.ge.u32.totalorder %s2495_s28, 8 }
 0x2b8   : > { %s2220_s18 = smov (!%p1656_p4), 0  }
 0x2b9   : > { %946 = sbr.rel (%p1656_p4) target bundleno = 704 (0x2c0), region = 60  ;;  %s947_s26 = sshllo.u32 (!%p1656_p4), %s2220_s18, %s2495_s28 }
 0x2ba   : > { %v956_v35 = vld [vmem:[%s2406_s12] sm:%s947_s26] (!%p1656_p4)  ;;  %v958_v36 = vld [vmem:[%s2406_s12 + $0x10] sm:%s947_s26] (!%p1656_p4) }
 0x2bb   : > { %957 = vst [vmem:[%s2493_s20] sm:%s947_s26] (!%p1656_p4), %v956_v35  ;;  %959 = vst [vmem:[%s2493_s20 + $0x18] sm:%s947_s26] (!%p1656_p4), %v958_v36 }
 0x2bc   : > { %v960_v37 = vld [vmem:[%s2406_s12 + $0x20] sm:%s947_s26] (!%p1656_p4)  ;;  %v962_v38 = vld [vmem:[%s2406_s12 + $0x30] sm:%s947_s26] (!%p1656_p4) }
 0x2bd   : > { %961 = vst [vmem:[%s2493_s20 + $0x30] sm:%s947_s26] (!%p1656_p4), %v960_v37  ;;  %963 = vst [vmem:[%s2493_s20 + $0x48] sm:%s947_s26] (!%p1656_p4), %v962_v38 }
 0x2c0 PF: > { %s17_s17 = sadd.s32 1, %s2147_s17   ;;  %s2825_s12 = smov %s2131_s13 }
 0x2c1   : > { %p14_p3 = scmp.ge.s32.totalorder %s17_s17, 4   ;;  %s2826_s13 = smov %s2135_s14 }
 0x2c2   : > { %s2827_s14 = smov %s2296_s25  ;;  %s2828_s15 = smov %s2143_s16 }
 0x2c3   : > { %s2829_s16 = smov %s2831_s19  ;;  %16 = sbr.rel (!%p14_p3) target bundleno = 5 (0x5), region = 213 }
 0x2ca   :  { %1373 = vsyncpa [#allocation4], 1 }
 0x2cb   :  { %1375 = vsyncpa [#allocation4 + $0x1], 1 }
 0x2cc   :  { %1376 = vsyncpa [#allocation6], 1 }
 0x2cd   :  { %1378 = vsyncpa [#allocation6 + $0x1], 1 }

// kernel: transformer_block.8
= control target key start
LH: loop header
LB: loop body
LE: loop exit
PB: predicated region body
PF: predicated region fallthrough
CT: control target
= control target key end

     0   :  { %s1641_s12 = smov 0   ;;  %s1643_s13 = smov 0   ;;  %s2036_s0 = inlined_call_operand.vmem [shape: bf16[32,256], index: 0, kind: input, shape index: {}]   ;;  %s2037_s1 = inlined_call_operand.vmem [shape: bf16[256,1024], index: 1, kind: input, shape index: {}]   ;;  %s2038_s2 = inlined_call_operand.vmem [shape: f32[1,1024], index: 2, kind: input, shape index: {}]   ;;  %s2039_s3 = inlined_call_operand.vmem [shape: bf16[32,1024], index: 3, kind: output, shape index: {}]  }
   0x1   :  { %s1645_s14 = smov 0   ;;  %s1647_s15 = smov 0  }
   0x2   :  { %s1649_s16 = smov 0  }
   0x3 LB: > { %s22_s17 = sadd.s32 1, %s1615_s15  ;;  %s1257_s18 = sadd.s32 4294967295, %s1619_s16   ;;  %s1619_s16 = sphi %s1649_s16, %s13_s16   ;;  %s1615_s15 = sphi %s1647_s15, %s2044_s15   ;;  %s1611_s14 = sphi %s1645_s14, %s2043_s14   ;;  %s1607_s13 = sphi %s1643_s13, %s2042_s13   ;;  %s1603_s12 = sphi %s1641_s12, %s2041_s12  }
   0x4   : > { %p23_p0 = scmp.ge.s32.totalorder %s22_s17, 2  ;;  %p65_p1 = scmp.ne.s32.totalorder %s1607_s13, %s1603_s12 }
   0x5   : > { %p66_p2 = scmp.eq.s32.totalorder %s1619_s16, 0  ;;  %p123_p4 = scmp.eq.s32.totalorder %s1257_s18, 1 }
   0x6   : > { %s2046_s17 = smov (%p23_p0, %s22_s17), 0  ;;  %s58_s20 = sadd.s32 1, %s1607_s13 }
   0x7   : > { %p67_p3 = por %p66_p2, %p65_p1  ;;  %s55_s19 = ssub.s32 %s1615_s15, %s2046_s17 }
   0x8   : > { %p56_p5 = scmp.eq.s32.totalorder %s55_s19, 0  ;;  %p1676_p6 = por %p123_p4, %p65_p1 }
   0x9   : > { %p1261_p7 = scmp.ge.s32.totalorder %s1619_s16, 2 }
   0xa   : > { %s1681_s22 = scalar_select %p56_p5, %s1607_s13, %s58_s20  }
   0xb   : > { %155 = sbr.rel (%p1261_p7) target bundleno = 54 (0x36), region = 20 }
  0x12   : > { %158 = sbr.rel (!%p67_p3) target bundleno = 54 (0x36), region = 24  ;;  %s160_s23 = sand.u32 (%p67_p3), 1, %s1607_s13  }
  0x13   : > { %s1363_s24 = sshll.u32 (%p67_p3), %s1615_s15, 4  ;;  %s1262_s25 = sshll.u32 (%p67_p3), %s160_s23, 9 }
  0x14   : > { %s1689_s28 = scalar_lea.vmem (%p67_p3), %s2037_s1, %s1363_s24  ;;  %s1694_s29 = scalar_lea.vmem (%p67_p3), [#allocation3], %s1262_s25 }
  0x15   : > { %v178_v0 = vld [vmem:[%s1689_s28] sm:$0xff] (%p67_p3)  ;;  %v180_v1 = vld [vmem:[%s1689_s28 + $0x8] sm:$0xff] (%p67_p3) }
  0x16   : > { %v182_v2 = vld [vmem:[%s1689_s28 + $0x20] sm:$0xff] (%p67_p3)  ;;  %179 = vst [vmem:[%s1694_s29] sm:$0xff] (%p67_p3), %v178_v0  ;;  %181 = vst [vmem:[%s1694_s29 + $0x8] sm:$0xff] (%p67_p3), %v180_v1  ;;  %v184_v3 = vld [vmem:[%s1689_s28 + $0x28] sm:$0xff] (%p67_p3) }
  0x17   : > { %183 = vst [vmem:[%s1694_s29 + $0x10] sm:$0xff] (%p67_p3), %v182_v2  ;;  %v186_v4 = vld [vmem:[%s1689_s28 + $0x40] sm:$0xff] (%p67_p3)  ;;  %v188_v5 = vld [vmem:[%s1689_s28 + $0x48] sm:$0xff] (%p67_p3)  ;;  %185 = vst [vmem:[%s1694_s29 + $0x18] sm:$0xff] (%p67_p3), %v184_v3 }
  0x18   : > { %187 = vst [vmem:[%s1694_s29 + $0x20] sm:$0xff] (%p67_p3), %v186_v4  ;;  %189 = vst [vmem:[%s1694_s29 + $0x28] sm:$0xff] (%p67_p3), %v188_v5  ;;  %v190_v6 = vld [vmem:[%s1689_s28 + $0x60] sm:$0xff] (%p67_p3)  ;;  %v192_v7 = vld [vmem:[%s1689_s28 + $0x68] sm:$0xff] (%p67_p3) }
  0x19   : > { %v194_v8 = vld [vmem:[%s1689_s28 + $0x80] sm:$0xff]  ;;  %191 = vst [vmem:[%s1694_s29 + $0x30] sm:$0xff] %v190_v6  ;;  %193 = vst [vmem:[%s1694_s29 + $0x38] sm:$0xff] %v192_v7  ;;  %v196_v9 = vld [vmem:[%s1689_s28 + $0x88] sm:$0xff] }
  0x1a   : > { %195 = vst [vmem:[%s1694_s29 + $0x40] sm:$0xff] %v194_v8  ;;  %v198_v10 = vld [vmem:[%s1689_s28 + $0xa0] sm:$0xff]  ;;  %v200_v11 = vld [vmem:[%s1689_s28 + $0xa8] sm:$0xff]  ;;  %197 = vst [vmem:[%s1694_s29 + $0x48] sm:$0xff] %v196_v9 }
  0x1b   : > { %199 = vst [vmem:[%s1694_s29 + $0x50] sm:$0xff] %v198_v10  ;;  %201 = vst [vmem:[%s1694_s29 + $0x58] sm:$0xff] %v200_v11  ;;  %v202_v12 = vld [vmem:[%s1689_s28 + $0xc0] sm:$0xff]  ;;  %v204_v13 = vld [vmem:[%s1689_s28 + $0xc8] sm:$0xff] }
  0x1c   : > { %v206_v14 = vld [vmem:[%s1689_s28 + $0xe0] sm:$0xff]  ;;  %203 = vst [vmem:[%s1694_s29 + $0x60] sm:$0xff] %v202_v12  ;;  %205 = vst [vmem:[%s1694_s29 + $0x68] sm:$0xff] %v204_v13  ;;  %v208_v15 = vld [vmem:[%s1689_s28 + $0xe8] sm:$0xff] }
  0x1d   : > { %207 = vst [vmem:[%s1694_s29 + $0x70] sm:$0xff] %v206_v14  ;;  %v210_v16 = vld [vmem:[%s1689_s28 + $0x100] sm:$0xff]  ;;  %v212_v17 = vld [vmem:[%s1689_s28 + $0x108] sm:$0xff]  ;;  %209 = vst [vmem:[%s1694_s29 + $0x78] sm:$0xff] %v208_v15 }
  0x1e   : > { %211 = vst [vmem:[%s1694_s29 + $0x80] sm:$0xff] %v210_v16  ;;  %213 = vst [vmem:[%s1694_s29 + $0x88] sm:$0xff] %v212_v17  ;;  %v214_v18 = vld [vmem:[%s1689_s28 + $0x120] sm:$0xff]  ;;  %v216_v19 = vld [vmem:[%s1689_s28 + $0x128] sm:$0xff] }
  0x1f   : > { %v218_v20 = vld [vmem:[%s1689_s28 + $0x140] sm:$0xff]  ;;  %215 = vst [vmem:[%s1694_s29 + $0x90] sm:$0xff] %v214_v18  ;;  %217 = vst [vmem:[%s1694_s29 + $0x98] sm:$0xff] %v216_v19  ;;  %v220_v21 = vld [vmem:[%s1689_s28 + $0x148] sm:$0xff] }
  0x20   : > { %219 = vst [vmem:[%s1694_s29 + $0xa0] sm:$0xff] %v218_v20  ;;  %v222_v22 = vld [vmem:[%s1689_s28 + $0x160] sm:$0xff]  ;;  %v224_v23 = vld [vmem:[%s1689_s28 + $0x168] sm:$0xff]  ;;  %221 = vst [vmem:[%s1694_s29 + $0xa8] sm:$0xff] %v220_v21 }
  0x21   : > { %223 = vst [vmem:[%s1694_s29 + $0xb0] sm:$0xff] %v222_v22  ;;  %225 = vst [vmem:[%s1694_s29 + $0xb8] sm:$0xff] %v224_v23  ;;  %v226_v24 = vld [vmem:[%s1689_s28 + $0x180] sm:$0xff]  ;;  %v228_v25 = vld [vmem:[%s1689_s28 + $0x188] sm:$0xff] }
  0x22   : > { %v230_v26 = vld [vmem:[%s1689_s28 + $0x1a0] sm:$0xff]  ;;  %227 = vst [vmem:[%s1694_s29 + $0xc0] sm:$0xff] %v226_v24  ;;  %229 = vst [vmem:[%s1694_s29 + $0xc8] sm:$0xff] %v228_v25  ;;  %v232_v27 = vld [vmem:[%s1689_s28 + $0x1a8] sm:$0xff] }
  0x23   : > { %231 = vst [vmem:[%s1694_s29 + $0xd0] sm:$0xff] %v230_v26  ;;  %v234_v28 = vld [vmem:[%s1689_s28 + $0x1c0] sm:$0xff]  ;;  %v236_v29 = vld [vmem:[%s1689_s28 + $0x1c8] sm:$0xff]  ;;  %233 = vst [vmem:[%s1694_s29 + $0xd8] sm:$0xff] %v232_v27 }
  0x24   : > { %235 = vst [vmem:[%s1694_s29 + $0xe0] sm:$0xff] %v234_v28  ;;  %237 = vst [vmem:[%s1694_s29 + $0xe8] sm:$0xff] %v236_v29  ;;  %v238_v30 = vld [vmem:[%s1689_s28 + $0x1e0] sm:$0xff]  ;;  %v240_v31 = vld [vmem:[%s1689_s28 + $0x1e8] sm:$0xff] }
  0x25   : > { %v242_v32 = vld [vmem:[%s1689_s28 + $0x200] sm:$0xff]  ;;  %239 = vst [vmem:[%s1694_s29 + $0xf0] sm:$0xff] %v238_v30  ;;  %241 = vst [vmem:[%s1694_s29 + $0xf8] sm:$0xff] %v240_v31  ;;  %v244_v33 = vld [vmem:[%s1689_s28 + $0x208] sm:$0xff] }
  0x26   : > { %243 = vst [vmem:[%s1694_s29 + $0x100] sm:$0xff] %v242_v32  ;;  %v246_v34 = vld [vmem:[%s1689_s28 + $0x220] sm:$0xff]  ;;  %v248_v35 = vld [vmem:[%s1689_s28 + $0x228] sm:$0xff]  ;;  %245 = vst [vmem:[%s1694_s29 + $0x108] sm:$0xff] %v244_v33 }
  0x27   : > { %247 = vst [vmem:[%s1694_s29 + $0x110] sm:$0xff] %v246_v34  ;;  %249 = vst [vmem:[%s1694_s29 + $0x118] sm:$0xff] %v248_v35  ;;  %v250_v36 = vld [vmem:[%s1689_s28 + $0x240] sm:$0xff]  ;;  %v252_v37 = vld [vmem:[%s1689_s28 + $0x248] sm:$0xff] }
  0x28   : > { %v254_v38 = vld [vmem:[%s1689_s28 + $0x260] sm:$0xff]  ;;  %251 = vst [vmem:[%s1694_s29 + $0x120] sm:$0xff] %v250_v36  ;;  %253 = vst [vmem:[%s1694_s29 + $0x128] sm:$0xff] %v252_v37  ;;  %v256_v39 = vld [vmem:[%s1689_s28 + $0x268] sm:$0xff] }
  0x29   : > { %255 = vst [vmem:[%s1694_s29 + $0x130] sm:$0xff] %v254_v38  ;;  %v258_v40 = vld [vmem:[%s1689_s28 + $0x280] sm:$0xff]  ;;  %v260_v41 = vld [vmem:[%s1689_s28 + $0x288] sm:$0xff]  ;;  %257 = vst [vmem:[%s1694_s29 + $0x138] sm:$0xff] %v256_v39 }
  0x2a   : > { %259 = vst [vmem:[%s1694_s29 + $0x140] sm:$0xff] %v258_v40  ;;  %261 = vst [vmem:[%s1694_s29 + $0x148] sm:$0xff] %v260_v41  ;;  %v262_v42 = vld [vmem:[%s1689_s28 + $0x2a0] sm:$0xff]  ;;  %v264_v43 = vld [vmem:[%s1689_s28 + $0x2a8] sm:$0xff] }
  0x2b   : > { %v266_v44 = vld [vmem:[%s1689_s28 + $0x2c0] sm:$0xff]  ;;  %263 = vst [vmem:[%s1694_s29 + $0x150] sm:$0xff] %v262_v42  ;;  %265 = vst [vmem:[%s1694_s29 + $0x158] sm:$0xff] %v264_v43  ;;  %v268_v45 = vld [vmem:[%s1689_s28 + $0x2c8] sm:$0xff] }
  0x2c   : > { %267 = vst [vmem:[%s1694_s29 + $0x160] sm:$0xff] %v266_v44  ;;  %v270_v46 = vld [vmem:[%s1689_s28 + $0x2e0] sm:$0xff]  ;;  %v272_v47 = vld [vmem:[%s1689_s28 + $0x2e8] sm:$0xff]  ;;  %269 = vst [vmem:[%s1694_s29 + $0x168] sm:$0xff] %v268_v45 }
  0x2d   : > { %271 = vst [vmem:[%s1694_s29 + $0x170] sm:$0xff] %v270_v46  ;;  %273 = vst [vmem:[%s1694_s29 + $0x178] sm:$0xff] %v272_v47  ;;  %v274_v48 = vld [vmem:[%s1689_s28 + $0x300] sm:$0xff]  ;;  %v276_v49 = vld [vmem:[%s1689_s28 + $0x308] sm:$0xff] }
  0x2e   : > { %v278_v50 = vld [vmem:[%s1689_s28 + $0x320] sm:$0xff]  ;;  %275 = vst [vmem:[%s1694_s29 + $0x180] sm:$0xff] %v274_v48  ;;  %277 = vst [vmem:[%s1694_s29 + $0x188] sm:$0xff] %v276_v49  ;;  %v280_v51 = vld [vmem:[%s1689_s28 + $0x328] sm:$0xff] }
  0x2f   : > { %279 = vst [vmem:[%s1694_s29 + $0x190] sm:$0xff] %v278_v50  ;;  %v282_v52 = vld [vmem:[%s1689_s28 + $0x340] sm:$0xff]  ;;  %v284_v53 = vld [vmem:[%s1689_s28 + $0x348] sm:$0xff]  ;;  %281 = vst [vmem:[%s1694_s29 + $0x198] sm:$0xff] %v280_v51 }
  0x30   : > { %283 = vst [vmem:[%s1694_s29 + $0x1a0] sm:$0xff] %v282_v52  ;;  %285 = vst [vmem:[%s1694_s29 + $0x1a8] sm:$0xff] %v284_v53  ;;  %v286_v54 = vld [vmem:[%s1689_s28 + $0x360] sm:$0xff]  ;;  %v288_v55 = vld [vmem:[%s1689_s28 + $0x368] sm:$0xff] }
  0x31   : > { %v290_v56 = vld [vmem:[%s1689_s28 + $0x380] sm:$0xff]  ;;  %287 = vst [vmem:[%s1694_s29 + $0x1b0] sm:$0xff] %v286_v54  ;;  %289 = vst [vmem:[%s1694_s29 + $0x1b8] sm:$0xff] %v288_v55  ;;  %v292_v57 = vld [vmem:[%s1689_s28 + $0x388] sm:$0xff] }
  0x32   : > { %291 = vst [vmem:[%s1694_s29 + $0x1c0] sm:$0xff] %v290_v56  ;;  %v294_v58 = vld [vmem:[%s1689_s28 + $0x3a0] sm:$0xff]  ;;  %v296_v59 = vld [vmem:[%s1689_s28 + $0x3a8] sm:$0xff]  ;;  %293 = vst [vmem:[%s1694_s29 + $0x1c8] sm:$0xff] %v292_v57 }
  0x33   : > { %295 = vst [vmem:[%s1694_s29 + $0x1d0] sm:$0xff] %v294_v58  ;;  %297 = vst [vmem:[%s1694_s29 + $0x1d8] sm:$0xff] %v296_v59  ;;  %v298_v60 = vld [vmem:[%s1689_s28 + $0x3c0] sm:$0xff]  ;;  %v300_v61 = vld [vmem:[%s1689_s28 + $0x3c8] sm:$0xff] }
  0x34   : > { %v302_v62 = vld [vmem:[%s1689_s28 + $0x3e0] sm:$0xff]  ;;  %299 = vst [vmem:[%s1694_s29 + $0x1e0] sm:$0xff] %v298_v60  ;;  %301 = vst [vmem:[%s1694_s29 + $0x1e8] sm:$0xff] %v300_v61  ;;  %v304_v63 = vld [vmem:[%s1689_s28 + $0x3e8] sm:$0xff] }
  0x35   : > { %303 = vst [vmem:[%s1694_s29 + $0x1f0] sm:$0xff] %v302_v62  ;;  %305 = vst [vmem:[%s1694_s29 + $0x1f8] sm:$0xff] %v304_v63 }
  0x36 PF: > { %p1265_p8 = scmp.ge.s32.totalorder %s1619_s16, 1  ;;  %p318_p9 = scmp.lt.s32.totalorder %s1619_s16, 3 }
  0x38   : > { %p319_p10 = pnand %p1265_p8, %p318_p9 }
  0x39   : > { %s325_s30 = sand.u32 (!%p319_p10), 1, %s1603_s12   ;;  %s1268_s4 = sshll.u32 (!%p319_p10), %s1611_s14, 2 }
  0x3a   : > { %322 = sbr.rel (%p319_p10) target bundleno = 585 (0x249), region = 51  ;;  %s1266_s5 = sshll.u32 (!%p319_p10), %s325_s30, 9 }
  0x3b   : > { %s1267_s6 = sshll.u32 (!%p319_p10), %s325_s30, 6  ;;  %p366_p11 = scmp.lt.s32.totalorder (!%p319_p10), %s1268_s4, 7 }
  0x3c   : > { %s1831_s10 = scalar_lea.vmem (!%p319_p10), [#allocation3], %s1266_s5  ;;  %s1833_s11 = scalar_lea.vmem (!%p319_p10), [#allocation4], %s1267_s6 }
  0x3d   : > { %p1269_p12 = scmp.ne.s32.totalorder (!%p319_p10), %s1611_s14, 0 }
  0x41   : > { %s2048_s4 = smov (!%p366_p11, %s1268_s4), 7  ;;  %375 = sbr.rel (%p1269_p12) target bundleno = 240 (0xf0), region = 59 }
  0x42   : > { %s368_s9 = scalar_lea.vmem %s2038_s2, %s2048_s4  ;;  %v378_v0 = vld [vmem:[%s2036_s0 + $0x10] sm:$0xff] (!%p1269_p12)  ;;  %v376_v1 = vld [vmem:[%s2036_s0] sm:$0xff] (!%p1269_p12)  ;;  %v379_v2 = vld [vmem:[%s2036_s0 + $0x18] sm:$0xff] (!%p1269_p12) }
  0x43   : > { %v384_v3 = vunpack.c.l.bf16 (!%p1269_p12), %v378_v0  ;;  %v385_v4 = vunpack.c.h.bf16 (!%p1269_p12), %v378_v0  ;;  %v380_v5 = vunpack.c.l.bf16 (!%p1269_p12), %v376_v1  ;;  %v381_v6 = vunpack.c.h.bf16 (!%p1269_p12), %v376_v1  ;;  %v377_v7 = vld [vmem:[%s2036_s0 + $0x8] sm:$0xff] (!%p1269_p12) }
  0x44   : > { %v386_v8 = vunpack.c.l.bf16 (!%p1269_p12), %v379_v2  ;;  %v387_v9 = vunpack.c.h.bf16 (!%p1269_p12), %v379_v2  ;;  %v382_v10 = vunpack.c.l.bf16 (!%p1269_p12), %v377_v7  ;;  %v383_v11 = vunpack.c.h.bf16 (!%p1269_p12), %v377_v7 }
  0x45   : > { %v392_v12 = vmul.f32 (!%p1269_p12), %v384_v3, %v384_v3  ;;  %v393_v13 = vmul.f32 (!%p1269_p12), %v385_v4, %v385_v4  ;;  %v388_v14 = vmul.f32 (!%p1269_p12), %v380_v5, %v380_v5  ;;  %v389_v15 = vmul.f32 (!%p1269_p12), %v381_v6, %v381_v6 }
  0x46   : > { %v394_v16 = vmul.f32 (!%p1269_p12), %v386_v8, %v386_v8  ;;  %v395_v17 = vmul.f32 (!%p1269_p12), %v387_v9, %v387_v9  ;;  %v390_v18 = vmul.f32 (!%p1269_p12), %v382_v10, %v382_v10  ;;  %v391_v19 = vmul.f32 (!%p1269_p12), %v383_v11, %v383_v11 }
  0x47   : > { %v402_v20 = vadd.f32 (!%p1269_p12), %v393_v13, %v392_v12  ;;  %v396_v21 = vadd.f32 (!%p1269_p12), %v389_v15, %v388_v14 }
  0x48   : > { %v405_v22 = vadd.f32 %v395_v17, %v394_v16  ;;  %v399_v23 = vadd.f32 %v391_v19, %v390_v18 }
  0x49   : > { %403 = vadd.xlane.f32.xlu1 %v402_v20  ;;  %397 = vadd.xlane.f32.xlu0 %v396_v21 }
  0x4d   : > { %406 = vadd.xlane.f32.xlu1 %v405_v22  ;;  %400 = vadd.xlane.f32.xlu0 %v399_v23 }
  0xd6   : > { %v404_v24 = vpop.xlane.xlu1 %403  ;;  %v398_v25 = vpop.xlane.xlu0 %397 }
  0xd7   : > { %v411_v26 = vmul.f32 0.00390625, %v404_v24  ;;  %v409_v27 = vmul.f32 0.00390625, %v398_v25 }
  0xd9   : > { %v415_v28 = vadd.f32 1e-05, %v411_v26  ;;  %v413_v29 = vadd.f32 1e-05, %v409_v27 }
  0xda   : > { %v407_v30 = vpop.xlane.xlu1 %406  ;;  %v401_v31 = vpop.xlane.xlu0 %400 }
  0xdb   : > { %v412_v32 = vmul.f32 0.00390625, %v407_v30  ;;  %v410_v33 = vmul.f32 0.00390625, %v401_v31  ;;  %1413 = vrsqrt.f32 %v415_v28 }
  0xdc   : > { %1415 = vrsqrt.f32 %v413_v29 }
  0xdd   : > { %v416_v34 = vadd.f32 1e-05, %v412_v32  ;;  %v414_v35 = vadd.f32 1e-05, %v410_v33 }
  0xdf   : > { %1417 = vrsqrt.f32 %v416_v34 }
  0xe0   : > { %1419 = vrsqrt.f32 %v414_v35 }
  0xe5   : > { %v1414_v36 = vpop.eup %1413 }
  0xe6   : > { %v1416_v37 = vpop.eup %1415  ;;  %v425_v40 = vmul.f32 %v1414_v36, %v384_v3  ;;  %v426_v41 = vmul.f32 %v1414_v36, %v385_v4 }
  0xe7   : > { %v421_v44 = vmul.f32 %v1416_v37, %v380_v5  ;;  %v422_v45 = vmul.f32 %v1416_v37, %v381_v6 }
  0xe9   : > { %v1418_v38 = vpop.eup %1417 }
  0xea   : > { %v1420_v39 = vpop.eup %1419  ;;  %v427_v42 = vmul.f32 %v1418_v38, %v386_v8  ;;  %v428_v43 = vmul.f32 %v1418_v38, %v387_v9 }
  0xeb   : > { %v423_v46 = vmul.f32 %v1420_v39, %v382_v10  ;;  %v424_v47 = vmul.f32 %v1420_v39, %v383_v11 }
  0xec   : > { %v431_v48 = vpack.c.bf16 %v427_v42, %v425_v40  ;;  %v432_v49 = vpack.c.bf16 %v428_v43, %v426_v41 }
  0xed   : > { %v429_v50 = vpack.c.bf16 %v423_v46, %v421_v44  ;;  %v430_v51 = vpack.c.bf16 %v424_v47, %v422_v45 }
  0xee   : > { %435 = vst [vmem:[#allocation2 + $0x10] sm:$0xff] %v431_v48  ;;  %436 = vst [vmem:[#allocation2 + $0x18] sm:$0xff] %v432_v49 }
  0xef   : > { %433 = vst [vmem:[#allocation2] sm:$0xff] %v429_v50  ;;  %434 = vst [vmem:[#allocation2 + $0x8] sm:$0xff] %v430_v51 }
  0xf0 PF: > { %v1421_v52 = vld [vmem:[%s1831_s10 + $0x4] ss:$16 sps:$4 sm:$0xff]   ;;  %v1423_v53 = vld [vmem:[%s1831_s10 + $0xc] ss:$16 sps:$4 sm:$0xff]   ;;  %v1425_v54 = vld [vmem:[%s1831_s10] ss:$16 sps:$4 sm:$0xff]  }
  0xf1   : > { %847 = vmatprep.subr.bf16.mxu0 %v1421_v52  ;;  %v1426_v55 = vld [vmem:[%s1831_s10 + $0x8] ss:$16 sps:$4 sm:$0xff]   ;;  %900 = vmatprep.subr.bf16.mxu1 %v1423_v53  ;;  %v1427_v56 = vld [vmem:[%s1831_s10 + $0x24] ss:$16 sps:$4 sm:$0xff]   ;;  %v1429_v57 = vld [vmem:[%s1831_s10 + $0x2c] ss:$16 sps:$4 sm:$0xff]  }
  0xf2   : > { %848 = vmatpush1.bf16.msra.mxu0 %v1425_v54  ;;  %901 = vmatpush1.bf16.msra.mxu1 %v1426_v55  ;;  %v1431_v58 = vld [vmem:[%s1831_s10 + $0x20] ss:$16 sps:$4 sm:$0xff]   ;;  %v1432_v59 = vld [vmem:[%s1831_s10 + $0x28] ss:$16 sps:$4 sm:$0xff]   ;;  %v1433_v60 = vld [vmem:[%s1831_s10 + $0x44] ss:$16 sps:$4 sm:$0xff]  }
  0xf3   : > { %849 = vmatprep.subr.bf16.mxu0 %v1427_v56  ;;  %902 = vmatprep.subr.bf16.mxu1 %v1429_v57  ;;  %v1435_v61 = vld [vmem:[%s1831_s10 + $0x4c] ss:$16 sps:$4 sm:$0xff]   ;;  %v1437_v62 = vld [vmem:[%s1831_s10 + $0x40] ss:$16 sps:$4 sm:$0xff]   ;;  %v1438_v63 = vld [vmem:[%s1831_s10 + $0x48] ss:$16 sps:$4 sm:$0xff]   ;;  %v507_v56 = vlaneseq }
  0xf4   : > { %v1439_v0 = vld [vmem:[%s1831_s10 + $0x64] ss:$16 sps:$4 sm:$0xff]   ;;  %v1441_v1 = vld [vmem:[%s1831_s10 + $0x6c] ss:$16 sps:$4 sm:$0xff]   ;;  %v1443_v2 = vld [vmem:[%s1831_s10 + $0x60] ss:$16 sps:$4 sm:$0xff]  }
  0xf5   : > { %v1444_v3 = vld [vmem:[%s1831_s10 + $0x68] ss:$16 sps:$4 sm:$0xff]   ;;  %v1445_v4 = vld [vmem:[%s1831_s10 + $0x84] ss:$16 sps:$4 sm:$0xff]   ;;  %v1447_v5 = vld [vmem:[%s1831_s10 + $0x8c] ss:$16 sps:$4 sm:$0xff]  }
  0xf6   : > { %850 = vmatpush1.bf16.msra.mxu0 %v1431_v58  ;;  %903 = vmatpush1.bf16.msra.mxu1 %v1432_v59  ;;  %v1449_v6 = vld [vmem:[%s1831_s10 + $0x80] ss:$16 sps:$4 sm:$0xff]   ;;  %v1450_v7 = vld [vmem:[%s1831_s10 + $0x88] ss:$16 sps:$4 sm:$0xff]   ;;  %v1451_v8 = vld [vmem:[%s1831_s10 + $0xa4] ss:$16 sps:$4 sm:$0xff]  }
  0xf7   : > { %851 = vmatprep.subr.bf16.mxu0 %v1433_v60  ;;  %904 = vmatprep.subr.bf16.mxu1 %v1435_v61  ;;  %v1453_v9 = vld [vmem:[%s1831_s10 + $0xac] ss:$16 sps:$4 sm:$0xff]   ;;  %v1455_v10 = vld [vmem:[%s1831_s10 + $0xa0] ss:$16 sps:$4 sm:$0xff]   ;;  %v1456_v11 = vld [vmem:[%s1831_s10 + $0xa8] ss:$16 sps:$4 sm:$0xff]  }
  0xf8   : > { %v1457_v12 = vld [vmem:[%s1831_s10 + $0xc4] ss:$16 sps:$4 sm:$0xff]   ;;  %v1459_v13 = vld [vmem:[%s1831_s10 + $0xcc] ss:$16 sps:$4 sm:$0xff]   ;;  %v1461_v14 = vld [vmem:[%s1831_s10 + $0xc0] ss:$16 sps:$4 sm:$0xff]  }
  0xf9   : > { %v1462_v15 = vld [vmem:[%s1831_s10 + $0xc8] ss:$16 sps:$4 sm:$0xff]   ;;  %v1463_v16 = vld [vmem:[%s1831_s10 + $0xe4] ss:$16 sps:$4 sm:$0xff]   ;;  %v1465_v17 = vld [vmem:[%s1831_s10 + $0xec] ss:$16 sps:$4 sm:$0xff]  }
  0xfa   : > { %852 = vmatpush1.bf16.msra.mxu0 %v1437_v62  ;;  %905 = vmatpush1.bf16.msra.mxu1 %v1438_v63  ;;  %v1467_v18 = vld [vmem:[%s1831_s10 + $0xe0] ss:$16 sps:$4 sm:$0xff]   ;;  %v1468_v19 = vld [vmem:[%s1831_s10 + $0xe8] ss:$16 sps:$4 sm:$0xff]   ;;  %v1469_v20 = vld [vmem:[%s1831_s10 + $0x104] ss:$16 sps:$4 sm:$0xff]  }
  0xfb   : > { %853 = vmatprep.subr.bf16.mxu0 %v1439_v0  ;;  %906 = vmatprep.subr.bf16.mxu1 %v1441_v1  ;;  %v1471_v21 = vld [vmem:[%s1831_s10 + $0x10c] ss:$16 sps:$4 sm:$0xff]   ;;  %v1473_v22 = vld [vmem:[%s1831_s10 + $0x100] ss:$16 sps:$4 sm:$0xff]   ;;  %v1474_v23 = vld [vmem:[%s1831_s10 + $0x108] ss:$16 sps:$4 sm:$0xff]  }
  0xfc   : > { %v1475_v24 = vld [vmem:[%s1831_s10 + $0x124] ss:$16 sps:$4 sm:$0xff]   ;;  %v1477_v25 = vld [vmem:[%s1831_s10 + $0x12c] ss:$16 sps:$4 sm:$0xff]   ;;  %v1479_v26 = vld [vmem:[%s1831_s10 + $0x120] ss:$16 sps:$4 sm:$0xff]  }
  0xfd   : > { %v1480_v27 = vld [vmem:[%s1831_s10 + $0x128] ss:$16 sps:$4 sm:$0xff]   ;;  %v1481_v28 = vld [vmem:[%s1831_s10 + $0x144] ss:$16 sps:$4 sm:$0xff]   ;;  %v1483_v29 = vld [vmem:[%s1831_s10 + $0x14c] ss:$16 sps:$4 sm:$0xff]  }
  0xfe   : > { %854 = vmatpush1.bf16.msra.mxu0 %v1443_v2  ;;  %907 = vmatpush1.bf16.msra.mxu1 %v1444_v3  ;;  %v1485_v30 = vld [vmem:[%s1831_s10 + $0x140] ss:$16 sps:$4 sm:$0xff]   ;;  %v1486_v31 = vld [vmem:[%s1831_s10 + $0x148] ss:$16 sps:$4 sm:$0xff]   ;;  %v1487_v32 = vld [vmem:[%s1831_s10 + $0x164] ss:$16 sps:$4 sm:$0xff]  }
  0xff   : > { %855 = vmatprep.subr.bf16.mxu0 %v1445_v4  ;;  %908 = vmatprep.subr.bf16.mxu1 %v1447_v5  ;;  %v1489_v33 = vld [vmem:[%s1831_s10 + $0x16c] ss:$16 sps:$4 sm:$0xff]   ;;  %v1491_v35 = vld [vmem:[%s1831_s10 + $0x160] ss:$16 sps:$4 sm:$0xff]   ;;  %v1492_v36 = vld [vmem:[%s1831_s10 + $0x168] ss:$16 sps:$4 sm:$0xff]  }
 0x100   : > { %v438_v34 = vld [vmem:[#allocation2 + $0x8] sm:$0xff]  ;;  %v1493_v37 = vld [vmem:[%s1831_s10 + $0x184] ss:$16 sps:$4 sm:$0xff]   ;;  %v1497_v39 = vld [vmem:[%s1831_s10 + $0x180] ss:$16 sps:$4 sm:$0xff]   ;;  %v508_v57 = vshrl.u32 %v507_v56, 7 }
 0x101   : > { %879 = vmatprep.mubr.bf16.mxu0 %v438_v34  ;;  %932 = vmatprep.mubr.bf16.mxu1 %v438_v34  ;;  %v1495_v38 = vld [vmem:[%s1831_s10 + $0x18c] ss:$16 sps:$4 sm:$0xff]   ;;  %v1498_v40 = vld [vmem:[%s1831_s10 + $0x188] ss:$16 sps:$4 sm:$0xff]   ;;  %v1499_v41 = vld [vmem:[%s1831_s10 + $0x1a4] ss:$16 sps:$4 sm:$0xff]  }
 0x102   : > { %856 = vmatpush1.bf16.msra.mxu0 %v1449_v6  ;;  %909 = vmatpush1.bf16.msra.mxu1 %v1450_v7  ;;  %v1501_v42 = vld [vmem:[%s1831_s10 + $0x1ac] ss:$16 sps:$4 sm:$0xff]   ;;  %v1503_v43 = vld [vmem:[%s1831_s10 + $0x1a0] ss:$16 sps:$4 sm:$0xff]   ;;  %v1504_v44 = vld [vmem:[%s1831_s10 + $0x1a8] ss:$16 sps:$4 sm:$0xff]  }
 0x103   : > { %857 = vmatprep.subr.bf16.mxu0 %v1451_v8  ;;  %910 = vmatprep.subr.bf16.mxu1 %v1453_v9  ;;  %v1505_v45 = vld [vmem:[%s1831_s10 + $0x1c4] ss:$16 sps:$4 sm:$0xff]   ;;  %v1507_v46 = vld [vmem:[%s1831_s10 + $0x1cc] ss:$16 sps:$4 sm:$0xff]   ;;  %v1509_v47 = vld [vmem:[%s1831_s10 + $0x1c0] ss:$16 sps:$4 sm:$0xff]  }
 0x104   : > { %v1510_v48 = vld [vmem:[%s1831_s10 + $0x1c8] ss:$16 sps:$4 sm:$0xff]   ;;  %v1511_v49 = vld [vmem:[%s1831_s10 + $0x1e4] ss:$16 sps:$4 sm:$0xff]   ;;  %v1513_v50 = vld [vmem:[%s1831_s10 + $0x1ec] ss:$16 sps:$4 sm:$0xff]  }
 0x105   : > { %v1515_v51 = vld [vmem:[%s1831_s10 + $0x1e0] ss:$16 sps:$4 sm:$0xff]   ;;  %v1516_v52 = vld [vmem:[%s1831_s10 + $0x1e8] ss:$16 sps:$4 sm:$0xff]   ;;  %v509_v58 = vsub.s32 0, %v508_v57  ;;  %v517_v59 = vsub.s32 2, %v508_v57 }
 0x106   : > { %858 = vmatpush1.bf16.msra.mxu0 %v1455_v10  ;;  %911 = vmatpush1.bf16.msra.mxu1 %v1456_v11  ;;  %v437_v53 = vld [vmem:[#allocation2] sm:$0xff]  ;;  %v440_v54 = vld [vmem:[#allocation2 + $0x18] sm:$0xff]  ;;  %v439_v55 = vld [vmem:[#allocation2 + $0x10] sm:$0xff]  ;;  %v513_v61 = vsub.s32 1, %v508_v57  ;;  %v521_v62 = vsub.s32 3, %v508_v57  ;;  %s1372_s29 = sshll.u32 (%p1676_p6), %s1611_s14, 4 }
 0x107   : > { %859 = vmatprep.subr.bf16.mxu0 %v1457_v12  ;;  %912 = vmatprep.subr.bf16.mxu1 %v1459_v13  ;;  %v505_v60 = vld [vmem:[%s368_s9] sm:$0xf]  ;;  %s1133_s5 = scalar_lea.vmem (%p1676_p6), %s2039_s3, %s1372_s29 }
 0x108   : > { %v510_v63 = vrot.slane %v505_v60, %v509_v58  ;;  %v1917_v0 = vrot.slane %v505_v60, %v517_v59  ;;  %v1919_v1 = vrot.slane %v505_v60, %v513_v61  ;;  %v1921_v2 = vrot.slane %v505_v60, %v521_v62 }
 0x10a   : > { %860 = vmatpush1.bf16.msra.mxu0 %v1461_v14  ;;  %913 = vmatpush1.bf16.msra.mxu1 %v1462_v15 }
 0x10b   : > { %861 = vmatprep.subr.bf16.mxu0 %v1463_v16  ;;  %914 = vmatprep.subr.bf16.mxu1 %v1465_v17 }
 0x10e   : > { %862 = vmatpush1.bf16.msra.mxu0 %v1467_v18  ;;  %915 = vmatpush1.bf16.msra.mxu1 %v1468_v19 }
 0x10f   : > { %863 = vmatprep.subr.bf16.mxu0 %v1469_v20  ;;  %916 = vmatprep.subr.bf16.mxu1 %v1471_v21 }
 0x112   : > { %864 = vmatpush1.bf16.msra.mxu0 %v1473_v22  ;;  %917 = vmatpush1.bf16.msra.mxu1 %v1474_v23 }
 0x113   : > { %865 = vmatprep.subr.bf16.mxu0 %v1475_v24  ;;  %918 = vmatprep.subr.bf16.mxu1 %v1477_v25 }
 0x116   : > { %866 = vmatpush1.bf16.msra.mxu0 %v1479_v26  ;;  %919 = vmatpush1.bf16.msra.mxu1 %v1480_v27 }
 0x117   : > { %867 = vmatprep.subr.bf16.mxu0 %v1481_v28  ;;  %920 = vmatprep.subr.bf16.mxu1 %v1483_v29 }
 0x11a   : > { %868 = vmatpush1.bf16.msra.mxu0 %v1485_v30  ;;  %921 = vmatpush1.bf16.msra.mxu1 %v1486_v31 }
 0x11b   : > { %869 = vmatprep.subr.bf16.mxu0 %v1487_v32  ;;  %922 = vmatprep.subr.bf16.mxu1 %v1489_v33 }
 0x11e   : > { %870 = vmatpush1.bf16.msra.mxu0 %v1491_v35  ;;  %923 = vmatpush1.bf16.msra.mxu1 %v1492_v36 }
 0x11f   : > { %871 = vmatprep.subr.bf16.mxu0 %v1493_v37  ;;  %924 = vmatprep.subr.bf16.mxu1 %v1495_v38 }
 0x122   : > { %872 = vmatpush1.bf16.msra.mxu0 %v1497_v39  ;;  %925 = vmatpush1.bf16.msra.mxu1 %v1498_v40 }
 0x123   : > { %873 = vmatprep.subr.bf16.mxu0 %v1499_v41  ;;  %926 = vmatprep.subr.bf16.mxu1 %v1501_v42 }
 0x126   : > { %874 = vmatpush1.bf16.msra.mxu0 %v1503_v43  ;;  %927 = vmatpush1.bf16.msra.mxu1 %v1504_v44 }
 0x127   : > { %875 = vmatprep.subr.bf16.mxu0 %v1505_v45  ;;  %928 = vmatprep.subr.bf16.mxu1 %v1507_v46 }
 0x12a   : > { %876 = vmatpush1.bf16.msra.mxu0 %v1509_v47  ;;  %929 = vmatpush1.bf16.msra.mxu1 %v1510_v48 }
 0x12b   : > { %877 = vmatprep.subr.bf16.mxu0 %v1511_v49  ;;  %930 = vmatprep.subr.bf16.mxu1 %v1513_v50 }
 0x12e   : > { %878 = vmatpush1.bf16.msra.mxu0 %v1515_v51  ;;  %931 = vmatpush1.bf16.msra.mxu1 %v1516_v52 }
 0x131   : > { %880 = vmatmul.mubr.bf16.vlgmr.msra.gmra.mrb[0].mxu0 %v437_v53  ;;  %933 = vmatmul.mubr.bf16.vlgmr.msra.gmra.mrb[0].mxu1 %v437_v53 }
 0x132   : > { %889 = vmatprep.mubr.bf16.mxu0 %v440_v54  ;;  %942 = vmatprep.mubr.bf16.mxu1 %v440_v54 }
 0x139   : > { %890 = vmatmul.mubr.bf16.gmra.mrb[4].mxu0 %v439_v55  ;;  %943 = vmatmul.mubr.bf16.gmra.mrb[4].mxu1 %v439_v55 }
 0x204   : > { %v881_v3 = vpop.f32.mrb[0].mxu0  ;;  %v934_v4 = vpop.f32.mrb[0].mxu1 }
 0x205   : > { %v1923_v5 = vadd.f32 %v881_v3, %v510_v63  ;;  %v1926_v6 = vadd.f32 %v934_v4, %v1917_v0  ;;  %v883_v7 = vpop.f32.mrb[1].mxu0  ;;  %v936_v8 = vpop.f32.mrb[1].mxu1 }
 0x206   : > { %v1929_v9 = vadd.f32 %v883_v7, %v1919_v1  ;;  %v1932_v10 = vadd.f32 %v936_v8, %v1921_v2  ;;  %v885_v11 = vpop.f32.mrb[2].mxu0  ;;  %v938_v12 = vpop.f32.mrb[2].mxu1 }
 0x207   : > { %v1334_v13 = vmul.f32 -1.442695, %v1923_v5  ;;  %v1336_v14 = vmul.f32 -1.442695, %v1926_v6  ;;  %v1936_v15 = vadd.f32 %v885_v11, %v510_v63  ;;  %v1939_v16 = vadd.f32 %v938_v12, %v1917_v0  ;;  %v887_v17 = vpop.f32.mrb[3].mxu0  ;;  %v940_v18 = vpop.f32.mrb[3].mxu1 }
 0x208   : > { %v1335_v19 = vmul.f32 -1.442695, %v1929_v9  ;;  %v1337_v20 = vmul.f32 -1.442695, %v1932_v10  ;;  %v1944_v21 = vadd.f32 %v887_v17, %v1919_v1  ;;  %v1947_v22 = vadd.f32 %v940_v18, %v1921_v2 }
 0x209   : > { %1517 = vpow2.f32 %v1334_v13  ;;  %v1338_v23 = vmul.f32 -1.442695, %v1936_v15  ;;  %v1340_v24 = vmul.f32 -1.442695, %v1939_v16 }
 0x20a   : > { %1519 = vpow2.f32 %v1336_v14  ;;  %v1339_v25 = vmul.f32 -1.442695, %v1944_v21  ;;  %v1341_v26 = vmul.f32 -1.442695, %v1947_v22 }
 0x20b   : > { %1521 = vpow2.f32 %v1335_v19 }
 0x20c   : > { %1523 = vpow2.f32 %v1337_v20  ;;  %v891_v27 = vpop.f32.mrb[4].mxu0  ;;  %v944_v28 = vpop.f32.mrb[4].mxu1 }
 0x20d   : > { %1525 = vpow2.f32 %v1338_v23  ;;  %v1953_v29 = vadd.f32 %v891_v27, %v510_v63  ;;  %v1956_v30 = vadd.f32 %v944_v28, %v1917_v0  ;;  %v893_v31 = vpop.f32.mrb[5].mxu0  ;;  %v946_v32 = vpop.f32.mrb[5].mxu1 }
 0x20e   : > { %1527 = vpow2.f32 %v1340_v24  ;;  %v1959_v33 = vadd.f32 %v893_v31, %v1919_v1  ;;  %v1962_v34 = vadd.f32 %v946_v32, %v1921_v2  ;;  %v895_v35 = vpop.f32.mrb[6].mxu0  ;;  %v948_v36 = vpop.f32.mrb[6].mxu1 }
 0x20f   : > { %1529 = vpow2.f32 %v1339_v25  ;;  %v1342_v37 = vmul.f32 -1.442695, %v1953_v29  ;;  %v1344_v38 = vmul.f32 -1.442695, %v1956_v30  ;;  %v1966_v39 = vadd.f32 %v895_v35, %v510_v63  ;;  %v897_v40 = vpop.f32.mrb[7].mxu0  ;;  %v950_v41 = vpop.f32.mrb[7].mxu1 }
 0x210   : > { %1531 = vpow2.f32 %v1341_v26  ;;  %v1343_v42 = vmul.f32 -1.442695, %v1959_v33  ;;  %v1345_v43 = vmul.f32 -1.442695, %v1962_v34  ;;  %v1972_v62 = vadd.f32 %v948_v36, %v1917_v0 }
 0x211   : > { %1533 = vpow2.f32 %v1342_v37  ;;  %v1346_v44 = vmul.f32 -1.442695, %v1966_v39  ;;  %v1975_v4 = vadd.f32 %v897_v40, %v1919_v1  ;;  %v1978_v11 = vadd.f32 %v950_v41, %v1921_v2 }
 0x212   : > { %1535 = vpow2.f32 %v1344_v38  ;;  %v1348_v0 = vmul.f32 -1.442695, %v1972_v62 }
 0x213   : > { %v1518_v45 = vpop.eup %1517  ;;  %1537 = vpow2.f32 %v1343_v42  ;;  %v1347_v19 = vmul.f32 -1.442695, %v1975_v4  ;;  %v1349_v23 = vmul.f32 -1.442695, %v1978_v11 }
 0x214   : > { %v1520_v46 = vpop.eup %1519  ;;  %v1001_v47 = vadd.f32 1.0, %v1518_v45  ;;  %1539 = vpow2.f32 %v1345_v43 }
 0x215   : > { %v1522_v48 = vpop.eup %1521  ;;  %v1003_v49 = vadd.f32 1.0, %v1520_v46  ;;  %1541 = vpow2.f32 %v1346_v44 }
 0x216   : > { %v1524_v50 = vpop.eup %1523  ;;  %1543 = vrcp.f32 %v1001_v47  ;;  %v1002_v51 = vadd.f32 1.0, %v1522_v48 }
 0x217   : > { %v1526_v52 = vpop.eup %1525  ;;  %1545 = vrcp.f32 %v1003_v49  ;;  %v1004_v53 = vadd.f32 1.0, %v1524_v50 }
 0x218   : > { %v1528_v54 = vpop.eup %1527  ;;  %1547 = vrcp.f32 %v1002_v51  ;;  %v1005_v55 = vadd.f32 1.0, %v1526_v52 }
 0x219   : > { %v1530_v56 = vpop.eup %1529  ;;  %1549 = vrcp.f32 %v1004_v53  ;;  %v1007_v57 = vadd.f32 1.0, %v1528_v54 }
 0x21a   : > { %v1532_v58 = vpop.eup %1531  ;;  %1551 = vrcp.f32 %v1005_v55  ;;  %v1006_v59 = vadd.f32 1.0, %v1530_v56 }
 0x21b   : > { %v1534_v60 = vpop.eup %1533  ;;  %1553 = vrcp.f32 %v1007_v57  ;;  %v1008_v61 = vadd.f32 1.0, %v1532_v58 }
 0x21c   : > { %v1536_v63 = vpop.eup %1535  ;;  %1555 = vrcp.f32 %v1006_v59  ;;  %v1009_v3 = vadd.f32 1.0, %v1534_v60 }
 0x21d   : > { %v1538_v7 = vpop.eup %1537  ;;  %1557 = vrcp.f32 %v1008_v61  ;;  %v1011_v8 = vadd.f32 1.0, %v1536_v63 }
 0x21e   : > { %v1540_v12 = vpop.eup %1539  ;;  %1559 = vrcp.f32 %v1009_v3  ;;  %v1010_v13 = vadd.f32 1.0, %v1538_v7 }
 0x21f   : > { %v1542_v14 = vpop.eup %1541  ;;  %1561 = vrcp.f32 %v1011_v8  ;;  %v1012_v17 = vadd.f32 1.0, %v1540_v12 }
 0x220   : > { %v1544_v18 = vpop.eup %1543  ;;  %1563 = vrcp.f32 %v1010_v13 }
 0x221   : > { %v1546_v1 = vpop.eup %1545  ;;  %v1049_v20 = vmul.f32 %v1544_v18, %v1923_v5  ;;  %1565 = vrcp.f32 %v1012_v17 }
 0x222   : > { %v1548_v2 = vpop.eup %1547  ;;  %v1051_v24 = vmul.f32 %v1546_v1, %v1926_v6  ;;  %1567 = vpow2.f32 %v1348_v0 }
 0x223   : > { %v1550_v25 = vpop.eup %1549  ;;  %v1050_v26 = vmul.f32 %v1548_v2, %v1929_v9  ;;  %1569 = vpow2.f32 %v1347_v19 }
 0x224   : > { %v1552_v27 = vpop.eup %1551  ;;  %v1052_v28 = vmul.f32 %v1550_v25, %v1932_v10  ;;  %1571 = vpow2.f32 %v1349_v23 }
 0x225   : > { %v1554_v31 = vpop.eup %1553  ;;  %v1364_v32 = vpack.c.bf16 %v1050_v26, %v1049_v20  ;;  %v1053_v5 = vmul.f32 %v1552_v27, %v1936_v15  ;;  %v1013_v15 = vadd.f32 1.0, %v1542_v14 }
 0x226   : > { %v1556_v35 = vpop.eup %1555  ;;  %v1365_v36 = vpack.c.bf16 %v1052_v28, %v1051_v24  ;;  %v1055_v37 = vmul.f32 %v1554_v31, %v1939_v16 }
 0x227   : > { %v1558_v6 = vpop.eup %1557  ;;  %1113 = vst [vmem:[%s1833_s11] sm:$0xff] %v1364_v32  ;;  %v1054_v9 = vmul.f32 %v1556_v35, %v1944_v21  ;;  %1573 = vrcp.f32 %v1013_v15 }
 0x228   : > { %v1560_v38 = vpop.eup %1559  ;;  %1114 = vst [vmem:[%s1833_s11 + $0x8] sm:$0xff] %v1365_v36  ;;  %v1056_v10 = vmul.f32 %v1558_v6, %v1947_v22 }
 0x229   : > { %v1562_v40 = vpop.eup %1561  ;;  %v1366_v41 = vpack.c.bf16 %v1054_v9, %v1053_v5  ;;  %v1057_v42 = vmul.f32 %v1560_v38, %v1953_v29 }
 0x22a   : > { %v1564_v43 = vpop.eup %1563  ;;  %v1367_v44 = vpack.c.bf16 %v1056_v10, %v1055_v37  ;;  %v1059_v16 = vmul.f32 %v1562_v40, %v1956_v30 }
 0x22b   : > { %v1566_v45 = vpop.eup %1565  ;;  %1115 = vst [vmem:[%s1833_s11 + $0x10] sm:$0xff] %v1366_v41  ;;  %v1058_v46 = vmul.f32 %v1564_v43, %v1959_v33 }
 0x22c   : > { %1116 = vst [vmem:[%s1833_s11 + $0x18] sm:$0xff] %v1367_v44  ;;  %v1060_v21 = vmul.f32 %v1566_v45, %v1962_v34  ;;  %v1568_v47 = vpop.eup %1567 }
 0x22d   : > { %v1368_v22 = vpack.c.bf16 %v1058_v46, %v1057_v42  ;;  %v1570_v48 = vpop.eup %1569  ;;  %v1015_v29 = vadd.f32 1.0, %v1568_v47 }
 0x22e   : > { %v1369_v49 = vpack.c.bf16 %v1060_v21, %v1059_v16  ;;  %v1572_v50 = vpop.eup %1571  ;;  %v1014_v51 = vadd.f32 1.0, %v1570_v48 }
 0x22f   : > { %1117 = vst [vmem:[%s1833_s11 + $0x20] sm:$0xff] %v1368_v22  ;;  %1575 = vrcp.f32 %v1015_v29  ;;  %v1016_v30 = vadd.f32 1.0, %v1572_v50  ;;  %v1148_v60 = vld [vmem:[%s1833_s11 + $0x8] sm:$0xff] (%p1676_p6) }
 0x230   : > { %1118 = vst [vmem:[%s1833_s11 + $0x28] sm:$0xff] %v1369_v49  ;;  %1577 = vrcp.f32 %v1014_v51  ;;  %1149 = vst [vmem:[%s1133_s5 + $0x8] sm:$0xff] (%p1676_p6), %v1148_v60 }
 0x231   : > { %1579 = vrcp.f32 %v1016_v30  ;;  %v1574_v33 = vpop.eup %1573 }
 0x232   : > { %v1061_v34 = vmul.f32 %v1574_v33, %v1966_v39  ;;  %v1146_v39 = vld [vmem:[%s1833_s11] sm:$0xff] (%p1676_p6)  ;;  %v1150_v61 = vld [vmem:[%s1833_s11 + $0x10] sm:$0xff] (%p1676_p6) }
 0x233   : > { %1147 = vst [vmem:[%s1133_s5] sm:$0xff] (%p1676_p6), %v1146_v39  ;;  %1151 = vst [vmem:[%s1133_s5 + $0x20] sm:$0xff] (%p1676_p6), %v1150_v61 }
 0x236   : > { %v1154_v63 = vld [vmem:[%s1833_s11 + $0x20] sm:$0xff] (%p1676_p6) }
 0x237   : > { %v1156_v3 = vld [vmem:[%s1833_s11 + $0x28] sm:$0xff] (%p1676_p6)  ;;  %1155 = vst [vmem:[%s1133_s5 + $0x40] sm:$0xff] (%p1676_p6), %v1154_v63 }
 0x238   : > { %1157 = vst [vmem:[%s1133_s5 + $0x48] sm:$0xff] (%p1676_p6), %v1156_v3 }
 0x239   : > { %v1576_v52 = vpop.eup %1575 }
 0x23a   : > { %v1578_v53 = vpop.eup %1577  ;;  %v1063_v54 = vmul.f32 %v1576_v52, %v1972_v62  ;;  %1127 = sbr.rel (!%p1676_p6) target bundleno = 585 (0x249), region = 63  ;;  %v1152_v62 = vld [vmem:[%s1833_s11 + $0x18] sm:$0xff] (%p1676_p6) }
 0x23b   : > { %v1580_v55 = vpop.eup %1579  ;;  %v1062_v56 = vmul.f32 %v1578_v53, %v1975_v4  ;;  %1153 = vst [vmem:[%s1133_s5 + $0x28] sm:$0xff] (%p1676_p6), %v1152_v62 }
 0x23c   : > { %v1064_v57 = vmul.f32 %v1580_v55, %v1978_v11 }
 0x23d   : > { %v1370_v58 = vpack.c.bf16 %v1062_v56, %v1061_v34 }
 0x23e   : > { %v1371_v59 = vpack.c.bf16 %v1064_v57, %v1063_v54 }
 0x23f   : > { %1119 = vst [vmem:[%s1833_s11 + $0x30] sm:$0xff] %v1370_v58 }
 0x240   : > { %1120 = vst [vmem:[%s1833_s11 + $0x38] sm:$0xff] %v1371_v59 }
 0x246   : > { %v1158_v4 = vld [vmem:[%s1833_s11 + $0x30] sm:$0xff] }
 0x247   : > { %v1160_v7 = vld [vmem:[%s1833_s11 + $0x38] sm:$0xff]  ;;  %1159 = vst [vmem:[%s1133_s5 + $0x60] sm:$0xff] %v1158_v4 }
 0x248   : > { %1161 = vst [vmem:[%s1133_s5 + $0x68] sm:$0xff] %v1160_v7 }
 0x249 PF: > { %s13_s16 = sadd.s32 1, %s1619_s16   ;;  %s2041_s12 = smov %s1607_s13 }
 0x24a   : > { %p10_p13 = scmp.ge.s32.totalorder %s13_s16, 4   ;;  %s2042_s13 = smov %s1681_s22 }
 0x24b   : > { %s2043_s14 = smov %s1615_s15  ;;  %s2044_s15 = smov %s2046_s17 }
 0x24c   :  { %12 = sbr.rel (!%p10_p13) target bundleno = 3 (0x3), region = 123 }

// kernel: transformer_block.9
= control target key start
LH: loop header
LB: loop body
LE: loop exit
PB: predicated region body
PF: predicated region fallthrough
CT: control target
= control target key end

     0   :  { %9 = vsyncpa [#allocation5], 0  ;;  %s1505_s15 = smov 0   ;;  %s1507_s16 = smov 0   ;;  %s1692_s0 = inlined_call_operand.vmem [shape: bf16[32,1024], index: 0, kind: input, shape index: {}]   ;;  %s1693_s1 = inlined_call_operand.vmem [shape: bf16[1024,256], index: 1, kind: input, shape index: {}]   ;;  %s1694_s2 = inlined_call_operand.vmem [shape: f32[1,256], index: 2, kind: input, shape index: {}]   ;;  %s1695_s3 = inlined_call_operand.vmem [shape: bf16[32,256], index: 3, kind: input, shape index: {}]   ;;  %s1696_s4 = inlined_call_operand.hbm [shape: bf16[32,256], index: 4, kind: output, shape index: {}]  }
   0x1   :  { %s1509_s17 = smov 0   ;;  %s1511_s18 = smov 0  }
   0x2   :  { %s1513_s19 = smov 0  }
   0x3 LB: > { %s1139_s20 = sadd.s32 4294967295, %s1474_s19   ;;  %s27_s21 = sadd.s32 1, %s1470_s18  ;;  %s1474_s19 = sphi %s1513_s19, %s15_s19   ;;  %s1470_s18 = sphi %s1511_s18, %s1701_s18   ;;  %s1466_s17 = sphi %s1509_s17, %s1700_s17   ;;  %s1462_s16 = sphi %s1507_s16, %s1699_s16   ;;  %s1458_s15 = sphi %s1505_s15, %s1698_s15  }
   0x4   : > { %p28_p0 = scmp.ge.s32.totalorder %s27_s21, 2  ;;  %p50_p1 = scmp.ne.s32.totalorder %s1462_s16, %s1458_s15 }
   0x5   : > { %p51_p2 = scmp.eq.s32.totalorder %s1474_s19, 0  ;;  %s43_s23 = sadd.s32 1, %s1462_s16 }
   0x6   : > { %s1703_s21 = smov (%p28_p0, %s27_s21), 0  ;;  %p1143_p5 = scmp.ge.s32.totalorder %s1474_s19, 2 }
   0x7   : > { %p52_p3 = por %p51_p2, %p50_p1  ;;  %s39_s22 = ssub.s32 %s1470_s18, %s1703_s21 }
   0x8   : > { %p41_p4 = scmp.eq.s32.totalorder %s39_s22, 0  ;;  %209 = sbr.rel (%p1143_p5) target bundleno = 23 (0x17), region = 24 }
   0xa   : > { %s1541_s24 = scalar_select %p41_p4, %s1462_s16, %s43_s23  }
   0xf   : > { %212 = sbr.rel (!%p52_p3) target bundleno = 23 (0x17), region = 28  ;;  %s214_s25 = sand.u32 (%p52_p3), 1, %s1462_s16  }
  0x10   : > { %s1234_s26 = sshll.u32 (%p52_p3), %s1470_s18, 4  ;;  %s1144_s27 = sshll.u32 (%p52_p3), %s214_s25, 6 }
  0x11   : > { %s222_s30 = scalar_lea.vmem (%p52_p3), %s1692_s0, %s1234_s26  ;;  %s216_s5 = scalar_lea.vmem (%p52_p3), [#allocation3], %s1144_s27 }
  0x12   : > { %v235_v0 = vld [vmem:[%s222_s30] sm:$0xff] (%p52_p3)  ;;  %v237_v1 = vld [vmem:[%s222_s30 + $0x8] sm:$0xff] (%p52_p3) }
  0x13   : > { %v239_v2 = vld [vmem:[%s222_s30 + $0x20] sm:$0xff] (%p52_p3)  ;;  %236 = vst [vmem:[%s216_s5] sm:$0xff] (%p52_p3), %v235_v0  ;;  %238 = vst [vmem:[%s216_s5 + $0x8] sm:$0xff] (%p52_p3), %v237_v1  ;;  %v241_v3 = vld [vmem:[%s222_s30 + $0x28] sm:$0xff] (%p52_p3) }
  0x14   : > { %240 = vst [vmem:[%s216_s5 + $0x10] sm:$0xff] (%p52_p3), %v239_v2  ;;  %v243_v4 = vld [vmem:[%s222_s30 + $0x40] sm:$0xff] (%p52_p3)  ;;  %v245_v5 = vld [vmem:[%s222_s30 + $0x48] sm:$0xff] (%p52_p3)  ;;  %242 = vst [vmem:[%s216_s5 + $0x18] sm:$0xff] (%p52_p3), %v241_v3 }
  0x15   : > { %244 = vst [vmem:[%s216_s5 + $0x20] sm:$0xff] (%p52_p3), %v243_v4  ;;  %246 = vst [vmem:[%s216_s5 + $0x28] sm:$0xff] (%p52_p3), %v245_v5  ;;  %v247_v6 = vld [vmem:[%s222_s30 + $0x60] sm:$0xff] (%p52_p3)  ;;  %v249_v7 = vld [vmem:[%s222_s30 + $0x68] sm:$0xff] (%p52_p3) }
  0x16   : > { %248 = vst [vmem:[%s216_s5 + $0x30] sm:$0xff] %v247_v6  ;;  %250 = vst [vmem:[%s216_s5 + $0x38] sm:$0xff] %v249_v7 }
  0x17 PF: > { %p1147_p6 = scmp.ge.s32.totalorder %s1474_s19, 1  ;;  %p270_p7 = scmp.lt.s32.totalorder %s1474_s19, 3 }
  0x19   : > { %p271_p8 = pnand %p1147_p6, %p270_p7 }
  0x1a   : > { %s277_s6 = sand.u32 (!%p271_p8), 1, %s1458_s15   ;;  %s1149_s7 = sshll.u32 (!%p271_p8), %s1466_s17, 6 }
  0x1b   : > { %274 = sbr.rel (%p271_p8) target bundleno = 375 (0x177), region = 55  ;;  %s1148_s8 = sshll.u32 (!%p271_p8), %s277_s6, 6 }
  0x1c   : > { %p325_p9 = scmp.lt.s32.totalorder (!%p271_p8), %s1149_s7, 127  ;;  %s1558_s13 = scalar_lea.vmem (!%p271_p8), [#allocation3], %s1148_s8 }
  0x1d   : > { %p1152_p10 = scmp.ne.s32.totalorder (!%p271_p8), %s1466_s17, 0 }
  0x22   : > { %s1705_s7 = smov (!%p325_p9, %s1149_s7), 127  ;;  %357 = sbr.rel (%p1152_p10) target bundleno = 41 (0x29), region = 63 }
  0x23   : > { %s1235_s9 = sshll.u32 %s1705_s7, 3  ;;  %v1476_v8 = vmov (!%p1152_p10), 0.0  }
  0x24   : > { %s1556_s12 = scalar_lea.vmem %s1693_s1, %s1235_s9  ;;  %358 = vst [vmem:[#allocation2] sm:$0xff] (!%p1152_p10), %v1476_v8  ;;  %359 = vst [vmem:[#allocation2 + $0x8] sm:$0xff] (!%p1152_p10), %v1476_v8 }
  0x25   : > { %360 = vst [vmem:[#allocation2 + $0x10] sm:$0xff] (!%p1152_p10), %v1476_v8  ;;  %361 = vst [vmem:[#allocation2 + $0x18] sm:$0xff] (!%p1152_p10), %v1476_v8 }
  0x26   : > { %362 = vst [vmem:[#allocation2 + $0x20] sm:$0xff] (!%p1152_p10), %v1476_v8  ;;  %363 = vst [vmem:[#allocation2 + $0x28] sm:$0xff] (!%p1152_p10), %v1476_v8 }
  0x27   : > { %364 = vst [vmem:[#allocation2 + $0x30] sm:$0xff] (!%p1152_p10), %v1476_v8  ;;  %365 = vst [vmem:[#allocation2 + $0x38] sm:$0xff] (!%p1152_p10), %v1476_v8 }
  0x29 PF: > { %v1298_v9 = vld [vmem:[%s1556_s12 + $0x4] ss:$8 sps:$4 sm:$0xff]   ;;  %v1302_v11 = vld [vmem:[%s1556_s12] ss:$8 sps:$4 sm:$0xff]   ;;  %v1304_v13 = vld [vmem:[%s1556_s12 + $0x14] ss:$8 sps:$4 sm:$0xff]  }
  0x2a   : > { %v1300_v10 = vld [vmem:[%s1556_s12 + $0x104] ss:$8 sps:$4 sm:$0xff]   ;;  %806 = vmatprep.subr.bf16.mxu1 %v1298_v9  ;;  %v1303_v12 = vld [vmem:[%s1556_s12 + $0x100] ss:$8 sps:$4 sm:$0xff]   ;;  %v1306_v14 = vld [vmem:[%s1556_s12 + $0x114] ss:$8 sps:$4 sm:$0xff]  }
  0x2b   : > { %859 = vmatprep.subr.bf16.mxu0 %v1300_v10  ;;  %807 = vmatpush1.bf16.msra.mxu1 %v1302_v11  ;;  %v1308_v15 = vld [vmem:[%s1556_s12 + $0x10] ss:$8 sps:$4 sm:$0xff]   ;;  %v1310_v17 = vld [vmem:[%s1556_s12 + $0x24] ss:$8 sps:$4 sm:$0xff]   ;;  %v1314_v19 = vld [vmem:[%s1556_s12 + $0x20] ss:$8 sps:$4 sm:$0xff]  }
  0x2c   : > { %860 = vmatpush1.bf16.msra.mxu0 %v1303_v12  ;;  %808 = vmatprep.subr.bf16.mxu1 %v1304_v13  ;;  %v1309_v16 = vld [vmem:[%s1556_s12 + $0x110] ss:$8 sps:$4 sm:$0xff]   ;;  %v1312_v18 = vld [vmem:[%s1556_s12 + $0x124] ss:$8 sps:$4 sm:$0xff]   ;;  %v1315_v20 = vld [vmem:[%s1556_s12 + $0x120] ss:$8 sps:$4 sm:$0xff]  }
  0x2d   : > { %861 = vmatprep.subr.bf16.mxu0 %v1306_v14  ;;  %v1316_v21 = vld [vmem:[%s1556_s12 + $0x34] ss:$8 sps:$4 sm:$0xff]   ;;  %v1320_v23 = vld [vmem:[%s1556_s12 + $0x30] ss:$8 sps:$4 sm:$0xff]   ;;  %v1322_v25 = vld [vmem:[%s1556_s12 + $0x44] ss:$8 sps:$4 sm:$0xff]  }
  0x2e   : > { %v1318_v22 = vld [vmem:[%s1556_s12 + $0x134] ss:$8 sps:$4 sm:$0xff]   ;;  %v1321_v24 = vld [vmem:[%s1556_s12 + $0x130] ss:$8 sps:$4 sm:$0xff]   ;;  %v1324_v26 = vld [vmem:[%s1556_s12 + $0x144] ss:$8 sps:$4 sm:$0xff]  }
  0x2f   : > { %809 = vmatpush1.bf16.msra.mxu1 %v1308_v15  ;;  %v1326_v27 = vld [vmem:[%s1556_s12 + $0x40] ss:$8 sps:$4 sm:$0xff]   ;;  %v1328_v29 = vld [vmem:[%s1556_s12 + $0x54] ss:$8 sps:$4 sm:$0xff]   ;;  %v1332_v31 = vld [vmem:[%s1556_s12 + $0x50] ss:$8 sps:$4 sm:$0xff]  }
  0x30   : > { %862 = vmatpush1.bf16.msra.mxu0 %v1309_v16  ;;  %810 = vmatprep.subr.bf16.mxu1 %v1310_v17  ;;  %v1327_v28 = vld [vmem:[%s1556_s12 + $0x140] ss:$8 sps:$4 sm:$0xff]   ;;  %v1330_v30 = vld [vmem:[%s1556_s12 + $0x154] ss:$8 sps:$4 sm:$0xff]   ;;  %v1333_v32 = vld [vmem:[%s1556_s12 + $0x150] ss:$8 sps:$4 sm:$0xff]  }
  0x31   : > { %863 = vmatprep.subr.bf16.mxu0 %v1312_v18  ;;  %v1334_v33 = vld [vmem:[%s1556_s12 + $0x64] ss:$8 sps:$4 sm:$0xff]   ;;  %v1338_v35 = vld [vmem:[%s1556_s12 + $0x60] ss:$8 sps:$4 sm:$0xff]   ;;  %v1340_v37 = vld [vmem:[%s1556_s12 + $0x74] ss:$8 sps:$4 sm:$0xff]  }
  0x32   : > { %v1336_v34 = vld [vmem:[%s1556_s12 + $0x164] ss:$8 sps:$4 sm:$0xff]   ;;  %v1339_v36 = vld [vmem:[%s1556_s12 + $0x160] ss:$8 sps:$4 sm:$0xff]   ;;  %v1342_v38 = vld [vmem:[%s1556_s12 + $0x174] ss:$8 sps:$4 sm:$0xff]  }
  0x33   : > { %811 = vmatpush1.bf16.msra.mxu1 %v1314_v19  ;;  %v1344_v39 = vld [vmem:[%s1556_s12 + $0x70] ss:$8 sps:$4 sm:$0xff]   ;;  %v1346_v41 = vld [vmem:[%s1556_s12 + $0x84] ss:$8 sps:$4 sm:$0xff]   ;;  %v1350_v43 = vld [vmem:[%s1556_s12 + $0x80] ss:$8 sps:$4 sm:$0xff]  }
  0x34   : > { %864 = vmatpush1.bf16.msra.mxu0 %v1315_v20  ;;  %812 = vmatprep.subr.bf16.mxu1 %v1316_v21  ;;  %v1345_v40 = vld [vmem:[%s1556_s12 + $0x170] ss:$8 sps:$4 sm:$0xff]   ;;  %v1348_v42 = vld [vmem:[%s1556_s12 + $0x184] ss:$8 sps:$4 sm:$0xff]   ;;  %v1351_v44 = vld [vmem:[%s1556_s12 + $0x180] ss:$8 sps:$4 sm:$0xff]  }
  0x35   : > { %865 = vmatprep.subr.bf16.mxu0 %v1318_v22  ;;  %v1352_v45 = vld [vmem:[%s1556_s12 + $0x94] ss:$8 sps:$4 sm:$0xff]   ;;  %v1356_v47 = vld [vmem:[%s1556_s12 + $0x90] ss:$8 sps:$4 sm:$0xff]   ;;  %v1358_v49 = vld [vmem:[%s1556_s12 + $0xa4] ss:$8 sps:$4 sm:$0xff]  }
  0x36   : > { %v1354_v46 = vld [vmem:[%s1556_s12 + $0x194] ss:$8 sps:$4 sm:$0xff]   ;;  %v1357_v48 = vld [vmem:[%s1556_s12 + $0x190] ss:$8 sps:$4 sm:$0xff]   ;;  %v1360_v50 = vld [vmem:[%s1556_s12 + $0x1a4] ss:$8 sps:$4 sm:$0xff]  }
  0x37   : > { %813 = vmatpush1.bf16.msra.mxu1 %v1320_v23  ;;  %v1362_v51 = vld [vmem:[%s1556_s12 + $0xa0] ss:$8 sps:$4 sm:$0xff]   ;;  %v1364_v53 = vld [vmem:[%s1556_s12 + $0xb4] ss:$8 sps:$4 sm:$0xff]   ;;  %v1368_v55 = vld [vmem:[%s1556_s12 + $0xb0] ss:$8 sps:$4 sm:$0xff]  }
  0x38   : > { %866 = vmatpush1.bf16.msra.mxu0 %v1321_v24  ;;  %814 = vmatprep.subr.bf16.mxu1 %v1322_v25  ;;  %v1363_v52 = vld [vmem:[%s1556_s12 + $0x1a0] ss:$8 sps:$4 sm:$0xff]   ;;  %v1366_v54 = vld [vmem:[%s1556_s12 + $0x1b4] ss:$8 sps:$4 sm:$0xff]   ;;  %v1369_v56 = vld [vmem:[%s1556_s12 + $0x1b0] ss:$8 sps:$4 sm:$0xff]  }
  0x39   : > { %867 = vmatprep.subr.bf16.mxu0 %v1324_v26  ;;  %v1370_v57 = vld [vmem:[%s1556_s12 + $0xc4] ss:$8 sps:$4 sm:$0xff]   ;;  %v1374_v61 = vld [vmem:[%s1556_s12 + $0xc0] ss:$8 sps:$4 sm:$0xff]   ;;  %v1376_v63 = vld [vmem:[%s1556_s12 + $0xd4] ss:$8 sps:$4 sm:$0xff]  }
  0x3a   : > { %v1396_v58 = vld [vmem:[%s1558_s13 + $0x4] ss:$16 sps:$4 sm:$0xff]   ;;  %v1399_v60 = vld [vmem:[%s1558_s13 + $0xc] ss:$16 sps:$4 sm:$0xff]   ;;  %v1375_v62 = vld [vmem:[%s1556_s12 + $0x1c0] ss:$8 sps:$4 sm:$0xff]  }
  0x3b   : > { %815 = vmatpush1.bf16.msra.mxu1 %v1326_v27  ;;  %v1372_v59 = vld [vmem:[%s1556_s12 + $0x1c4] ss:$8 sps:$4 sm:$0xff]   ;;  %838 = vmatprep.mubr.bf16.mxu1 %v1396_v58  ;;  %v1378_v0 = vld [vmem:[%s1556_s12 + $0x1d4] ss:$8 sps:$4 sm:$0xff]   ;;  %v1380_v1 = vld [vmem:[%s1556_s12 + $0xd0] ss:$8 sps:$4 sm:$0xff]  }
  0x3c   : > { %868 = vmatpush1.bf16.msra.mxu0 %v1327_v28  ;;  %816 = vmatprep.subr.bf16.mxu1 %v1328_v29  ;;  %v1381_v2 = vld [vmem:[%s1556_s12 + $0x1d0] ss:$8 sps:$4 sm:$0xff]   ;;  %v1382_v3 = vld [vmem:[%s1556_s12 + $0xe4] ss:$8 sps:$4 sm:$0xff]   ;;  %v1386_v5 = vld [vmem:[%s1556_s12 + $0xe0] ss:$8 sps:$4 sm:$0xff]  }
  0x3d   : > { %869 = vmatprep.subr.bf16.mxu0 %v1330_v30  ;;  %891 = vmatprep.mubr.bf16.mxu0 %v1399_v60  ;;  %v1384_v4 = vld [vmem:[%s1556_s12 + $0x1e4] ss:$8 sps:$4 sm:$0xff]   ;;  %v1387_v6 = vld [vmem:[%s1556_s12 + $0x1e0] ss:$8 sps:$4 sm:$0xff]   ;;  %v1388_v7 = vld [vmem:[%s1556_s12 + $0xf4] ss:$8 sps:$4 sm:$0xff]  }
  0x3e   : > { %v1390_v8 = vld [vmem:[%s1556_s12 + $0x1f4] ss:$8 sps:$4 sm:$0xff]   ;;  %v1392_v9 = vld [vmem:[%s1556_s12 + $0xf0] ss:$8 sps:$4 sm:$0xff]   ;;  %v366_v18 = vld [vmem:[#allocation2] sm:$0xff]  ;;  %p1225_p11 = scmp.ne.s32.totalorder %s1466_s17, 1 }
  0x3f   : > { %817 = vmatpush1.bf16.msra.mxu1 %v1332_v31  ;;  %v1393_v10 = vld [vmem:[%s1556_s12 + $0x1f0] ss:$8 sps:$4 sm:$0xff]   ;;  %v1400_v13 = vld [vmem:[%s1558_s13 + $0x24] ss:$16 sps:$4 sm:$0xff]   ;;  %v1402_v14 = vld [vmem:[%s1558_s13 + $0x2c] ss:$16 sps:$4 sm:$0xff]  }
  0x40   : > { %870 = vmatpush1.bf16.msra.mxu0 %v1333_v32  ;;  %818 = vmatprep.subr.bf16.mxu1 %v1334_v33  ;;  %v1394_v11 = vld [vmem:[%s1558_s13] ss:$16 sps:$4 sm:$0xff]   ;;  %v1397_v12 = vld [vmem:[%s1558_s13 + $0x8] ss:$16 sps:$4 sm:$0xff]  }
  0x41   : > { %871 = vmatprep.subr.bf16.mxu0 %v1336_v34  ;;  %v1404_v15 = vld [vmem:[%s1558_s13 + $0x20] ss:$16 sps:$4 sm:$0xff]   ;;  %v1405_v16 = vld [vmem:[%s1558_s13 + $0x28] ss:$16 sps:$4 sm:$0xff]  }
  0x42   : > { %v367_v22 = vld [vmem:[#allocation2 + $0x8] sm:$0xff]  ;;  %v368_v26 = vld [vmem:[#allocation2 + $0x10] sm:$0xff]  ;;  %v369_v31 = vld [vmem:[#allocation2 + $0x18] sm:$0xff] }
  0x43   : > { %819 = vmatpush1.bf16.msra.mxu1 %v1338_v35 }
  0x44   : > { %872 = vmatpush1.bf16.msra.mxu0 %v1339_v36  ;;  %820 = vmatprep.subr.bf16.mxu1 %v1340_v37 }
  0x45   : > { %873 = vmatprep.subr.bf16.mxu0 %v1342_v38  ;;  %v370_v38 = vld [vmem:[#allocation2 + $0x20] sm:$0xff] }
  0x47   : > { %821 = vmatpush1.bf16.msra.mxu1 %v1344_v39 }
  0x48   : > { %874 = vmatpush1.bf16.msra.mxu0 %v1345_v40  ;;  %822 = vmatprep.subr.bf16.mxu1 %v1346_v41 }
  0x49   : > { %875 = vmatprep.subr.bf16.mxu0 %v1348_v42  ;;  %v371_v42 = vld [vmem:[#allocation2 + $0x28] sm:$0xff] }
  0x4b   : > { %823 = vmatpush1.bf16.msra.mxu1 %v1350_v43 }
  0x4c   : > { %876 = vmatpush1.bf16.msra.mxu0 %v1351_v44  ;;  %824 = vmatprep.subr.bf16.mxu1 %v1352_v45 }
  0x4d   : > { %877 = vmatprep.subr.bf16.mxu0 %v1354_v46  ;;  %v372_v46 = vld [vmem:[#allocation2 + $0x30] sm:$0xff] }
  0x4f   : > { %825 = vmatpush1.bf16.msra.mxu1 %v1356_v47 }
  0x50   : > { %878 = vmatpush1.bf16.msra.mxu0 %v1357_v48  ;;  %826 = vmatprep.subr.bf16.mxu1 %v1358_v49 }
  0x51   : > { %879 = vmatprep.subr.bf16.mxu0 %v1360_v50 }
  0x53   : > { %827 = vmatpush1.bf16.msra.mxu1 %v1362_v51  ;;  %v373_v51 = vld [vmem:[#allocation2 + $0x38] sm:$0xff] }
  0x54   : > { %880 = vmatpush1.bf16.msra.mxu0 %v1363_v52  ;;  %828 = vmatprep.subr.bf16.mxu1 %v1364_v53 }
  0x55   : > { %881 = vmatprep.subr.bf16.mxu0 %v1366_v54 }
  0x57   : > { %829 = vmatpush1.bf16.msra.mxu1 %v1368_v55 }
  0x58   : > { %882 = vmatpush1.bf16.msra.mxu0 %v1369_v56  ;;  %830 = vmatprep.subr.bf16.mxu1 %v1370_v57  ;;  %v942_v57 = vlaneseq (!%p1225_p11) }
  0x59   : > { %883 = vmatprep.subr.bf16.mxu0 %v1372_v59  ;;  %v960_v59 = vld [vmem:[%s1695_s3] sm:$0xff] (!%p1225_p11) }
  0x5a   : > { %v943_v58 = vshrl.u32 (!%p1225_p11), %v942_v57, 7 }
  0x5b   : > { %831 = vmatpush1.bf16.msra.mxu1 %v1374_v61  ;;  %v940_v61 = vld [vmem:[%s1694_s2] sm:$0x3] (!%p1225_p11) }
  0x5c   : > { %884 = vmatpush1.bf16.msra.mxu0 %v1375_v62  ;;  %832 = vmatprep.subr.bf16.mxu1 %v1376_v63  ;;  %v961_v62 = vld [vmem:[%s1695_s3 + $0x8] sm:$0xff] (!%p1225_p11) }
  0x5d   : > { %885 = vmatprep.subr.bf16.mxu0 %v1378_v0  ;;  %v944_v0 = vsub.s32 (!%p1225_p11), 0, %v943_v58 }
  0x5f   : > { %833 = vmatpush1.bf16.msra.mxu1 %v1380_v1  ;;  %v948_v1 = vsub.s32 (!%p1225_p11), 1, %v943_v58 }
  0x60   : > { %886 = vmatpush1.bf16.msra.mxu0 %v1381_v2  ;;  %834 = vmatprep.subr.bf16.mxu1 %v1382_v3  ;;  %v962_v2 = vld [vmem:[%s1695_s3 + $0x10] sm:$0xff] (!%p1225_p11)  ;;  %v963_v3 = vld [vmem:[%s1695_s3 + $0x18] sm:$0xff] (!%p1225_p11) }
  0x61   : > { %887 = vmatprep.subr.bf16.mxu0 %v1384_v4  ;;  %v964_v4 = vunpack.c.l.bf16 (!%p1225_p11), %v960_v59 }
  0x63   : > { %835 = vmatpush1.bf16.msra.mxu1 %v1386_v5  ;;  %v965_v5 = vunpack.c.h.bf16 (!%p1225_p11), %v960_v59 }
  0x64   : > { %888 = vmatpush1.bf16.msra.mxu0 %v1387_v6  ;;  %836 = vmatprep.subr.bf16.mxu1 %v1388_v7 }
  0x65   : > { %889 = vmatprep.subr.bf16.mxu0 %v1390_v8 }
  0x67   : > { %837 = vmatpush1.bf16.msra.mxu1 %v1392_v9  ;;  %v945_v9 = vrot.slane (!%p1225_p11), %v940_v61, %v944_v0 }
  0x68   : > { %890 = vmatpush1.bf16.msra.mxu0 %v1393_v10  ;;  %v949_v10 = vrot.slane (!%p1225_p11), %v940_v61, %v948_v1 }
  0x6a   : > { %839 = vmatmul.mubr.bf16.vlgmr.msra.gmra.mrb[0].mxu1 %v1394_v11  ;;  %v966_v11 = vunpack.c.l.bf16 (!%p1225_p11), %v961_v62 }
  0x6b   : > { %892 = vmatmul.mubr.bf16.vlgmr.msra.gmra.mrb[0].mxu0 %v1397_v12  ;;  %848 = vmatprep.mubr.bf16.mxu1 %v1400_v13  ;;  %v967_v12 = vunpack.c.h.bf16 (!%p1225_p11), %v961_v62 }
  0x6c   : > { %901 = vmatprep.mubr.bf16.mxu0 %v1402_v14 }
  0x72   : > { %849 = vmatmul.mubr.bf16.gmra.mrb[4].mxu1 %v1404_v15 }
  0x73   : > { %902 = vmatmul.mubr.bf16.gmra.mrb[4].mxu0 %v1405_v16  ;;  %v968_v16 = vunpack.c.l.bf16 (!%p1225_p11), %v962_v2 }
 0x13d   : > { %v840_v17 = vpop.f32.mrb[0].mxu1 }
 0x13e   : > { %v893_v19 = vpop.f32.mrb[0].mxu0  ;;  %v842_v21 = vpop.f32.mrb[1].mxu1 }
 0x13f   : > { %v894_v20 = vadd.f32 %v893_v19, %v840_v17  ;;  %v895_v23 = vpop.f32.mrb[1].mxu0  ;;  %v844_v25 = vpop.f32.mrb[2].mxu1  ;;  %v969_v17 = vunpack.c.h.bf16 (!%p1225_p11), %v962_v2  ;;  %v971_v19 = vunpack.c.h.bf16 (!%p1225_p11), %v963_v3 }
 0x140   : > { %v896_v24 = vadd.f32 %v895_v23, %v842_v21  ;;  %v897_v27 = vpop.f32.mrb[2].mxu0  ;;  %v846_v30 = vpop.f32.mrb[3].mxu1 }
 0x141   : > { %v912_v28 = vadd.f32 %v894_v20, %v366_v18  ;;  %v898_v29 = vadd.f32 %v897_v27, %v844_v25  ;;  %v899_v32 = vpop.f32.mrb[3].mxu0  ;;  %v970_v18 = vunpack.c.l.bf16 (!%p1225_p11), %v963_v3 }
 0x142   : > { %v913_v33 = vadd.f32 %v896_v24, %v367_v22  ;;  %v900_v34 = vadd.f32 %v899_v32, %v846_v30 }
 0x143   : > { %920 = vst [vmem:[#allocation2] sm:$0xff] %v912_v28  ;;  %v914_v35 = vadd.f32 %v898_v29, %v368_v26 }
 0x144   : > { %921 = vst [vmem:[#allocation2 + $0x8] sm:$0xff] %v913_v33  ;;  %v915_v36 = vadd.f32 %v900_v34, %v369_v31 }
 0x145   : > { %922 = vst [vmem:[#allocation2 + $0x10] sm:$0xff] %v914_v35  ;;  %v850_v37 = vpop.f32.mrb[4].mxu1 }
 0x146   : > { %923 = vst [vmem:[#allocation2 + $0x18] sm:$0xff] %v915_v36  ;;  %v903_v39 = vpop.f32.mrb[4].mxu0  ;;  %v852_v41 = vpop.f32.mrb[5].mxu1 }
 0x147   : > { %v904_v40 = vadd.f32 %v903_v39, %v850_v37  ;;  %v905_v43 = vpop.f32.mrb[5].mxu0  ;;  %v854_v45 = vpop.f32.mrb[6].mxu1 }
 0x148   : > { %v906_v44 = vadd.f32 %v905_v43, %v852_v41  ;;  %v907_v47 = vpop.f32.mrb[6].mxu0  ;;  %v856_v50 = vpop.f32.mrb[7].mxu1  ;;  %931 = sbr.rel (%p1225_p11) target bundleno = 349 (0x15d), region = 67 }
 0x149   : > { %v916_v48 = vadd.f32 %v904_v40, %v370_v38  ;;  %v908_v49 = vadd.f32 %v907_v47, %v854_v45  ;;  %v909_v52 = vpop.f32.mrb[7].mxu0 }
 0x14a   : > { %v917_v53 = vadd.f32 %v906_v44, %v371_v42  ;;  %v910_v54 = vadd.f32 %v909_v52, %v856_v50  ;;  %v932_v60 = vld [vmem:[#allocation2] sm:$0xff] (!%p1225_p11) }
 0x14b   : > { %924 = vst [vmem:[#allocation2 + $0x20] sm:$0xff] %v916_v48  ;;  %v918_v55 = vadd.f32 %v908_v49, %v372_v46  ;;  %v933_v63 = vld [vmem:[#allocation2 + $0x8] sm:$0xff] (!%p1225_p11)  ;;  %v952_v20 = vadd.f32 (!%p1225_p11), %v945_v9, %v932_v60 }
 0x14c   : > { %925 = vst [vmem:[#allocation2 + $0x28] sm:$0xff] %v917_v53  ;;  %v919_v56 = vadd.f32 %v910_v54, %v373_v51  ;;  %v934_v6 = vld [vmem:[#allocation2 + $0x10] sm:$0xff] (!%p1225_p11)  ;;  %v953_v21 = vadd.f32 (!%p1225_p11), %v949_v10, %v933_v63 }
 0x14d   : > { %926 = vst [vmem:[#allocation2 + $0x30] sm:$0xff] %v918_v55  ;;  %v935_v7 = vld [vmem:[#allocation2 + $0x18] sm:$0xff] (!%p1225_p11)  ;;  %v954_v22 = vadd.f32 (!%p1225_p11), %v945_v9, %v934_v6  ;;  %v972_v28 = vadd.f32 (!%p1225_p11), %v964_v4, %v952_v20 }
 0x14e   : > { %927 = vst [vmem:[#allocation2 + $0x38] sm:$0xff] %v919_v56  ;;  %v955_v23 = vadd.f32 (!%p1225_p11), %v949_v10, %v935_v7  ;;  %v973_v29 = vadd.f32 (!%p1225_p11), %v965_v5, %v953_v21 }
 0x14f   : > { %v974_v30 = vadd.f32 %v966_v11, %v954_v22 }
 0x150   : > { %v975_v31 = vadd.f32 %v967_v12, %v955_v23  ;;  %v1236_v36 = vpack.c.bf16 %v973_v29, %v972_v28 }
 0x152   : > { %v936_v8 = vld [vmem:[#allocation2 + $0x20] sm:$0xff]  ;;  %v1237_v37 = vpack.c.bf16 %v975_v31, %v974_v30  ;;  %1004 = vst [vmem:[#allocation4] sm:$0xff] %v1236_v36 }
 0x153   : > { %v937_v13 = vld [vmem:[#allocation2 + $0x28] sm:$0xff]  ;;  %v956_v24 = vadd.f32 %v945_v9, %v936_v8 }
 0x154   : > { %v938_v14 = vld [vmem:[#allocation2 + $0x30] sm:$0xff]  ;;  %v957_v25 = vadd.f32 %v949_v10, %v937_v13  ;;  %1005 = vst [vmem:[#allocation4 + $0x8] sm:$0xff] %v1237_v37 }
 0x155   : > { %v939_v15 = vld [vmem:[#allocation2 + $0x38] sm:$0xff]  ;;  %v958_v26 = vadd.f32 %v945_v9, %v938_v14  ;;  %v976_v32 = vadd.f32 %v968_v16, %v956_v24 }
 0x156   : > { %v959_v27 = vadd.f32 %v949_v10, %v939_v15  ;;  %v977_v33 = vadd.f32 %v969_v17, %v957_v25 }
 0x157   : > { %v978_v34 = vadd.f32 %v970_v18, %v958_v26 }
 0x158   : > { %v979_v35 = vadd.f32 %v971_v19, %v959_v27  ;;  %v1238_v38 = vpack.c.bf16 %v977_v33, %v976_v32 }
 0x15a   : > { %v1239_v39 = vpack.c.bf16 %v979_v35, %v978_v34  ;;  %1006 = vst [vmem:[#allocation4 + $0x10] sm:$0xff] %v1238_v38 }
 0x15c   : > { %1007 = vst [vmem:[#allocation4 + $0x18] sm:$0xff] %v1239_v39 }
 0x15d PF: > { %p1651_p12 = scmp.eq.s32.totalorder %s1139_s20, 1  ;;  %s1477_s5 = smov [#allocation4]  }
 0x15e   : > { %s1020_s6 = sshll.u32 %s1477_s5, 4  ;;  %s1021_s6 = int_to_ptr.vmem [resolvable:$true] %s1020_s6 }
 0x15f   : > { %s1406_s7 = scalar_lea.vmem %s1021_s6, 512  ;;  %p1413_p2 = scmp.lt.s32.totalorder %s1021_s6, %s1021_s6 }
 0x160   : > { %p1407_p13 = scmp.ne.s32.totalorder %s1021_s6, %s1406_s7  ;;  %p1414_p3 = scmp.lt.s32.totalorder %s1406_s7, %s1406_s7 }
 0x162   : > { %p1408_p0 = pnand %p1407_p13, %p1651_p12  ;;  %p1415_p4 = por %p1414_p3, %p1413_p2 }
 0x164   : > { %p1409_p1 = pneg %p1408_p0 }
 0x166   : > { %p1416_p5 = pnand %p1415_p4, %p1409_p1 }
 0x168   : > { %1419 = shalt.err (!%p1416_p5)
}
 0x169   : > { %s1420_s20 = scalar_lea.hbm %s1696_s4, 512 }
 0x16a   : > { %p1421_p6 = scmp.ne.s32.totalorder %s1696_s4, %s1420_s20  ;;  %p1426_p9 = scmp.lt.u32.totalorder %s1420_s20, %s1696_s4 }
 0x16c   : > { %p1422_p7 = pnand %p1421_p6, %p1651_p12 }
 0x16e   : > { %p1423_p8 = pneg %p1422_p7 }
 0x170   : > { %p1428_p10 = pnand %p1426_p9, %p1423_p8 }
 0x172   : > { %1431 = shalt.err (!%p1428_p10)
}
 0x173   : > { %s1478_s14 = smov 128   ;;  %s1479_s15 = smov 8  }
 0x174   : > { %1249 = dma.vmem_to_hbm [thread:$0]  (%p1651_p12), %s1021_s6, 512, %s1696_s4, [#allocation5], %s1478_s14, %s1478_s14, %s1479_s15  }
 0x175   : > { %1453 = dma.done.wait (%p1651_p12), [#allocation5], 512  }
 0x176   : > { %1455 = vsyncadd (%p1651_p12), [#allocation5], 4294966784 }
 0x177 PF: > { %s15_s19 = sadd.s32 1, %s1474_s19   ;;  %s1698_s15 = smov %s1462_s16 }
 0x178   : > { %p12_p11 = scmp.ge.s32.totalorder %s15_s19, 4   ;;  %s1699_s16 = smov %s1541_s24 }
 0x179   : > { %s1700_s17 = smov %s1470_s18  ;;  %s1701_s18 = smov %s1703_s21 }
 0x17a   :  { %14 = sbr.rel (!%p12_p11) target bundleno = 3 (0x3), region = 109 }
 0x181   :  { %1036 = vsyncpa [#allocation5], 1 }
 0x182   :  { %1038 = vsyncpa [#allocation5 + $0x1], 1 }

</bundles_post_ra>
